<compile_context>
chip_gen: v6e
topology: v6e:2x2x1
jax: 0.10.0
libtpu: 0.0.40
codegen_flags: <defaults>
</compile_context>

<pallas_src>
import jax
import jax.numpy as jnp
from jax.experimental import pallas as pl
from jax.experimental.pallas import tpu as pltpu


def _block_kernel(x_ref, dws_ref, pws_ref, bias_ref, o_ref, pad_ref):
    # x_ref   : (1, H, W, C) f32   unpadded NHWC input (also the residual)
    # dws_ref : (3, 9, 1, C) bf16  depthwise taps, k = ky*3 + kx, per unit
    # pws_ref : (3, C, C)    bf16  pointwise weights (Cin, Cout), BN scale folded
    # bias_ref: (3, 1, C)    f32   folded BN bias, per unit
    # o_ref   : (1, H, W, C)
    # pad_ref : (H+2, W+2, C) f32  persistent VMEM scratch (padded activation)
    _, H, W, C = o_ref.shape

    # Zero only the scratch border (stays zero between the interior stores
    # below).  Done every invocation: scratch is per-core and uninitialized.
    pad_ref[0:1, :, :] = jnp.zeros((1, W + 2, C), jnp.float32)
    pad_ref[H + 1:H + 2, :, :] = jnp.zeros((1, W + 2, C), jnp.float32)
    pad_ref[1:H + 1, 0:1, :] = jnp.zeros((H, 1, C), jnp.float32)
    pad_ref[1:H + 1, W + 1:W + 2, :] = jnp.zeros((H, 1, C), jnp.float32)

    def dw_pw(u):
        # Depthwise 3x3 + pointwise 1x1 (BN scale folded) on the padded,
        # already-ReLU'd activation held in pad_ref.
        yb = pad_ref[...].astype(jnp.bfloat16)            # (H+2, W+2, C)
        y0 = yb[0:H]                                      # rows h-1
        y1 = yb[1:H + 1]                                  # rows h
        y2 = yb[2:H + 2]                                  # rows h+1
        dwv = dws_ref[u]                                  # (9, 1, C) bf16
        parts = []
        for kx in range(3):
            # ky accumulation in bf16 (packed VALU on v6e/v7x).
            p = y0 * dwv[kx] + y1 * dwv[3 + kx] + y2 * dwv[6 + kx]
            parts.append(p.astype(jnp.float32))           # (H, W+2, C) f32
        # kx combine: 3 W-offset slices (f32, unpacked) instead of 9.
        acc = (parts[0][:, 0:W, :]
               + parts[1][:, 1:W + 1, :]
               + parts[2][:, 2:W + 2, :])                 # (H, W, C) f32

        # Pointwise 1x1 on the MXU: bf16 operands, f32 accumulation; the
        # folded BN bias stays a post-matmul f32 add.
        z = jnp.dot(acc.reshape(H * W, C).astype(jnp.bfloat16),
                    pws_ref[u],
                    preferred_element_type=jnp.float32)
        z = z + bias_ref[u]                               # (1, C) broadcast
        return z.reshape(H, W, C)

    # Unit 0: interior <- ReLU(x).  ReLU commutes with zero padding.
    pad_ref[1:H + 1, 1:W + 1, :] = jnp.maximum(x_ref[0], 0.0)
    h = dw_pw(0)
    # Units 1..2: re-pad the previous unit's output through the scratch.
    pad_ref[1:H + 1, 1:W + 1, :] = jnp.maximum(h, 0.0)
    h = dw_pw(1)
    pad_ref[1:H + 1, 1:W + 1, :] = jnp.maximum(h, 0.0)
    h = dw_pw(2)

    # Pre-activation residual from the same (unpadded) input block.
    o_ref[0] = (h + x_ref[0]).astype(o_ref.dtype)


def _repack_weights(dws, pws, scales, biases, C):
    # depthwise taps: (C,1,3,3) -> (9, 1, C), k = ky*3 + kx, bf16
    dws_k = jnp.stack(
        [jnp.transpose(d[:, 0], (1, 2, 0)).reshape(9, 1, C) for d in dws]
    ).astype(jnp.bfloat16)
    # pointwise: (Cout,Cin,1,1) -> (Cin,Cout), eval-mode BN scale folded, bf16
    pws_k = jnp.stack(
        [p[:, :, 0, 0].T * s[None, :] for p, s in zip(pws, scales)]
    ).astype(jnp.bfloat16)
    # folded BN bias stays a post-matmul f32 add
    bias_k = jnp.stack([b.reshape(1, C) for b in biases]).astype(jnp.float32)
    return dws_k, pws_k, bias_k


def block_forward_nhwc(x_nhwc, dws, pws, scales, biases):
    """NHWC-native entry point (use this when chaining blocks to avoid
    per-block NCHW<->NHWC transposes)."""
    N, H, W, C = x_nhwc.shape
    dws_k, pws_k, bias_k = _repack_weights(dws, pws, scales, biases, C)
    return pl.pallas_call(
        _block_kernel,
        out_shape=jax.ShapeDtypeStruct((N, H, W, C), x_nhwc.dtype),
        grid=(N,),
        in_specs=[
            pl.BlockSpec((1, H, W, C), lambda n: (n, 0, 0, 0)),
            pl.BlockSpec((3, 9, 1, C), lambda n: (0, 0, 0, 0)),
            pl.BlockSpec((3, C, C), lambda n: (0, 0, 0)),
            pl.BlockSpec((3, 1, C), lambda n: (0, 0, 0)),
        ],
        out_specs=pl.BlockSpec((1, H, W, C), lambda n: (n, 0, 0, 0)),
        scratch_shapes=[pltpu.VMEM((H + 2, W + 2, C), jnp.float32)],
        compiler_params=pltpu.CompilerParams(
            dimension_semantics=("parallel",),
            vmem_limit_bytes=48 * 1024 * 1024),
    )(x_nhwc, dws_k, pws_k, bias_k)


def block_forward_pallas(x_nchw, dws, pws, scales, biases):
    """x_nchw: (N, C, H, W) f32. dws[i]: (C,1,3,3); pws[i]: (C,C,1,1);
    scales/biases[i]: (C,) folded eval-mode BN affine. Returns (N, C, H, W)."""
    x_nhwc = jnp.transpose(x_nchw, (0, 2, 3, 1))
    out_nhwc = block_forward_nhwc(x_nhwc, dws, pws, scales, biases)
    return jnp.transpose(out_nhwc, (0, 3, 1, 2))


def block_forward_ref(x, dws, pws, scales, biases):
    """Pure-JAX NCHW reference mirroring the PyTorch module (eval-mode BN)."""
    h = x
    C = x.shape[1]
    for dw, pw, s, b in zip(dws, pws, scales, biases):
        h = jnp.maximum(h, 0.0)
        h = jax.lax.conv_general_dilated(
            h, dw, (1, 1), ((1, 1), (1, 1)), feature_group_count=C,
            dimension_numbers=("NCHW", "OIHW", "NCHW"))
        h = jax.lax.conv_general_dilated(
            h, pw, (1, 1), "VALID",
            dimension_numbers=("NCHW", "OIHW", "NCHW"))
        h = h * s[None, :, None, None] + b[None, :, None, None]
    return h + x


if __name__ == "__main__":
    N, C, H, W = 2, 32, 16, 16   # in_channel == mid_channel == out_channel == C
    eps = 1e-5
    key = jax.random.PRNGKey(0)
    kx, key = jax.random.split(key)
    x = jax.random.normal(kx, (N, C, H, W), jnp.float32)

    dws, pws, scales, biases = [], [], [], []
    for u in range(3):
        key, k1, k2, k3, k4, k5, k6 = jax.random.split(key, 7)
        dw = 0.2 * jax.random.normal(k1, (C, 1, 3, 3), jnp.float32)    # depthwise
        pw = 0.2 * jax.random.normal(k2, (C, C, 1, 1), jnp.float32)    # pointwise
        gamma = 1.0 + 0.1 * jax.random.normal(k3, (C,), jnp.float32)
        beta = 0.1 * jax.random.normal(k4, (C,), jnp.float32)
        running_mean = 0.1 * jax.random.normal(k5, (C,), jnp.float32)
        running_var = jnp.abs(jax.random.normal(k6, (C,), jnp.float32)) + 0.5
        scale = gamma / jnp.sqrt(running_var + eps)   # fold eval-mode BN
        bias = beta - running_mean * scale
        dws.append(dw); pws.append(pw); scales.append(scale); biases.append(bias)

    out = block_forward_pallas(x, dws, pws, scales, biases)
    out = jax.block_until_ready(out)

    ref = block_forward_ref(x, dws, pws, scales, biases)
    # bf16 depthwise accumulation + bf16 MXU operands (f32 accumulation)
    # -> relaxed tolerance vs the f32 reference.
    if not jnp.allclose(out, ref, atol=5e-2, rtol=5e-2):
        err = jnp.max(jnp.abs(out - ref))
        raise AssertionError(
            f"Pallas Block output mismatch vs reference (max abs err {err})")

    print("KERNEL_OK")
</pallas_src>

<mosaic_0001>
module attributes {stable_mosaic.version = 11 : i64} {
  func.func @_block_kernel(%arg0: i32, %arg1: memref<1x16x16x32xf32, #tpu.memory_space<vmem>>, %arg2: memref<3x9x1x32xbf16, #tpu.memory_space<vmem>>, %arg3: memref<3x32x32xbf16, #tpu.memory_space<vmem>>, %arg4: memref<3x1x32xf32, #tpu.memory_space<vmem>>, %arg5: memref<1x16x16x32xf32, #tpu.memory_space<vmem>>, %arg6: memref<18x18x32xf32, #tpu.memory_space<vmem>>) attributes {dimension_semantics = [#tpu.dimension_semantics<parallel>], iteration_bounds = array<i64: 2>, scalar_prefetch = 0 : i64, scratch_operands = 1 : i64, tpu.core_type = #tpu.core_type<tc>, window_params = [{transform_indices = @transform_0, window_bounds = array<i64: 1, 16, 16, 32>}, {pipeline_mode = #tpu.pipeline_mode<synchronous>, transform_indices = @transform_1, window_bounds = array<i64: 3, 9, 1, 32>}, {pipeline_mode = #tpu.pipeline_mode<synchronous>, transform_indices = @transform_2, window_bounds = array<i64: 3, 32, 32>}, {pipeline_mode = #tpu.pipeline_mode<synchronous>, transform_indices = @transform_3, window_bounds = array<i64: 3, 1, 32>}, {transform_indices = @transform_4, window_bounds = array<i64: 1, 16, 16, 32>}]} {
    %cst = arith.constant 0.000000e+00 : f32
    %0 = vector.broadcast %cst : f32 to vector<1x18x32xf32>
    %c0 = arith.constant 0 : index
    %c0_0 = arith.constant 0 : index
    %c0_1 = arith.constant 0 : index
    %1 = vector.load %arg6[%c0, %c0_0, %c0_1] : memref<18x18x32xf32, #tpu.memory_space<vmem>>, vector<1x18x32xf32>
    tpu.vector_store %arg6[%c0, %c0_0, %c0_1], %0 {strides = array<i32>} : memref<18x18x32xf32, #tpu.memory_space<vmem>>, vector<1x18x32xf32>,
    %cst_2 = arith.constant 0.000000e+00 : f32
    %2 = vector.broadcast %cst_2 : f32 to vector<1x18x32xf32>
    %c17 = arith.constant 17 : index
    %c0_3 = arith.constant 0 : index
    %c0_4 = arith.constant 0 : index
    %3 = vector.load %arg6[%c17, %c0_3, %c0_4] : memref<18x18x32xf32, #tpu.memory_space<vmem>>, vector<1x18x32xf32>
    tpu.vector_store %arg6[%c17, %c0_3, %c0_4], %2 {strides = array<i32>} : memref<18x18x32xf32, #tpu.memory_space<vmem>>, vector<1x18x32xf32>,
    %cst_5 = arith.constant 0.000000e+00 : f32
    %4 = vector.broadcast %cst_5 : f32 to vector<16x1x32xf32>
    %c1 = arith.constant 1 : index
    %c0_6 = arith.constant 0 : index
    %c0_7 = arith.constant 0 : index
    %5 = vector.load %arg6[%c1, %c0_6, %c0_7] : memref<18x18x32xf32, #tpu.memory_space<vmem>>, vector<16x1x32xf32>
    tpu.vector_store %arg6[%c1, %c0_6, %c0_7], %4 {strides = array<i32>} : memref<18x18x32xf32, #tpu.memory_space<vmem>>, vector<16x1x32xf32>,
    %cst_8 = arith.constant 0.000000e+00 : f32
    %6 = vector.broadcast %cst_8 : f32 to vector<16x1x32xf32>
    %c1_9 = arith.constant 1 : index
    %c17_10 = arith.constant 17 : index
    %c0_11 = arith.constant 0 : index
    %7 = vector.load %arg6[%c1_9, %c17_10, %c0_11] : memref<18x18x32xf32, #tpu.memory_space<vmem>>, vector<16x1x32xf32>
    tpu.vector_store %arg6[%c1_9, %c17_10, %c0_11], %6 {strides = array<i32>} : memref<18x18x32xf32, #tpu.memory_space<vmem>>, vector<16x1x32xf32>,
    %c0_12 = arith.constant 0 : index
    %c0_13 = arith.constant 0 : index
    %c0_14 = arith.constant 0 : index
    %c0_15 = arith.constant 0 : index
    %8 = vector.load %arg1[%c0_12, %c0_13, %c0_14, %c0_15] : memref<1x16x16x32xf32, #tpu.memory_space<vmem>>, vector<1x16x16x32xf32>
    %9 = vector.shape_cast %8 : vector<1x16x16x32xf32> to vector<16x16x32xf32>
    %cst_16 = arith.constant 0.000000e+00 : f32
    %10 = vector.broadcast %cst_16 : f32 to vector<16x16x32xf32>
    %11 = arith.maximumf %9, %10 : vector<16x16x32xf32>
    %c1_17 = arith.constant 1 : index
    %c1_18 = arith.constant 1 : index
    %c0_19 = arith.constant 0 : index
    %12 = vector.load %arg6[%c1_17, %c1_18, %c0_19] : memref<18x18x32xf32, #tpu.memory_space<vmem>>, vector<16x16x32xf32>
    tpu.vector_store %arg6[%c1_17, %c1_18, %c0_19], %11 {strides = array<i32>} : memref<18x18x32xf32, #tpu.memory_space<vmem>>, vector<16x16x32xf32>,
    %c0_20 = arith.constant 0 : index
    %c0_21 = arith.constant 0 : index
    %c0_22 = arith.constant 0 : index
    %13 = vector.load %arg6[%c0_20, %c0_21, %c0_22] : memref<18x18x32xf32, #tpu.memory_space<vmem>>, vector<18x18x32xf32>
    %14 = arith.truncf %13 : vector<18x18x32xf32> to vector<18x18x32xbf16>
    %15 = vector.extract_strided_slice %14 {offsets = [0, 0, 0], sizes = [16, 18, 32], strides = [1, 1, 1]} : vector<18x18x32xbf16> to vector<16x18x32xbf16>
    %16 = vector.extract_strided_slice %14 {offsets = [1, 0, 0], sizes = [16, 18, 32], strides = [1, 1, 1]} : vector<18x18x32xbf16> to vector<16x18x32xbf16>
    %17 = vector.extract_strided_slice %14 {offsets = [2, 0, 0], sizes = [16, 18, 32], strides = [1, 1, 1]} : vector<18x18x32xbf16> to vector<16x18x32xbf16>
    %c0_23 = arith.constant 0 : index
    %c0_24 = arith.constant 0 : index
    %c0_25 = arith.constant 0 : index
    %c0_26 = arith.constant 0 : index
    %18 = vector.load %arg2[%c0_23, %c0_24, %c0_25, %c0_26] : memref<3x9x1x32xbf16, #tpu.memory_space<vmem>>, vector<1x9x1x32xbf16>
    %19 = vector.shape_cast %18 : vector<1x9x1x32xbf16> to vector<9x1x32xbf16>
    %20 = vector.extract_strided_slice %19 {offsets = [0, 0, 0], sizes = [1, 1, 32], strides = [1, 1, 1]} : vector<9x1x32xbf16> to vector<1x1x32xbf16>
    %21 = vector.shape_cast %20 : vector<1x1x32xbf16> to vector<1x32xbf16>
    %22 = vector.shape_cast %21 : vector<1x32xbf16> to vector<1x1x32xbf16>
    %23 = vector.broadcast %22 : vector<1x1x32xbf16> to vector<16x18x32xbf16>
    %24 = arith.mulf %15, %23 : vector<16x18x32xbf16>
    %25 = vector.extract_strided_slice %19 {offsets = [3, 0, 0], sizes = [1, 1, 32], strides = [1, 1, 1]} : vector<9x1x32xbf16> to vector<1x1x32xbf16>
    %26 = vector.shape_cast %25 : vector<1x1x32xbf16> to vector<1x32xbf16>
    %27 = vector.shape_cast %26 : vector<1x32xbf16> to vector<1x1x32xbf16>
    %28 = vector.broadcast %27 : vector<1x1x32xbf16> to vector<16x18x32xbf16>
    %29 = arith.mulf %16, %28 : vector<16x18x32xbf16>
    %30 = arith.addf %24, %29 : vector<16x18x32xbf16>
    %31 = vector.extract_strided_slice %19 {offsets = [6, 0, 0], sizes = [1, 1, 32], strides = [1, 1, 1]} : vector<9x1x32xbf16> to vector<1x1x32xbf16>
    %32 = vector.shape_cast %31 : vector<1x1x32xbf16> to vector<1x32xbf16>
    %33 = vector.shape_cast %32 : vector<1x32xbf16> to vector<1x1x32xbf16>
    %34 = vector.broadcast %33 : vector<1x1x32xbf16> to vector<16x18x32xbf16>
    %35 = arith.mulf %17, %34 : vector<16x18x32xbf16>
    %36 = arith.addf %30, %35 : vector<16x18x32xbf16>
    %37 = arith.extf %36 : vector<16x18x32xbf16> to vector<16x18x32xf32>
    %38 = vector.extract_strided_slice %19 {offsets = [1, 0, 0], sizes = [1, 1, 32], strides = [1, 1, 1]} : vector<9x1x32xbf16> to vector<1x1x32xbf16>
    %39 = vector.shape_cast %38 : vector<1x1x32xbf16> to vector<1x32xbf16>
    %40 = vector.shape_cast %39 : vector<1x32xbf16> to vector<1x1x32xbf16>
    %41 = vector.broadcast %40 : vector<1x1x32xbf16> to vector<16x18x32xbf16>
    %42 = arith.mulf %15, %41 : vector<16x18x32xbf16>
    %43 = vector.extract_strided_slice %19 {offsets = [4, 0, 0], sizes = [1, 1, 32], strides = [1, 1, 1]} : vector<9x1x32xbf16> to vector<1x1x32xbf16>
    %44 = vector.shape_cast %43 : vector<1x1x32xbf16> to vector<1x32xbf16>
    %45 = vector.shape_cast %44 : vector<1x32xbf16> to vector<1x1x32xbf16>
    %46 = vector.broadcast %45 : vector<1x1x32xbf16> to vector<16x18x32xbf16>
    %47 = arith.mulf %16, %46 : vector<16x18x32xbf16>
    %48 = arith.addf %42, %47 : vector<16x18x32xbf16>
    %49 = vector.extract_strided_slice %19 {offsets = [7, 0, 0], sizes = [1, 1, 32], strides = [1, 1, 1]} : vector<9x1x32xbf16> to vector<1x1x32xbf16>
    %50 = vector.shape_cast %49 : vector<1x1x32xbf16> to vector<1x32xbf16>
    %51 = vector.shape_cast %50 : vector<1x32xbf16> to vector<1x1x32xbf16>
    %52 = vector.broadcast %51 : vector<1x1x32xbf16> to vector<16x18x32xbf16>
    %53 = arith.mulf %17, %52 : vector<16x18x32xbf16>
    %54 = arith.addf %48, %53 : vector<16x18x32xbf16>
    %55 = arith.extf %54 : vector<16x18x32xbf16> to vector<16x18x32xf32>
    %56 = vector.extract_strided_slice %19 {offsets = [2, 0, 0], sizes = [1, 1, 32], strides = [1, 1, 1]} : vector<9x1x32xbf16> to vector<1x1x32xbf16>
    %57 = vector.shape_cast %56 : vector<1x1x32xbf16> to vector<1x32xbf16>
    %58 = vector.shape_cast %57 : vector<1x32xbf16> to vector<1x1x32xbf16>
    %59 = vector.broadcast %58 : vector<1x1x32xbf16> to vector<16x18x32xbf16>
    %60 = arith.mulf %15, %59 : vector<16x18x32xbf16>
    %61 = vector.extract_strided_slice %19 {offsets = [5, 0, 0], sizes = [1, 1, 32], strides = [1, 1, 1]} : vector<9x1x32xbf16> to vector<1x1x32xbf16>
    %62 = vector.shape_cast %61 : vector<1x1x32xbf16> to vector<1x32xbf16>
    %63 = vector.shape_cast %62 : vector<1x32xbf16> to vector<1x1x32xbf16>
    %64 = vector.broadcast %63 : vector<1x1x32xbf16> to vector<16x18x32xbf16>
    %65 = arith.mulf %16, %64 : vector<16x18x32xbf16>
    %66 = arith.addf %60, %65 : vector<16x18x32xbf16>
    %67 = vector.extract_strided_slice %19 {offsets = [8, 0, 0], sizes = [1, 1, 32], strides = [1, 1, 1]} : vector<9x1x32xbf16> to vector<1x1x32xbf16>
    %68 = vector.shape_cast %67 : vector<1x1x32xbf16> to vector<1x32xbf16>
    %69 = vector.shape_cast %68 : vector<1x32xbf16> to vector<1x1x32xbf16>
    %70 = vector.broadcast %69 : vector<1x1x32xbf16> to vector<16x18x32xbf16>
    %71 = arith.mulf %17, %70 : vector<16x18x32xbf16>
    %72 = arith.addf %66, %71 : vector<16x18x32xbf16>
    %73 = arith.extf %72 : vector<16x18x32xbf16> to vector<16x18x32xf32>
    %74 = vector.extract_strided_slice %37 {offsets = [0, 0, 0], sizes = [16, 16, 32], strides = [1, 1, 1]} : vector<16x18x32xf32> to vector<16x16x32xf32>
    %75 = vector.extract_strided_slice %55 {offsets = [0, 1, 0], sizes = [16, 16, 32], strides = [1, 1, 1]} : vector<16x18x32xf32> to vector<16x16x32xf32>
    %76 = arith.addf %74, %75 : vector<16x16x32xf32>
    %77 = vector.extract_strided_slice %73 {offsets = [0, 2, 0], sizes = [16, 16, 32], strides = [1, 1, 1]} : vector<16x18x32xf32> to vector<16x16x32xf32>
    %78 = arith.addf %76, %77 : vector<16x16x32xf32>
    %79 = vector.shape_cast %78 : vector<16x16x32xf32> to vector<256x32xf32>
    %80 = arith.truncf %79 : vector<256x32xf32> to vector<256x32xbf16>
    %c0_27 = arith.constant 0 : index
    %c0_28 = arith.constant 0 : index
    %c0_29 = arith.constant 0 : index
    %81 = vector.load %arg3[%c0_27, %c0_28, %c0_29] : memref<3x32x32xbf16, #tpu.memory_space<vmem>>, vector<1x32x32xbf16>
    %82 = vector.shape_cast %81 : vector<1x32x32xbf16> to vector<32x32xbf16>
    %cst_30 = arith.constant dense<0.000000e+00> : vector<256x32xf32>
    %83 = tpu.matmul %80, %82, %cst_30 {dimension_numbers = #tpu.dot_dimension_numbers<[1], [0], [0], [1], [0, 0, 1, 1], [], []>} : vector<256x32xbf16>, vector<32x32xbf16>, vector<256x32xf32> -> vector<256x32xf32>
    %c0_31 = arith.constant 0 : index
    %c0_32 = arith.constant 0 : index
    %c0_33 = arith.constant 0 : index
    %84 = vector.load %arg4[%c0_31, %c0_32, %c0_33] : memref<3x1x32xf32, #tpu.memory_space<vmem>>, vector<1x1x32xf32>
    %85 = vector.shape_cast %84 : vector<1x1x32xf32> to vector<1x32xf32>
    %86 = vector.broadcast %85 : vector<1x32xf32> to vector<256x32xf32>
    %87 = arith.addf %83, %86 : vector<256x32xf32>
    %88 = vector.shape_cast %87 : vector<256x32xf32> to vector<16x16x32xf32>
    %cst_34 = arith.constant 0.000000e+00 : f32
    %89 = vector.broadcast %cst_34 : f32 to vector<16x16x32xf32>
    %90 = arith.maximumf %88, %89 : vector<16x16x32xf32>
    %c1_35 = arith.constant 1 : index
    %c1_36 = arith.constant 1 : index
    %c0_37 = arith.constant 0 : index
    %91 = vector.load %arg6[%c1_35, %c1_36, %c0_37] : memref<18x18x32xf32, #tpu.memory_space<vmem>>, vector<16x16x32xf32>
    tpu.vector_store %arg6[%c1_35, %c1_36, %c0_37], %90 {strides = array<i32>} : memref<18x18x32xf32, #tpu.memory_space<vmem>>, vector<16x16x32xf32>,
    %c0_38 = arith.constant 0 : index
    %c0_39 = arith.constant 0 : index
    %c0_40 = arith.constant 0 : index
    %92 = vector.load %arg6[%c0_38, %c0_39, %c0_40] : memref<18x18x32xf32, #tpu.memory_space<vmem>>, vector<18x18x32xf32>
    %93 = arith.truncf %92 : vector<18x18x32xf32> to vector<18x18x32xbf16>
    %94 = vector.extract_strided_slice %93 {offsets = [0, 0, 0], sizes = [16, 18, 32], strides = [1, 1, 1]} : vector<18x18x32xbf16> to vector<16x18x32xbf16>
    %95 = vector.extract_strided_slice %93 {offsets = [1, 0, 0], sizes = [16, 18, 32], strides = [1, 1, 1]} : vector<18x18x32xbf16> to vector<16x18x32xbf16>
    %96 = vector.extract_strided_slice %93 {offsets = [2, 0, 0], sizes = [16, 18, 32], strides = [1, 1, 1]} : vector<18x18x32xbf16> to vector<16x18x32xbf16>
    %c1_41 = arith.constant 1 : index
    %c0_42 = arith.constant 0 : index
    %c0_43 = arith.constant 0 : index
    %c0_44 = arith.constant 0 : index
    %97 = vector.load %arg2[%c1_41, %c0_42, %c0_43, %c0_44] : memref<3x9x1x32xbf16, #tpu.memory_space<vmem>>, vector<1x9x1x32xbf16>
    %98 = vector.shape_cast %97 : vector<1x9x1x32xbf16> to vector<9x1x32xbf16>
    %99 = vector.extract_strided_slice %98 {offsets = [0, 0, 0], sizes = [1, 1, 32], strides = [1, 1, 1]} : vector<9x1x32xbf16> to vector<1x1x32xbf16>
    %100 = vector.shape_cast %99 : vector<1x1x32xbf16> to vector<1x32xbf16>
    %101 = vector.shape_cast %100 : vector<1x32xbf16> to vector<1x1x32xbf16>
    %102 = vector.broadcast %101 : vector<1x1x32xbf16> to vector<16x18x32xbf16>
    %103 = arith.mulf %94, %102 : vector<16x18x32xbf16>
    %104 = vector.extract_strided_slice %98 {offsets = [3, 0, 0], sizes = [1, 1, 32], strides = [1, 1, 1]} : vector<9x1x32xbf16> to vector<1x1x32xbf16>
    %105 = vector.shape_cast %104 : vector<1x1x32xbf16> to vector<1x32xbf16>
    %106 = vector.shape_cast %105 : vector<1x32xbf16> to vector<1x1x32xbf16>
    %107 = vector.broadcast %106 : vector<1x1x32xbf16> to vector<16x18x32xbf16>
    %108 = arith.mulf %95, %107 : vector<16x18x32xbf16>
    %109 = arith.addf %103, %108 : vector<16x18x32xbf16>
    %110 = vector.extract_strided_slice %98 {offsets = [6, 0, 0], sizes = [1, 1, 32], strides = [1, 1, 1]} : vector<9x1x32xbf16> to vector<1x1x32xbf16>
    %111 = vector.shape_cast %110 : vector<1x1x32xbf16> to vector<1x32xbf16>
    %112 = vector.shape_cast %111 : vector<1x32xbf16> to vector<1x1x32xbf16>
    %113 = vector.broadcast %112 : vector<1x1x32xbf16> to vector<16x18x32xbf16>
    %114 = arith.mulf %96, %113 : vector<16x18x32xbf16>
    %115 = arith.addf %109, %114 : vector<16x18x32xbf16>
    %116 = arith.extf %115 : vector<16x18x32xbf16> to vector<16x18x32xf32>
    %117 = vector.extract_strided_slice %98 {offsets = [1, 0, 0], sizes = [1, 1, 32], strides = [1, 1, 1]} : vector<9x1x32xbf16> to vector<1x1x32xbf16>
    %118 = vector.shape_cast %117 : vector<1x1x32xbf16> to vector<1x32xbf16>
    %119 = vector.shape_cast %118 : vector<1x32xbf16> to vector<1x1x32xbf16>
    %120 = vector.broadcast %119 : vector<1x1x32xbf16> to vector<16x18x32xbf16>
    %121 = arith.mulf %94, %120 : vector<16x18x32xbf16>
    %122 = vector.extract_strided_slice %98 {offsets = [4, 0, 0], sizes = [1, 1, 32], strides = [1, 1, 1]} : vector<9x1x32xbf16> to vector<1x1x32xbf16>
    %123 = vector.shape_cast %122 : vector<1x1x32xbf16> to vector<1x32xbf16>
    %124 = vector.shape_cast %123 : vector<1x32xbf16> to vector<1x1x32xbf16>
    %125 = vector.broadcast %124 : vector<1x1x32xbf16> to vector<16x18x32xbf16>
    %126 = arith.mulf %95, %125 : vector<16x18x32xbf16>
    %127 = arith.addf %121, %126 : vector<16x18x32xbf16>
    %128 = vector.extract_strided_slice %98 {offsets = [7, 0, 0], sizes = [1, 1, 32], strides = [1, 1, 1]} : vector<9x1x32xbf16> to vector<1x1x32xbf16>
    %129 = vector.shape_cast %128 : vector<1x1x32xbf16> to vector<1x32xbf16>
    %130 = vector.shape_cast %129 : vector<1x32xbf16> to vector<1x1x32xbf16>
    %131 = vector.broadcast %130 : vector<1x1x32xbf16> to vector<16x18x32xbf16>
    %132 = arith.mulf %96, %131 : vector<16x18x32xbf16>
    %133 = arith.addf %127, %132 : vector<16x18x32xbf16>
    %134 = arith.extf %133 : vector<16x18x32xbf16> to vector<16x18x32xf32>
    %135 = vector.extract_strided_slice %98 {offsets = [2, 0, 0], sizes = [1, 1, 32], strides = [1, 1, 1]} : vector<9x1x32xbf16> to vector<1x1x32xbf16>
    %136 = vector.shape_cast %135 : vector<1x1x32xbf16> to vector<1x32xbf16>
    %137 = vector.shape_cast %136 : vector<1x32xbf16> to vector<1x1x32xbf16>
    %138 = vector.broadcast %137 : vector<1x1x32xbf16> to vector<16x18x32xbf16>
    %139 = arith.mulf %94, %138 : vector<16x18x32xbf16>
    %140 = vector.extract_strided_slice %98 {offsets = [5, 0, 0], sizes = [1, 1, 32], strides = [1, 1, 1]} : vector<9x1x32xbf16> to vector<1x1x32xbf16>
    %141 = vector.shape_cast %140 : vector<1x1x32xbf16> to vector<1x32xbf16>
    %142 = vector.shape_cast %141 : vector<1x32xbf16> to vector<1x1x32xbf16>
    %143 = vector.broadcast %142 : vector<1x1x32xbf16> to vector<16x18x32xbf16>
    %144 = arith.mulf %95, %143 : vector<16x18x32xbf16>
    %145 = arith.addf %139, %144 : vector<16x18x32xbf16>
    %146 = vector.extract_strided_slice %98 {offsets = [8, 0, 0], sizes = [1, 1, 32], strides = [1, 1, 1]} : vector<9x1x32xbf16> to vector<1x1x32xbf16>
    %147 = vector.shape_cast %146 : vector<1x1x32xbf16> to vector<1x32xbf16>
    %148 = vector.shape_cast %147 : vector<1x32xbf16> to vector<1x1x32xbf16>
    %149 = vector.broadcast %148 : vector<1x1x32xbf16> to vector<16x18x32xbf16>
    %150 = arith.mulf %96, %149 : vector<16x18x32xbf16>
    %151 = arith.addf %145, %150 : vector<16x18x32xbf16>
    %152 = arith.extf %151 : vector<16x18x32xbf16> to vector<16x18x32xf32>
    %153 = vector.extract_strided_slice %116 {offsets = [0, 0, 0], sizes = [16, 16, 32], strides = [1, 1, 1]} : vector<16x18x32xf32> to vector<16x16x32xf32>
    %154 = vector.extract_strided_slice %134 {offsets = [0, 1, 0], sizes = [16, 16, 32], strides = [1, 1, 1]} : vector<16x18x32xf32> to vector<16x16x32xf32>
    %155 = arith.addf %153, %154 : vector<16x16x32xf32>
    %156 = vector.extract_strided_slice %152 {offsets = [0, 2, 0], sizes = [16, 16, 32], strides = [1, 1, 1]} : vector<16x18x32xf32> to vector<16x16x32xf32>
    %157 = arith.addf %155, %156 : vector<16x16x32xf32>
    %158 = vector.shape_cast %157 : vector<16x16x32xf32> to vector<256x32xf32>
    %159 = arith.truncf %158 : vector<256x32xf32> to vector<256x32xbf16>
    %c1_45 = arith.constant 1 : index
    %c0_46 = arith.constant 0 : index
    %c0_47 = arith.constant 0 : index
    %160 = vector.load %arg3[%c1_45, %c0_46, %c0_47] : memref<3x32x32xbf16, #tpu.memory_space<vmem>>, vector<1x32x32xbf16>
    %161 = vector.shape_cast %160 : vector<1x32x32xbf16> to vector<32x32xbf16>
    %cst_48 = arith.constant dense<0.000000e+00> : vector<256x32xf32>
    %162 = tpu.matmul %159, %161, %cst_48 {dimension_numbers = #tpu.dot_dimension_numbers<[1], [0], [0], [1], [0, 0, 1, 1], [], []>} : vector<256x32xbf16>, vector<32x32xbf16>, vector<256x32xf32> -> vector<256x32xf32>
    %c1_49 = arith.constant 1 : index
    %c0_50 = arith.constant 0 : index
    %c0_51 = arith.constant 0 : index
    %163 = vector.load %arg4[%c1_49, %c0_50, %c0_51] : memref<3x1x32xf32, #tpu.memory_space<vmem>>, vector<1x1x32xf32>
    %164 = vector.shape_cast %163 : vector<1x1x32xf32> to vector<1x32xf32>
    %165 = vector.broadcast %164 : vector<1x32xf32> to vector<256x32xf32>
    %166 = arith.addf %162, %165 : vector<256x32xf32>
    %167 = vector.shape_cast %166 : vector<256x32xf32> to vector<16x16x32xf32>
    %cst_52 = arith.constant 0.000000e+00 : f32
    %168 = vector.broadcast %cst_52 : f32 to vector<16x16x32xf32>
    %169 = arith.maximumf %167, %168 : vector<16x16x32xf32>
    %c1_53 = arith.constant 1 : index
    %c1_54 = arith.constant 1 : index
    %c0_55 = arith.constant 0 : index
    %170 = vector.load %arg6[%c1_53, %c1_54, %c0_55] : memref<18x18x32xf32, #tpu.memory_space<vmem>>, vector<16x16x32xf32>
    tpu.vector_store %arg6[%c1_53, %c1_54, %c0_55], %169 {strides = array<i32>} : memref<18x18x32xf32, #tpu.memory_space<vmem>>, vector<16x16x32xf32>,
    %c0_56 = arith.constant 0 : index
    %c0_57 = arith.constant 0 : index
    %c0_58 = arith.constant 0 : index
    %171 = vector.load %arg6[%c0_56, %c0_57, %c0_58] : memref<18x18x32xf32, #tpu.memory_space<vmem>>, vector<18x18x32xf32>
    %172 = arith.truncf %171 : vector<18x18x32xf32> to vector<18x18x32xbf16>
    %173 = vector.extract_strided_slice %172 {offsets = [0, 0, 0], sizes = [16, 18, 32], strides = [1, 1, 1]} : vector<18x18x32xbf16> to vector<16x18x32xbf16>
    %174 = vector.extract_strided_slice %172 {offsets = [1, 0, 0], sizes = [16, 18, 32], strides = [1, 1, 1]} : vector<18x18x32xbf16> to vector<16x18x32xbf16>
    %175 = vector.extract_strided_slice %172 {offsets = [2, 0, 0], sizes = [16, 18, 32], strides = [1, 1, 1]} : vector<18x18x32xbf16> to vector<16x18x32xbf16>
    %c2 = arith.constant 2 : index
    %c0_59 = arith.constant 0 : index
    %c0_60 = arith.constant 0 : index
    %c0_61 = arith.constant 0 : index
    %176 = vector.load %arg2[%c2, %c0_59, %c0_60, %c0_61] : memref<3x9x1x32xbf16, #tpu.memory_space<vmem>>, vector<1x9x1x32xbf16>
    %177 = vector.shape_cast %176 : vector<1x9x1x32xbf16> to vector<9x1x32xbf16>
    %178 = vector.extract_strided_slice %177 {offsets = [0, 0, 0], sizes = [1, 1, 32], strides = [1, 1, 1]} : vector<9x1x32xbf16> to vector<1x1x32xbf16>
    %179 = vector.shape_cast %178 : vector<1x1x32xbf16> to vector<1x32xbf16>
    %180 = vector.shape_cast %179 : vector<1x32xbf16> to vector<1x1x32xbf16>
    %181 = vector.broadcast %180 : vector<1x1x32xbf16> to vector<16x18x32xbf16>
    %182 = arith.mulf %173, %181 : vector<16x18x32xbf16>
    %183 = vector.extract_strided_slice %177 {offsets = [3, 0, 0], sizes = [1, 1, 32], strides = [1, 1, 1]} : vector<9x1x32xbf16> to vector<1x1x32xbf16>
    %184 = vector.shape_cast %183 : vector<1x1x32xbf16> to vector<1x32xbf16>
    %185 = vector.shape_cast %184 : vector<1x32xbf16> to vector<1x1x32xbf16>
    %186 = vector.broadcast %185 : vector<1x1x32xbf16> to vector<16x18x32xbf16>
    %187 = arith.mulf %174, %186 : vector<16x18x32xbf16>
    %188 = arith.addf %182, %187 : vector<16x18x32xbf16>
    %189 = vector.extract_strided_slice %177 {offsets = [6, 0, 0], sizes = [1, 1, 32], strides = [1, 1, 1]} : vector<9x1x32xbf16> to vector<1x1x32xbf16>
    %190 = vector.shape_cast %189 : vector<1x1x32xbf16> to vector<1x32xbf16>
    %191 = vector.shape_cast %190 : vector<1x32xbf16> to vector<1x1x32xbf16>
    %192 = vector.broadcast %191 : vector<1x1x32xbf16> to vector<16x18x32xbf16>
    %193 = arith.mulf %175, %192 : vector<16x18x32xbf16>
    %194 = arith.addf %188, %193 : vector<16x18x32xbf16>
    %195 = arith.extf %194 : vector<16x18x32xbf16> to vector<16x18x32xf32>
    %196 = vector.extract_strided_slice %177 {offsets = [1, 0, 0], sizes = [1, 1, 32], strides = [1, 1, 1]} : vector<9x1x32xbf16> to vector<1x1x32xbf16>
    %197 = vector.shape_cast %196 : vector<1x1x32xbf16> to vector<1x32xbf16>
    %198 = vector.shape_cast %197 : vector<1x32xbf16> to vector<1x1x32xbf16>
    %199 = vector.broadcast %198 : vector<1x1x32xbf16> to vector<16x18x32xbf16>
    %200 = arith.mulf %173, %199 : vector<16x18x32xbf16>
    %201 = vector.extract_strided_slice %177 {offsets = [4, 0, 0], sizes = [1, 1, 32], strides = [1, 1, 1]} : vector<9x1x32xbf16> to vector<1x1x32xbf16>
    %202 = vector.shape_cast %201 : vector<1x1x32xbf16> to vector<1x32xbf16>
    %203 = vector.shape_cast %202 : vector<1x32xbf16> to vector<1x1x32xbf16>
    %204 = vector.broadcast %203 : vector<1x1x32xbf16> to vector<16x18x32xbf16>
    %205 = arith.mulf %174, %204 : vector<16x18x32xbf16>
    %206 = arith.addf %200, %205 : vector<16x18x32xbf16>
    %207 = vector.extract_strided_slice %177 {offsets = [7, 0, 0], sizes = [1, 1, 32], strides = [1, 1, 1]} : vector<9x1x32xbf16> to vector<1x1x32xbf16>
    %208 = vector.shape_cast %207 : vector<1x1x32xbf16> to vector<1x32xbf16>
    %209 = vector.shape_cast %208 : vector<1x32xbf16> to vector<1x1x32xbf16>
    %210 = vector.broadcast %209 : vector<1x1x32xbf16> to vector<16x18x32xbf16>
    %211 = arith.mulf %175, %210 : vector<16x18x32xbf16>
    %212 = arith.addf %206, %211 : vector<16x18x32xbf16>
    %213 = arith.extf %212 : vector<16x18x32xbf16> to vector<16x18x32xf32>
    %214 = vector.extract_strided_slice %177 {offsets = [2, 0, 0], sizes = [1, 1, 32], strides = [1, 1, 1]} : vector<9x1x32xbf16> to vector<1x1x32xbf16>
    %215 = vector.shape_cast %214 : vector<1x1x32xbf16> to vector<1x32xbf16>
    %216 = vector.shape_cast %215 : vector<1x32xbf16> to vector<1x1x32xbf16>
    %217 = vector.broadcast %216 : vector<1x1x32xbf16> to vector<16x18x32xbf16>
    %218 = arith.mulf %173, %217 : vector<16x18x32xbf16>
    %219 = vector.extract_strided_slice %177 {offsets = [5, 0, 0], sizes = [1, 1, 32], strides = [1, 1, 1]} : vector<9x1x32xbf16> to vector<1x1x32xbf16>
    %220 = vector.shape_cast %219 : vector<1x1x32xbf16> to vector<1x32xbf16>
    %221 = vector.shape_cast %220 : vector<1x32xbf16> to vector<1x1x32xbf16>
    %222 = vector.broadcast %221 : vector<1x1x32xbf16> to vector<16x18x32xbf16>
    %223 = arith.mulf %174, %222 : vector<16x18x32xbf16>
    %224 = arith.addf %218, %223 : vector<16x18x32xbf16>
    %225 = vector.extract_strided_slice %177 {offsets = [8, 0, 0], sizes = [1, 1, 32], strides = [1, 1, 1]} : vector<9x1x32xbf16> to vector<1x1x32xbf16>
    %226 = vector.shape_cast %225 : vector<1x1x32xbf16> to vector<1x32xbf16>
    %227 = vector.shape_cast %226 : vector<1x32xbf16> to vector<1x1x32xbf16>
    %228 = vector.broadcast %227 : vector<1x1x32xbf16> to vector<16x18x32xbf16>
    %229 = arith.mulf %175, %228 : vector<16x18x32xbf16>
    %230 = arith.addf %224, %229 : vector<16x18x32xbf16>
    %231 = arith.extf %230 : vector<16x18x32xbf16> to vector<16x18x32xf32>
    %232 = vector.extract_strided_slice %195 {offsets = [0, 0, 0], sizes = [16, 16, 32], strides = [1, 1, 1]} : vector<16x18x32xf32> to vector<16x16x32xf32>
    %233 = vector.extract_strided_slice %213 {offsets = [0, 1, 0], sizes = [16, 16, 32], strides = [1, 1, 1]} : vector<16x18x32xf32> to vector<16x16x32xf32>
    %234 = arith.addf %232, %233 : vector<16x16x32xf32>
    %235 = vector.extract_strided_slice %231 {offsets = [0, 2, 0], sizes = [16, 16, 32], strides = [1, 1, 1]} : vector<16x18x32xf32> to vector<16x16x32xf32>
    %236 = arith.addf %234, %235 : vector<16x16x32xf32>
    %237 = vector.shape_cast %236 : vector<16x16x32xf32> to vector<256x32xf32>
    %238 = arith.truncf %237 : vector<256x32xf32> to vector<256x32xbf16>
    %c2_62 = arith.constant 2 : index
    %c0_63 = arith.constant 0 : index
    %c0_64 = arith.constant 0 : index
    %239 = vector.load %arg3[%c2_62, %c0_63, %c0_64] : memref<3x32x32xbf16, #tpu.memory_space<vmem>>, vector<1x32x32xbf16>
    %240 = vector.shape_cast %239 : vector<1x32x32xbf16> to vector<32x32xbf16>
    %cst_65 = arith.constant dense<0.000000e+00> : vector<256x32xf32>
    %241 = tpu.matmul %238, %240, %cst_65 {dimension_numbers = #tpu.dot_dimension_numbers<[1], [0], [0], [1], [0, 0, 1, 1], [], []>} : vector<256x32xbf16>, vector<32x32xbf16>, vector<256x32xf32> -> vector<256x32xf32>
    %c2_66 = arith.constant 2 : index
    %c0_67 = arith.constant 0 : index
    %c0_68 = arith.constant 0 : index
    %242 = vector.load %arg4[%c2_66, %c0_67, %c0_68] : memref<3x1x32xf32, #tpu.memory_space<vmem>>, vector<1x1x32xf32>
    %243 = vector.shape_cast %242 : vector<1x1x32xf32> to vector<1x32xf32>
    %244 = vector.broadcast %243 : vector<1x32xf32> to vector<256x32xf32>
    %245 = arith.addf %241, %244 : vector<256x32xf32>
    %246 = vector.shape_cast %245 : vector<256x32xf32> to vector<16x16x32xf32>
    %c0_69 = arith.constant 0 : index
    %c0_70 = arith.constant 0 : index
    %c0_71 = arith.constant 0 : index
    %c0_72 = arith.constant 0 : index
    %247 = vector.load %arg1[%c0_69, %c0_70, %c0_71, %c0_72] : memref<1x16x16x32xf32, #tpu.memory_space<vmem>>, vector<1x16x16x32xf32>
    %248 = vector.shape_cast %247 : vector<1x16x16x32xf32> to vector<16x16x32xf32>
    %249 = arith.addf %246, %248 : vector<16x16x32xf32>
    %c0_73 = arith.constant 0 : index
    %c0_74 = arith.constant 0 : index
    %c0_75 = arith.constant 0 : index
    %c0_76 = arith.constant 0 : index
    %250 = vector.load %arg5[%c0_73, %c0_74, %c0_75, %c0_76] : memref<1x16x16x32xf32, #tpu.memory_space<vmem>>, vector<1x16x16x32xf32>
    %251 = vector.shape_cast %250 : vector<1x16x16x32xf32> to vector<16x16x32xf32>
    %252 = vector.shape_cast %249 : vector<16x16x32xf32> to vector<1x16x16x32xf32>
    tpu.vector_store %arg5[%c0_73, %c0_74, %c0_75, %c0_76], %252 {strides = array<i32>} : memref<1x16x16x32xf32, #tpu.memory_space<vmem>>, vector<1x16x16x32xf32>,
    return
  }
  func.func @transform_0(%arg0: i32) -> (i32, i32, i32, i32) {
    %c0_i32 = arith.constant 0 : i32
    %c0_i32_0 = arith.constant 0 : i32
    %c0_i32_1 = arith.constant 0 : i32
    %c0_i32_2 = arith.constant 0 : i32
    return %arg0, %c0_i32, %c0_i32_0, %c0_i32_1 : i32, i32, i32, i32
  }
  func.func @transform_1(%arg0: i32) -> (i32, i32, i32, i32) {
    %c0_i32 = arith.constant 0 : i32
    %c0_i32_0 = arith.constant 0 : i32
    %c0_i32_1 = arith.constant 0 : i32
    %c0_i32_2 = arith.constant 0 : i32
    %c0_i32_3 = arith.constant 0 : i32
    return %c0_i32, %c0_i32_0, %c0_i32_1, %c0_i32_2 : i32, i32, i32, i32
  }
  func.func @transform_2(%arg0: i32) -> (i32, i32, i32) {
    %c0_i32 = arith.constant 0 : i32
    %c0_i32_0 = arith.constant 0 : i32
    %c0_i32_1 = arith.constant 0 : i32
    %c0_i32_2 = arith.constant 0 : i32
    return %c0_i32, %c0_i32_0, %c0_i32_1 : i32, i32, i32
  }
  func.func @transform_3(%arg0: i32) -> (i32, i32, i32) {
    %c0_i32 = arith.constant 0 : i32
    %c0_i32_0 = arith.constant 0 : i32
    %c0_i32_1 = arith.constant 0 : i32
    %c0_i32_2 = arith.constant 0 : i32
    return %c0_i32, %c0_i32_0, %c0_i32_1 : i32, i32, i32
  }
  func.func @transform_4(%arg0: i32) -> (i32, i32, i32, i32) {
    %c0_i32 = arith.constant 0 : i32
    %c0_i32_0 = arith.constant 0 : i32
    %c0_i32_1 = arith.constant 0 : i32
    %c0_i32_2 = arith.constant 0 : i32
    return %arg0, %c0_i32, %c0_i32_0, %c0_i32_1 : i32, i32, i32, i32
  }
}

</mosaic_0001>

<bundles_post_ra>
// kernel: tpu_custom_call.1
= control target key start
LH: loop header
LB: loop body
LE: loop exit
PB: predicated region body
PF: predicated region fallthrough
CT: control target
= control target key end

     0   :  { %9 = vsyncpa [#allocation4], 0  ;;  %s7997_s0 = inlined_call_operand.hbm [shape: f32[2,16,16,32], index: 0, kind: input, shape index: {}]   ;;  %s7998_s1 = inlined_call_operand.vmem [shape: bf16[3,9,1,32], index: 1, kind: input, shape index: {}]   ;;  %s7999_s2 = inlined_call_operand.vmem [shape: bf16[3,32,32], index: 2, kind: input, shape index: {}]   ;;  %s8000_s3 = inlined_call_operand.hbm [shape: f32[3,1,32], index: 3, kind: input, shape index: {}]   ;;  %s8001_s4 = inlined_call_operand.hbm [shape: f32[2,16,16,32], index: 4, kind: output, shape index: {}]  }
   0x1   :  { %11 = vsyncpa [#allocation4 + $0x1], 0 }
   0x2   :  { %12 = vsyncpa [#allocation7], 0 }
   0x3   :  { %13 = vsyncpa [#allocation5], 0 }
   0x4   :  { %15 = vsyncpa [#allocation5 + $0x1], 0  ;;  %s5164_s15 = smov 0   ;;  %s5166_s16 = smov 0  }
   0x5   :  { %s5168_s17 = smov 0   ;;  %s5170_s18 = smov 0  }
   0x6 LB: > { %s5185_s19 = sadd.s32 4294967295, %s5127_s18   ;;  %s4666_s20 = sadd.s32 4294967294, %s5127_s18   ;;  %s5127_s18 = sphi %s5170_s18, %s8070_s18   ;;  %s5123_s17 = sphi %s5168_s17, %s8069_s17   ;;  %s5119_s16 = sphi %s5166_s16, %s8068_s16   ;;  %s5115_s15 = sphi %s5164_s15, %s8067_s15  }
   0x7   : > { %p41_p0 = scmp.ne.s32.totalorder %s5119_s16, %s5115_s15  ;;  %p8002_p1 = scmp.eq.s32.totalorder %s5185_s19, 0 }
   0x8   : > { %p128_p2 = scmp.eq.s32.totalorder %s5185_s19, 1  ;;  %p134_p3 = scmp.eq.s32.totalorder %s4666_s20, 1 }
   0x9   : > { %p5194_p4 = por %p8002_p1, %p41_p0  ;;  %p4667_p5 = scmp.ge.s32.totalorder %s5127_s18, 1 }
   0xa   : > { %p5199_p6 = por %p134_p3, %p41_p0  ;;  %p141_p7 = scmp.lt.s32.totalorder %s5127_s18, 3 }
   0xb   : > { %s8014_s21 = scalar_select %p5194_p4, 1, 0 }
   0xc   : > { %s8015_s22 = scalar_select %p5199_p6, 1, 0 }
   0xd   : > { %p5204_p8 = pnand %p4667_p5, %p141_p7  ;;  %s5129_s24 = smov [#allocation6]  }
   0xe   : > { %s159_s25 = sshll.u32 %s5129_s24, 4  ;;  %s5218_s27 = sadd.s32 1, %s5127_s18   ;;  %s160_s25 = int_to_ptr.vmem [resolvable:$true] %s159_s25 }
   0xf   : > { %s8016_s23 = scalar_select %p5204_p8, 1, 0 }
  0x10   : > { %p4941_p9 = pneg %p5204_p8  ;;  %s28_s28 = sadd.s32 1, %s5123_s17 }
  0x11   : > { %s25_s29 = ssub.s32 %s5127_s18, %s5218_s27  ;;  %s5016_s30 = scalar_lea.vmem %s160_s25, 48 }
  0x12   : > { %p5213_p11 = pnand %p4941_p9, %p8002_p1  ;;  %p5017_p13 = scmp.ne.s32.totalorder %s160_s25, %s5016_s30 }
  0x13   : > { %s5023_s5 = scalar_lea.vmem %s160_s25, 64  ;;  %p5024_p5 = scmp.lt.s32.totalorder %s160_s25, %s160_s25 }
  0x14   : > { %p5007_p12 = pneg %p5213_p11  ;;  %p5025_p7 = scmp.lt.s32.totalorder %s5023_s5, %s5016_s30 }
  0x16   : > { %p5019_p0 = pnand %p5017_p13, %p5007_p12  ;;  %p5026_p10 = por %p5025_p7, %p5024_p5 }
  0x18   : > { %p5020_p3 = pneg %p5019_p0 }
  0x1a   : > { %p5027_p9 = pnand %p5026_p10, %p5020_p3 }
  0x1c   : > { %5030 = shalt.err (!%p5027_p9)
}
  0x1d   : > { %s5130_s6 = smov 16   ;;  %s5131_s7 = smov 1  }
  0x1e   : > { %4944 = dma.hbm_to_vmem [thread:$0]  (!%p5213_p11), %s8000_s3, 48, %s160_s25, [#allocation7], %s5130_s6, %s5130_s6, %s5131_s7  }
  0x1f   : > { %p26_p12 = scmp.eq.s32.totalorder %s25_s29, 0  ;;  %p35_p13 = scmp.ne.s32.totalorder %s5123_s17, %s5119_s16 }
  0x20   : > { %p36_p10 = scmp.eq.s32.totalorder %s5127_s18, 0  ;;  %p4954_p0 = scmp.lt.s32.totalorder %s5127_s18, 2 }
  0x21   : > { %s5235_s10 = scalar_select %p26_p12, %s5123_s17, %s28_s28  }
  0x22   : > { %p37_p3 = por %p36_p10, %p35_p13  ;;  %p5239_p5 = por %p128_p2, %p35_p13 }
  0x23   : > { %s173_s12 = sand.u32 1, %s5123_s17   ;;  %s4765_s13 = sshll.u32 %s5127_s18, 12 }
  0x24   : > { %s8018_s11 = scalar_select %p5239_p5, 1, 0 }
  0x25   : > { %s4670_s14 = sshll.u32 %s173_s12, 8  ;;  %s5248_s26 = scalar_lea.hbm %s7997_s0, %s4765_s13 }
  0x26   : > { %s177_s25 = scalar_lea.vmem [#allocation3], %s4670_s14  ;;  %p5250_p11 = pnand %p4954_p0, %p37_p3 }
  0x27   : > { %s184_s28 = sshll.u32 %s177_s25, 4  ;;  %s5256_s30 = scalar_lea.sflag [#allocation4], %s173_s12  ;;  %s5254_s28 = int_to_ptr.vmem [resolvable:$true] %s184_s28 }
  0x28   : > { %s5031_s5 = scalar_lea.hbm %s5248_s26, 4096  ;;  %p5033_p7 = pneg %p5250_p11 }
  0x29   : > { %p5032_p2 = scmp.ne.s32.totalorder %s5248_s26, %s5031_s5  ;;  %s5036_s8 = scalar_lea.hbm %s7997_s0, 8192 }
  0x2a   : > { %p5037_p13 = scmp.lt.s32.totalorder %s5248_s26, %s7997_s0  ;;  %p5038_p10 = scmp.lt.s32.totalorder %s5036_s8, %s5031_s5 }
  0x2b   : > { %p5034_p9 = pnand %p5033_p7, %p5032_p2 }
  0x2c   : > { %p5039_p0 = por %p5038_p10, %p5037_p13 }
  0x2d   : > { %p5035_p12 = pneg %p5034_p9 }
  0x2f   : > { %p5040_p3 = pnand %p5039_p0, %p5035_p12 }
  0x31   : > { %5043 = shalt.err (!%p5040_p3)
}
  0x32   : > { %s5044_s12 = scalar_lea.vmem %s5254_s28, 4096  ;;  %s5132_s14 = smov [#allocation3]  }
  0x33   : > { %p5045_p1 = scmp.ne.s32.totalorder %s5254_s28, %s5044_s12  ;;  %s5049_s20 = sshll.u32 %s5132_s14, 4  ;;  %s5050_s20 = int_to_ptr.vmem [resolvable:$false] %s5049_s20 }
  0x34   : > { %s5051_s24 = scalar_lea.vmem %s5050_s20, 8192  ;;  %p5052_p9 = scmp.lt.s32.totalorder %s5254_s28, %s5050_s20 }
  0x35   : > { %p5047_p6 = pnand %p5045_p1, %p5033_p7  ;;  %p5053_p5 = scmp.lt.s32.totalorder %s5051_s24, %s5044_s12 }
  0x37   : > { %p5048_p2 = pneg %p5047_p6  ;;  %p5054_p4 = por %p5053_p5, %p5052_p9 }
  0x39   : > { %p5055_p8 = pnand %p5054_p4, %p5048_p2 }
  0x3b   : > { %5058 = shalt.err (!%p5055_p8)
}
  0x3c   : > { %s5133_s25 = smov 128   ;;  %s5134_s5 = smov 8  }
  0x3d   : > { %4948 = dma.hbm_to_vmem [thread:$0]  (!%p5250_p11), %s5248_s26, 4096, %s5254_s28, %s5256_s30, %s5133_s25, %s5133_s25, %s5134_s5  }
  0x3e   : > { %p8020_p1 = scmp.ne.s32.totalorder %s8016_s23, 0 }
  0x40   : > { %196 = sbr.rel (%p8020_p1) target bundleno = 1099 (0x44b), region = 36 }
  0x45   : > { %s5280_s6 = sand.u32 1, %s5119_s16   ;;  %p8021_p4 = scmp.ne.s32.totalorder %s8014_s21, 0 }
  0x46   : > { %s4674_s7 = sshll.u32 %s5280_s6, 8  ;;  %s199_s8 = scalar_lea.sflag [#allocation4], %s5280_s6 }
  0x47   : > { %s5286_s9 = scalar_lea.vmem [#allocation3], %s4674_s7 }
  0x48   : > { %5102 = dma.done.wait (%p8021_p4), %s199_s8, 4096  }
  0x49   : > { %5104 = vsyncadd (%p8021_p4), %s199_s8, 4294963200  ;;  %p8022_p6 = scmp.eq.s32.totalorder %s5185_s19, 0 }
  0x4b   : > { %5106 = dma.done.wait (%p8022_p6), [#allocation7], 48   ;;  %p8023_p8 = pmov %p8022_p6 }
  0x4c   : > { %vm232_vm0 = vcmask 261120   ;;  %vm235_vm1 = vcmask 254976   ;;  %vm242_vm2 = vcmask 253952   ;;  %v5135_v0 = vmov 0.0   ;;  %v4997_v2 = vld [vmem:[%s7999_s2 + $0x8] sm:$0xff]   ;;  %v4998_v4 = vld [vmem:[%s7999_s2] sm:$0xff]  }
  0x4d   : > { %5108 = vsyncadd (%p8023_p8), [#allocation7], 4294967248  ;;  %233 = vst.msk [vmem:[#allocation2] sm:$0xff] %vm232_vm0, %v5135_v0  ;;  %v473_v1 = vlaneseq  ;;  %4821 = vmatprep.subr.bf16.mxu0 %v4997_v2  ;;  %v275_v5 = vld [vmem:[%s5286_s9] sm:$0xff]  ;;  %v276_v6 = vld [vmem:[%s5286_s9 + $0x8] sm:$0xff]  ;;  %4929 = vmatprep.subr.bf16.mxu1 %v4997_v2  ;;  %vm1109_vm3 = vcmask 1046528  }
  0x4e   : > { %234 = vst.msk [vmem:[#allocation2 + $0x8] sm:$0xff] %vm232_vm0, %v5135_v0  ;;  %238 = vst.msk [vmem:[#allocation2 + $0x198] sm:$0xff] %vm232_vm0, %v5135_v0  ;;  %v277_v7 = vld [vmem:[%s5286_s9 + $0x10] sm:$0xff]  ;;  %4822 = vmatpush3.bf16.msra.mxu0 %v4997_v2  ;;  %v278_v8 = vld [vmem:[%s5286_s9 + $0x18] sm:$0xff]  ;;  %v307_v9 = vmax.f32 %v275_v5, 0.0  ;;  %v308_v10 = vmax.f32 %v276_v6, 0.0  ;;  %4931 = vmatpush3.bf16.msra.mxu1 %v4997_v2 }
  0x4f   : > { %236 = vst.msk [vmem:[#allocation2 + $0x10] sm:$0x3] %vm235_vm1, %v5135_v0  ;;  %240 = vst.msk [vmem:[#allocation2 + $0x1a8] sm:$0x3] %vm235_vm1, %v5135_v0  ;;  %v474_v3 = vshrl.u32 %v473_v1, 7  ;;  %v309_v11 = vmax.f32 %v277_v7, 0.0  ;;  %4823 = vmatprep.subr.bf16.mxu0 %v4998_v4  ;;  %4930 = vmatprep.subr.bf16.mxu1 %v4998_v4 }
  0x50   : > { %243 = vst.msk [vmem:[#allocation2 + $0x18] sm:$0x1] %vm242_vm2, %v5135_v0  ;;  %244 = vst.msk [vmem:[#allocation2 + $0x30] sm:$0x1] %vm242_vm2, %v5135_v0  ;;  %v310_v14 = vmax.f32 %v278_v8, 0.0  ;;  %v279_v39 = vld [vmem:[%s5286_s9 + $0x20] sm:$0xff] }
  0x51   : > { %259 = vst.msk [vmem:[#allocation2 + $0x29] sm:$0x1] %vm242_vm2, %v5135_v0  ;;  %260 = vst.msk [vmem:[#allocation2 + $0x41] sm:$0x1] %vm242_vm2, %v5135_v0  ;;  %v461_v16 = vld [vmem:[%s7998_s1] sm:$0x1] }
  0x52   : > { %239 = vst.msk [vmem:[#allocation2 + $0x1a0] sm:$0xff] %vm232_vm0, %v5135_v0  ;;  %v5345_v17 = vsub.s32 0, %v474_v3  ;;  %339 = vst.msk [vmem:[#allocation2 + $0x19] sm:$0xff] %vm232_vm0, %v307_v9  ;;  %v462_v19 = vld [vmem:[%s7998_s1 + $0x1] sm:$0x1]  ;;  %v471_v22 = vpack.i.b16 %v461_v16, %v461_v16  ;;  %4824 = vmatpush3.bf16.msra.mxu0 %v4998_v4  ;;  %v280_v40 = vld [vmem:[%s5286_s9 + $0x28] sm:$0xff]  ;;  %4932 = vmatpush3.bf16.msra.mxu1 %v4998_v4 }
  0x53   : > { %245 = vst.msk [vmem:[#allocation2 + $0x48] sm:$0x1] %vm242_vm2, %v5135_v0  ;;  %246 = vst.msk [vmem:[#allocation2 + $0x60] sm:$0x1] %vm242_vm2, %v5135_v0  ;;  %v463_v20 = vld [vmem:[%s7998_s1 + $0x2] sm:$0x1]  ;;  %v604_v28 = vpack.i.b16 %v462_v19, %v462_v19 }
  0x54   : > { %247 = vst.msk [vmem:[#allocation2 + $0x78] sm:$0x1] %vm242_vm2, %v5135_v0  ;;  %248 = vst.msk [vmem:[#allocation2 + $0x90] sm:$0x1] %vm242_vm2, %v5135_v0  ;;  %v371_v12 = vld [vmem:[#allocation2] sm:$0xff]  ;;  %v833_v29 = vpack.i.b16 %v463_v20, %v463_v20  ;;  %v5377_v31 = vrot.slane %v471_v22, %v5345_v17  ;;  %v282_v45 = vld [vmem:[%s5286_s9 + $0x38] sm:$0xff] }
  0x55   : > { %249 = vst.msk [vmem:[#allocation2 + $0xa8] sm:$0x1] %vm242_vm2, %v5135_v0  ;;  %250 = vst.msk [vmem:[#allocation2 + $0xc0] sm:$0x1] %vm242_vm2, %v5135_v0  ;;  %v372_v13 = vld [vmem:[#allocation2 + $0x8] sm:$0xff]  ;;  %v5383_v36 = vrot.slane %v604_v28, %v5345_v17  ;;  %v281_v44 = vld [vmem:[%s5286_s9 + $0x30] sm:$0xff] }
  0x56   : > { %251 = vst.msk [vmem:[#allocation2 + $0xd8] sm:$0x1] %vm242_vm2, %v5135_v0  ;;  %252 = vst.msk [vmem:[#allocation2 + $0xf0] sm:$0x1] %vm242_vm2, %v5135_v0  ;;  %v373_v15 = vld [vmem:[#allocation2 + $0x10] sm:$0x3]  ;;  %v5350_v18 = vpack.c.bf16 %v372_v13, %v371_v12  ;;  %v5386_v38 = vrot.slane %v833_v29, %v5345_v17 }
  0x57   : > { %253 = vst.msk [vmem:[#allocation2 + $0x108] sm:$0x1] %vm242_vm2, %v5135_v0  ;;  %254 = vst.msk [vmem:[#allocation2 + $0x120] sm:$0x1] %vm242_vm2, %v5135_v0  ;;  %v464_v21 = vld [vmem:[%s7998_s1 + $0x3] sm:$0x1]  ;;  %v5362_v23 = vpack.c.bf16 %v373_v15, %v373_v15 }
  0x58   : > { %255 = vst.msk [vmem:[#allocation2 + $0x138] sm:$0x1] %vm242_vm2, %v5135_v0  ;;  %256 = vst.msk [vmem:[#allocation2 + $0x150] sm:$0x1] %vm242_vm2, %v5135_v0  ;;  %v465_v24 = vld [vmem:[%s7998_s1 + $0x4] sm:$0x1]  ;;  %v494_v27 = vpack.i.b16 %v464_v21, %v464_v21  ;;  %v477_v41 = vmul.bf16 %v5377_v31, %v5350_v18  ;;  %v610_v46 = vmul.bf16 %v5383_v36, %v5350_v18 }
  0x59   : > { %257 = vst.msk [vmem:[#allocation2 + $0x168] sm:$0x1] %vm242_vm2, %v5135_v0  ;;  %258 = vst.msk [vmem:[#allocation2 + $0x180] sm:$0x1] %vm242_vm2, %v5135_v0  ;;  %v466_v25 = vld [vmem:[%s7998_s1 + $0x5] sm:$0x1]  ;;  %v643_v33 = vpack.i.b16 %v465_v24, %v465_v24  ;;  %v611_v47 = vmul.bf16 %v5383_v36, %v5362_v23  ;;  %v839_v60 = vmul.bf16 %v5386_v38, %v5350_v18 }
  0x5a   : > { %261 = vst.msk [vmem:[#allocation2 + $0x59] sm:$0x1] %vm242_vm2, %v5135_v0  ;;  %262 = vst.msk [vmem:[#allocation2 + $0x71] sm:$0x1] %vm242_vm2, %v5135_v0  ;;  %v467_v26 = vld [vmem:[%s7998_s1 + $0x6] sm:$0x1]  ;;  %v872_v34 = vpack.i.b16 %v466_v25, %v466_v25  ;;  %v5393_v42 = vrot.slane %v494_v27, %v5345_v17  ;;  %v840_v61 = vmul.bf16 %v5386_v38, %v5362_v23 }
  0x5b   : > { %263 = vst.msk [vmem:[#allocation2 + $0x89] sm:$0x1] %vm242_vm2, %v5135_v0  ;;  %264 = vst.msk [vmem:[#allocation2 + $0xa1] sm:$0x1] %vm242_vm2, %v5135_v0  ;;  %v468_v30 = vld [vmem:[%s7998_s1 + $0x7] sm:$0x1]  ;;  %v533_v32 = vpack.i.b16 %v467_v26, %v467_v26  ;;  %v5405_v48 = vrot.slane %v643_v33, %v5345_v17 }
  0x5c   : > { %265 = vst.msk [vmem:[#allocation2 + $0xb9] sm:$0x1] %vm242_vm2, %v5135_v0  ;;  %266 = vst.msk [vmem:[#allocation2 + $0xd1] sm:$0x1] %vm242_vm2, %v5135_v0  ;;  %v469_v35 = vld [vmem:[%s7998_s1 + $0x8] sm:$0x1]  ;;  %v714_v37 = vpack.i.b16 %v468_v30, %v468_v30  ;;  %v5408_v49 = vrot.slane %v872_v34, %v5345_v17 }
  0x5d   : > { %267 = vst.msk [vmem:[#allocation2 + $0xe9] sm:$0x1] %vm242_vm2, %v5135_v0  ;;  %268 = vst.msk [vmem:[#allocation2 + $0x101] sm:$0x1] %vm242_vm2, %v5135_v0  ;;  %v5396_v43 = vrot.slane %v533_v32, %v5345_v17  ;;  %v283_v50 = vld [vmem:[%s5286_s9 + $0x40] sm:$0xff]  ;;  %v943_v52 = vpack.i.b16 %v469_v35, %v469_v35  ;;  %v311_v53 = vmax.f32 %v279_v39, 0.0 }
  0x5e   : > { %269 = vst.msk [vmem:[#allocation2 + $0x119] sm:$0x1] %vm242_vm2, %v5135_v0  ;;  %270 = vst.msk [vmem:[#allocation2 + $0x131] sm:$0x1] %vm242_vm2, %v5135_v0  ;;  %v5412_v51 = vrot.slane %v714_v37, %v5345_v17  ;;  %v312_v54 = vmax.f32 %v280_v40, 0.0  ;;  %v284_v55 = vld [vmem:[%s5286_s9 + $0x48] sm:$0xff] }
  0x5f   : > { %271 = vst.msk [vmem:[#allocation2 + $0x149] sm:$0x1] %vm242_vm2, %v5135_v0  ;;  %272 = vst.msk [vmem:[#allocation2 + $0x161] sm:$0x1] %vm242_vm2, %v5135_v0  ;;  %v289_v56 = vld [vmem:[%s5286_s9 + $0x70] sm:$0xff]  ;;  %v374_v57 = vld [vmem:[#allocation2 + $0x18] sm:$0xff]  ;;  %v5425_v5 = vrot.slane %v943_v52, %v5345_v17 }
  0x60   : > { %273 = vst.msk [vmem:[#allocation2 + $0x179] sm:$0x1] %vm242_vm2, %v5135_v0  ;;  %274 = vst.msk [vmem:[#allocation2 + $0x191] sm:$0x1] %vm242_vm2, %v5135_v0  ;;  %v313_v62 = vmax.f32 %v281_v44, 0.0  ;;  %v314_v63 = vmax.f32 %v282_v45, 0.0 }
  0x61   : > { %8024 = vst [vmem:[#allocation12_spill] sm:$0xff] %v5345_v17  ;;  %340 = vst.msk [vmem:[#allocation2 + $0x21] sm:$0xff] %vm232_vm0, %v308_v10  ;;  %v315_v6 = vmax.f32 %v283_v50, 0.0  ;;  %v316_v9 = vmax.f32 %v284_v55, 0.0  ;;  %v321_v10 = vmax.f32 %v289_v56, 0.0  ;;  %vm1302_vm4 = vcmask 1045504  }
  0x62   : > { %341 = vst.msk [vmem:[#allocation2 + $0x31] sm:$0xff] %vm232_vm0, %v309_v11  ;;  %342 = vst.msk [vmem:[#allocation2 + $0x39] sm:$0xff] %vm232_vm0, %v310_v14  ;;  %s7818_s24 = scalar_lea.vmem [#allocation8], %s4674_s7  ;;  %s4766_s7 = sshll.u32 %s5185_s19, 12 }
  0x63   : > { %343 = vst.msk [vmem:[#allocation2 + $0x49] sm:$0xff] %vm232_vm0, %v311_v53  ;;  %344 = vst.msk [vmem:[#allocation2 + $0x51] sm:$0xff] %vm232_vm0, %v312_v54  ;;  %s4583_s25 = sshll.u32 %s7818_s24, 4  ;;  %s7948_s21 = scalar_lea.hbm %s8001_s4, %s4766_s7  ;;  %s7950_s25 = int_to_ptr.vmem [resolvable:$true] %s4583_s25 }
  0x64   : > { %345 = vst.msk [vmem:[#allocation2 + $0x61] sm:$0xff] %vm232_vm0, %v313_v62  ;;  %346 = vst.msk [vmem:[#allocation2 + $0x69] sm:$0xff] %vm232_vm0, %v314_v63  ;;  %s4570_s19 = scalar_lea.sflag [#allocation5], %s5280_s6  ;;  %p8064_p11 = scmp.ne.s32.totalorder %s8018_s11, 0 }
  0x65   : > { %347 = vst.msk [vmem:[#allocation2 + $0x79] sm:$0xff] %vm232_vm0, %v315_v6  ;;  %348 = vst.msk [vmem:[#allocation2 + $0x81] sm:$0xff] %vm232_vm0, %v316_v9  ;;  %s5136_s23 = smov [#allocation8]  }
  0x66   : > { %353 = vst.msk [vmem:[#allocation2 + $0xc1] sm:$0xff] %vm232_vm0, %v321_v10  ;;  %s5063_s26 = sshll.u32 %s5136_s23, 4  ;;  %s5064_s26 = int_to_ptr.vmem [resolvable:$false] %s5063_s26 }
  0x67   : > { %s5065_s28 = scalar_lea.vmem %s5064_s26, 8192  ;;  %p5066_p13 = scmp.lt.s32.totalorder %s7950_s25, %s5064_s26 }
  0x68   : > { %v375_v58 = vld [vmem:[#allocation2 + $0x20] sm:$0xff]  ;;  %v376_v59 = vld [vmem:[#allocation2 + $0x28] sm:$0x3] }
  0x69   : > { %v377_v0 = vld [vmem:[#allocation2 + $0x30] sm:$0xff]  ;;  %v378_v1 = vld [vmem:[#allocation2 + $0x38] sm:$0xff]  ;;  %v379_v2 = vld [vmem:[#allocation2 + $0x40] sm:$0x3]  ;;  %v5420_v3 = vpack.c.bf16 %v375_v58, %v374_v57  ;;  %v5422_v4 = vpack.c.bf16 %v376_v59, %v376_v59 }
  0x6a   : > { %v5429_v7 = vpack.c.bf16 %v378_v1, %v377_v0  ;;  %v5431_v8 = vpack.c.bf16 %v379_v2, %v379_v2  ;;  %v380_v35 = vld [vmem:[#allocation2 + $0x48] sm:$0xff]  ;;  %v381_v37 = vld [vmem:[#allocation2 + $0x50] sm:$0xff]  ;;  %v382_v39 = vld [vmem:[#allocation2 + $0x58] sm:$0x3] }
  0x6b   : > { %v500_v11 = vmul.bf16 %v5393_v42, %v5420_v3  ;;  %v649_v12 = vmul.bf16 %v5405_v48, %v5420_v3  ;;  %v650_v13 = vmul.bf16 %v5405_v48, %v5422_v4  ;;  %v878_v14 = vmul.bf16 %v5408_v49, %v5420_v3 }
  0x6c   : > { %v539_v15 = vmul.bf16 %v5396_v43, %v5429_v7  ;;  %v720_v16 = vmul.bf16 %v5412_v51, %v5429_v7  ;;  %v721_v18 = vmul.bf16 %v5412_v51, %v5431_v8  ;;  %v879_v19 = vmul.bf16 %v5408_v49, %v5422_v4 }
  0x6d   : > { %v516_v20 = vadd.bf16 %v500_v11, %v477_v41  ;;  %v681_v21 = vadd.bf16 %v649_v12, %v610_v46  ;;  %v682_v22 = vadd.bf16 %v650_v13, %v611_v47  ;;  %v910_v23 = vadd.bf16 %v878_v14, %v839_v60 }
  0x6e   : > { %v911_v24 = vadd.bf16 %v879_v19, %v840_v61  ;;  %v949_v25 = vmul.bf16 %v5425_v5, %v5429_v7  ;;  %v950_v26 = vmul.bf16 %v5425_v5, %v5431_v8  ;;  %v478_v27 = vmul.bf16 %v5377_v31, %v5420_v3 }
  0x6f   : > { %v555_v28 = vadd.bf16 %v539_v15, %v516_v20  ;;  %v752_v29 = vadd.bf16 %v720_v16, %v681_v21  ;;  %v753_v30 = vadd.bf16 %v721_v18, %v682_v22  ;;  %v501_v32 = vmul.bf16 %v5393_v42, %v5429_v7 }
  0x70   : > { %v981_v33 = vadd.bf16 %v949_v25, %v910_v23  ;;  %v982_v34 = vadd.bf16 %v950_v26, %v911_v24  ;;  %v612_v40 = vmul.bf16 %v5383_v36, %v5420_v3  ;;  %v613_v41 = vmul.bf16 %v5383_v36, %v5422_v4 }
  0x71   : > { %v571_v44 = vunpack.c.l.bf16 %v555_v28  ;;  %v572_v45 = vunpack.c.h.bf16 %v555_v28  ;;  %v784_v46 = vunpack.c.l.bf16 %v752_v29  ;;  %v785_v47 = vunpack.c.h.bf16 %v752_v29  ;;  %v383_v29 = vld [vmem:[#allocation2 + $0x60] sm:$0xff] }
  0x72   : > { %v786_v50 = vunpack.c.l.bf16 %v753_v30  ;;  %v1013_v52 = vunpack.c.l.bf16 %v981_v33  ;;  %v1014_v53 = vunpack.c.h.bf16 %v981_v33  ;;  %v1015_v54 = vunpack.c.l.bf16 %v982_v34  ;;  %v384_v30 = vld [vmem:[#allocation2 + $0x68] sm:$0xff] }
  0x73   : > { %v1110_v55 = vrot.slane %v784_v46, 1  ;;  %v1111_v56 = vrot.slane %v785_v47, 1  ;;  %v5466_v57 = vpack.c.bf16 %v381_v37, %v380_v35  ;;  %v5468_v58 = vpack.c.bf16 %v382_v39, %v382_v39 }
  0x74   : > { %v1113_v59 = vrot.slane %v786_v50, 1  ;;  %v1303_v60 = vrot.slane %v1013_v52, 2  ;;  %v1304_v61 = vrot.slane %v1014_v53, 2  ;;  %v1306_v62 = vrot.slane %v1015_v54, 2 }
  0x75   : > { %v1112_v63 = vsel %vm1109_vm3, %v1110_v55, %v1111_v56  ;;  %v517_v0 = vadd.bf16 %v501_v32, %v478_v27  ;;  %v540_v1 = vmul.bf16 %v5396_v43, %v5466_v57  ;;  %v651_v2 = vmul.bf16 %v5405_v48, %v5429_v7  ;;  %v385_v32 = vld [vmem:[#allocation2 + $0x70] sm:$0x3] }
  0x76   : > { %v1114_v6 = vsel %vm1109_vm3, %v1111_v56, %v1113_v59  ;;  %v1222_v9 = vadd.f32 %v1112_v63, %v571_v44  ;;  %v1305_v10 = vsel %vm1302_vm4, %v1303_v60, %v1304_v61  ;;  %v1307_v11 = vsel %vm1302_vm4, %v1304_v61, %v1306_v62 }
  0x77   : > { %v1223_v12 = vadd.f32 %v1114_v6, %v572_v45  ;;  %v556_v13 = vadd.bf16 %v540_v1, %v517_v0  ;;  %v652_v14 = vmul.bf16 %v5405_v48, %v5431_v8  ;;  %v683_v15 = vadd.bf16 %v651_v2, %v612_v40 }
  0x78   : > { %v1415_v16 = vadd.f32 %v1305_v10, %v1222_v9  ;;  %v722_v18 = vmul.bf16 %v5412_v51, %v5466_v57  ;;  %v723_v19 = vmul.bf16 %v5412_v51, %v5468_v58  ;;  %v841_v20 = vmul.bf16 %v5386_v38, %v5420_v3 }
  0x79   : > { %v1416_v21 = vadd.f32 %v1307_v11, %v1223_v12  ;;  %v573_v22 = vunpack.c.l.bf16 %v556_v13  ;;  %v574_v23 = vunpack.c.h.bf16 %v556_v13  ;;  %v684_v24 = vadd.bf16 %v652_v14, %v613_v41 }
  0x7a   : > { %v754_v25 = vadd.bf16 %v722_v18, %v683_v15  ;;  %v842_v26 = vmul.bf16 %v5386_v38, %v5422_v4  ;;  %v880_v27 = vmul.bf16 %v5408_v49, %v5429_v7  ;;  %v881_v28 = vmul.bf16 %v5408_v49, %v5431_v8 }
  0x7b   : > { %v1447_v33 = vpack.c.bf16 %v1416_v21, %v1415_v16  ;;  %v755_v34 = vadd.bf16 %v723_v19, %v684_v24  ;;  %v951_v3 = vmul.bf16 %v5425_v5, %v5466_v57  ;;  %v952_v35 = vmul.bf16 %v5425_v5, %v5468_v58 }
  0x7c   : > { %v787_v37 = vunpack.c.l.bf16 %v754_v25  ;;  %v788_v39 = vunpack.c.h.bf16 %v754_v25  ;;  %v912_v4 = vadd.bf16 %v880_v27, %v841_v20  ;;  %v913_v40 = vadd.bf16 %v881_v28, %v842_v26  ;;  %v386_v26 = vld [vmem:[#allocation2 + $0x78] sm:$0xff]  ;;  %v387_v27 = vld [vmem:[#allocation2 + $0x80] sm:$0xff] }
  0x7d   : > { %4825 = vmatprep.mubr.msk.bf16.mxu0 %vm232_vm0, %v1447_v33  ;;  %v789_v41 = vunpack.c.l.bf16 %v755_v34  ;;  %v5497_v44 = vpack.c.bf16 %v384_v30, %v383_v29  ;;  %v5499_v45 = vpack.c.bf16 %v385_v32, %v385_v32  ;;  %v479_v46 = vmul.bf16 %v5377_v31, %v5429_v7  ;;  %v388_v33 = vld [vmem:[#allocation2 + $0x88] sm:$0x3] }
  0x7e   : > { %v983_v47 = vadd.bf16 %v951_v3, %v912_v4  ;;  %v984_v50 = vadd.bf16 %v952_v35, %v913_v40  ;;  %v1115_v52 = vrot.slane %v787_v37, 1  ;;  %v1116_v53 = vrot.slane %v788_v39, 1 }
  0x7f   : > { %v1118_v54 = vrot.slane %v789_v41, 1  ;;  %v502_v55 = vmul.bf16 %v5393_v42, %v5466_v57  ;;  %v541_v56 = vmul.bf16 %v5396_v43, %v5497_v44  ;;  %v614_v59 = vmul.bf16 %v5383_v36, %v5429_v7 }
  0x80   : > { %v1016_v60 = vunpack.c.l.bf16 %v983_v47  ;;  %v1017_v61 = vunpack.c.h.bf16 %v983_v47  ;;  %v1018_v62 = vunpack.c.l.bf16 %v984_v50  ;;  %v1117_v63 = vsel %vm1109_vm3, %v1115_v52, %v1116_v53 }
  0x81   : > { %v1119_v0 = vsel %vm1109_vm3, %v1116_v53, %v1118_v54  ;;  %v1224_v1 = vadd.f32 %v1117_v63, %v573_v22  ;;  %v518_v2 = vadd.bf16 %v502_v55, %v479_v46  ;;  %v615_v6 = vmul.bf16 %v5383_v36, %v5431_v8 }
  0x82   : > { %v1225_v9 = vadd.f32 %v1119_v0, %v574_v23  ;;  %v1308_v10 = vrot.slane %v1016_v60, 2  ;;  %v1309_v11 = vrot.slane %v1017_v61, 2  ;;  %v1311_v12 = vrot.slane %v1018_v62, 2 }
  0x83   : > { %v557_v13 = vadd.bf16 %v541_v56, %v518_v2  ;;  %v653_v14 = vmul.bf16 %v5405_v48, %v5466_v57  ;;  %v654_v15 = vmul.bf16 %v5405_v48, %v5468_v58  ;;  %v724_v16 = vmul.bf16 %v5412_v51, %v5497_v44 }
  0x84   : > { %v1310_v18 = vsel %vm1302_vm4, %v1308_v10, %v1309_v11  ;;  %v1312_v19 = vsel %vm1302_vm4, %v1309_v11, %v1311_v12  ;;  %v725_v20 = vmul.bf16 %v5412_v51, %v5499_v45  ;;  %v843_v21 = vmul.bf16 %v5386_v38, %v5429_v7 }
  0x85   : > { %v1417_v22 = vadd.f32 %v1310_v18, %v1224_v1  ;;  %v1418_v23 = vadd.f32 %v1312_v19, %v1225_v9  ;;  %v575_v24 = vunpack.c.l.bf16 %v557_v13  ;;  %v576_v25 = vunpack.c.h.bf16 %v557_v13 }
  0x86   : > { %v685_v28 = vadd.bf16 %v653_v14, %v614_v59  ;;  %v686_v29 = vadd.bf16 %v654_v15, %v615_v6  ;;  %v844_v30 = vmul.bf16 %v5386_v38, %v5431_v8  ;;  %v882_v32 = vmul.bf16 %v5408_v49, %v5466_v57 }
  0x87   : > { %v1448_v34 = vpack.c.bf16 %v1418_v23, %v1417_v22  ;;  %v883_v3 = vmul.bf16 %v5408_v49, %v5468_v58  ;;  %v953_v7 = vmul.bf16 %v5425_v5, %v5497_v44  ;;  %v954_v35 = vmul.bf16 %v5425_v5, %v5499_v45 }
  0x88   : > { %v756_v37 = vadd.bf16 %v724_v16, %v685_v28  ;;  %v757_v39 = vadd.bf16 %v725_v20, %v686_v29  ;;  %v914_v4 = vadd.bf16 %v882_v32, %v843_v21  ;;  %v5535_v40 = vpack.c.bf16 %v387_v27, %v386_v26 }
  0x89   : > { %4826 = vmatmul.mubr.msk.bf16.vlgmr.msra.gmra.mxu0 %vm232_vm0, %v1448_v34  ;;  %v915_v8 = vadd.bf16 %v883_v3, %v844_v30  ;;  %v5538_v41 = vpack.c.bf16 %v388_v33, %v388_v33  ;;  %v480_v46 = vmul.bf16 %v5377_v31, %v5466_v57  ;;  %v503_v47 = vmul.bf16 %v5393_v42, %v5497_v44 }
  0x8a   : > { %v790_v50 = vunpack.c.l.bf16 %v756_v37  ;;  %v791_v52 = vunpack.c.h.bf16 %v756_v37  ;;  %v792_v53 = vunpack.c.l.bf16 %v757_v39  ;;  %v985_v54 = vadd.bf16 %v953_v7, %v914_v4  ;;  %v290_v7 = vld [vmem:[%s5286_s9 + $0x78] sm:$0xff]  ;;  %v292_v37 = vld [vmem:[%s5286_s9 + $0x88] sm:$0xff] }
  0x8b   : > { %v986_v55 = vadd.bf16 %v954_v35, %v915_v8  ;;  %v519_v56 = vadd.bf16 %v503_v47, %v480_v46  ;;  %v542_v59 = vmul.bf16 %v5396_v43, %v5535_v40  ;;  %v616_v60 = vmul.bf16 %v5383_v36, %v5466_v57  ;;  %v291_v35 = vld [vmem:[%s5286_s9 + $0x80] sm:$0xff] }
  0x8c   : > { %v1019_v61 = vunpack.c.l.bf16 %v985_v54  ;;  %v1020_v62 = vunpack.c.h.bf16 %v985_v54  ;;  %v1120_v63 = vrot.slane %v790_v50, 1  ;;  %v1121_v0 = vrot.slane %v791_v52, 1  ;;  %v293_v52 = vld [vmem:[%s5286_s9 + $0x90] sm:$0xff] }
  0x8d   : > { %v1021_v1 = vunpack.c.l.bf16 %v986_v55  ;;  %v1123_v2 = vrot.slane %v792_v53, 1  ;;  %v5548_v6 = vadd.bf16 %v542_v59, %v519_v56  ;;  %v617_v9 = vmul.bf16 %v5383_v36, %v5468_v58  ;;  %v294_v53 = vld [vmem:[%s5286_s9 + $0x98] sm:$0xff]  ;;  %v285_v54 = vld [vmem:[%s5286_s9 + $0x50] sm:$0xff] }
  0x8e   : > { %v1122_v10 = vsel %vm1109_vm3, %v1120_v63, %v1121_v0  ;;  %v1313_v11 = vrot.slane %v1019_v61, 2  ;;  %v1314_v12 = vrot.slane %v1020_v62, 2  ;;  %v655_v13 = vmul.bf16 %v5405_v48, %v5497_v44 }
  0x8f   : > { %v1124_v14 = vsel %vm1109_vm3, %v1121_v0, %v1123_v2  ;;  %v1226_v15 = vadd.f32 %v1122_v10, %v575_v24  ;;  %v1316_v16 = vrot.slane %v1021_v1, 2  ;;  %v577_v18 = vunpack.c.l.bf16 %v5548_v6  ;;  %v286_v1 = vld [vmem:[%s5286_s9 + $0x58] sm:$0xff] }
  0x90   : > { %v1227_v19 = vadd.f32 %v1124_v14, %v576_v25  ;;  %v1315_v20 = vsel %vm1302_vm4, %v1313_v11, %v1314_v12  ;;  %v578_v21 = vunpack.c.h.bf16 %v5548_v6  ;;  %v656_v22 = vmul.bf16 %v5405_v48, %v5499_v45 }
  0x91   : > { %v1317_v23 = vsel %vm1302_vm4, %v1314_v12, %v1316_v16  ;;  %v1419_v26 = vadd.f32 %v1315_v20, %v1226_v15  ;;  %v687_v27 = vadd.bf16 %v655_v13, %v616_v60  ;;  %v726_v24 = vmul.bf16 %v5412_v51, %v5535_v40 }
  0x92   : > { %v1420_v28 = vadd.f32 %v1317_v23, %v1227_v19  ;;  %v688_v29 = vadd.bf16 %v656_v22, %v617_v9  ;;  %v727_v25 = vmul.bf16 %v5412_v51, %v5538_v41  ;;  %v845_v30 = vmul.bf16 %v5386_v38, %v5466_v57 }
  0x93   : > { %v758_v32 = vadd.bf16 %v726_v24, %v687_v27  ;;  %v846_v33 = vmul.bf16 %v5386_v38, %v5468_v58  ;;  %v884_v34 = vmul.bf16 %v5408_v49, %v5497_v44  ;;  %v885_v3 = vmul.bf16 %v5408_v49, %v5499_v45 }
  0x94   : > { %v1449_v39 = vpack.c.bf16 %v1420_v28, %v1419_v26  ;;  %v759_v4 = vadd.bf16 %v727_v25, %v688_v29  ;;  %v955_v57 = vmul.bf16 %v5425_v5, %v5535_v40  ;;  %v956_v8 = vmul.bf16 %v5425_v5, %v5538_v41 }
  0x95   : > { %v793_v46 = vunpack.c.l.bf16 %v758_v32  ;;  %v794_v58 = vunpack.c.h.bf16 %v758_v32  ;;  %v916_v47 = vadd.bf16 %v884_v34, %v845_v30  ;;  %v917_v50 = vadd.bf16 %v885_v3, %v846_v33  ;;  %v395_v30 = vld [vmem:[#allocation2 + $0xc0] sm:$0xff]  ;;  %v295_v34 = vld [vmem:[%s5286_s9 + $0xa0] sm:$0xff] }
  0x96   : > { %4829 = vmatprep.mubr.msk.bf16.mxu0 %vm232_vm0, %v1449_v39  ;;  %v795_v55 = vunpack.c.l.bf16 %v759_v4  ;;  %v322_v56 = vmax.f32 %v290_v7, 0.0  ;;  %v323_v59 = vmax.f32 %v291_v35, 0.0  ;;  %v324_v60 = vmax.f32 %v292_v37, 0.0 }
  0x97   : > { %v987_v61 = vadd.bf16 %v955_v57, %v916_v47  ;;  %v988_v62 = vadd.bf16 %v956_v8, %v917_v50  ;;  %v1125_v63 = vrot.slane %v793_v46, 1  ;;  %v1126_v0 = vrot.slane %v794_v58, 1 }
  0x98   : > { %v1128_v2 = vrot.slane %v795_v55, 1  ;;  %v325_v6 = vmax.f32 %v293_v52, 0.0  ;;  %v326_v9 = vmax.f32 %v294_v53, 0.0  ;;  %354 = vst.msk [vmem:[#allocation2 + $0xc9] sm:$0xff] %vm232_vm0, %v322_v56  ;;  %355 = vst.msk [vmem:[#allocation2 + $0xd9] sm:$0xff] %vm232_vm0, %v323_v59  ;;  %v317_v10 = vmax.f32 %v285_v54, 0.0 }
  0x99   : > { %356 = vst.msk [vmem:[#allocation2 + $0xe1] sm:$0xff] %vm232_vm0, %v324_v60  ;;  %v1022_v11 = vunpack.c.l.bf16 %v987_v61  ;;  %v1023_v12 = vunpack.c.h.bf16 %v987_v61  ;;  %v1024_v13 = vunpack.c.l.bf16 %v988_v62  ;;  %v1127_v14 = vsel %vm1109_vm3, %v1125_v63, %v1126_v0 }
  0x9a   : > { %v1129_v15 = vsel %vm1109_vm3, %v1126_v0, %v1128_v2  ;;  %v1228_v16 = vadd.f32 %v1127_v14, %v577_v18  ;;  %357 = vst.msk [vmem:[#allocation2 + $0xf1] sm:$0xff] %vm232_vm0, %v325_v6  ;;  %358 = vst.msk [vmem:[#allocation2 + $0xf9] sm:$0xff] %vm232_vm0, %v326_v9  ;;  %v318_v19 = vmax.f32 %v286_v1, 0.0  ;;  %v481_v20 = vmul.bf16 %v5377_v31, %v5497_v44 }
  0x9b   : > { %349 = vst.msk [vmem:[#allocation2 + $0x91] sm:$0xff] %vm232_vm0, %v317_v10  ;;  %v1229_v22 = vadd.f32 %v1129_v15, %v578_v21  ;;  %v1318_v23 = vrot.slane %v1022_v11, 2  ;;  %v1319_v26 = vrot.slane %v1023_v12, 2  ;;  %v1321_v27 = vrot.slane %v1024_v13, 2 }
  0x9c   : > { %350 = vst.msk [vmem:[#allocation2 + $0x99] sm:$0xff] %vm232_vm0, %v318_v19  ;;  %v504_v18 = vmul.bf16 %v5393_v42, %v5535_v40  ;;  %v618_v24 = vmul.bf16 %v5383_v36, %v5497_v44  ;;  %v619_v28 = vmul.bf16 %v5383_v36, %v5499_v45  ;;  %v657_v29 = vmul.bf16 %v5405_v48, %v5535_v40 }
  0x9d   : > { %v1320_v25 = vsel %vm1302_vm4, %v1318_v23, %v1319_v26  ;;  %v1322_v21 = vsel %vm1302_vm4, %v1319_v26, %v1321_v27  ;;  %v658_v32 = vmul.bf16 %v5405_v48, %v5538_v41  ;;  %v847_v33 = vmul.bf16 %v5386_v38, %v5497_v44 }
  0x9e   : > { %v1421_v3 = vadd.f32 %v1320_v25, %v1228_v16  ;;  %v1422_v7 = vadd.f32 %v1322_v21, %v1229_v22  ;;  %v5612_v35 = vadd.bf16 %v504_v18, %v481_v20  ;;  %v5614_v37 = vadd.bf16 %v657_v29, %v618_v24  ;;  %v296_v24 = vld [vmem:[%s5286_s9 + $0xa8] sm:$0xff] }
  0x9f   : > { %v396_v39 = vld [vmem:[#allocation2 + $0xc8] sm:$0xff]  ;;  %v397_v4 = vld [vmem:[#allocation2 + $0xd0] sm:$0x3]  ;;  %v398_v57 = vld [vmem:[#allocation2 + $0xd8] sm:$0xff]  ;;  %v5616_v8 = vadd.bf16 %v658_v32, %v619_v28  ;;  %v848_v46 = vmul.bf16 %v5386_v38, %v5499_v45  ;;  %v886_v58 = vmul.bf16 %v5408_v49, %v5535_v40  ;;  %v887_v44 = vmul.bf16 %v5408_v49, %v5538_v41 }
  0xa0   : > { %v1450_v47 = vpack.c.bf16 %v1422_v7, %v1421_v3  ;;  %v399_v50 = vld [vmem:[#allocation2 + $0xe0] sm:$0xff]  ;;  %v400_v52 = vld [vmem:[#allocation2 + $0xe8] sm:$0x3]  ;;  %v5624_v53 = vpack.c.bf16 %v396_v39, %v395_v30  ;;  %v5626_v54 = vpack.c.bf16 %v397_v4, %v397_v4  ;;  %v327_v55 = vmax.f32 %v295_v34, 0.0 }
  0xa1   : > { %v401_v56 = vld [vmem:[#allocation2 + $0xf0] sm:$0xff]  ;;  %v402_v59 = vld [vmem:[#allocation2 + $0xf8] sm:$0xff]  ;;  %v403_v60 = vld [vmem:[#allocation2 + $0x100] sm:$0x3]  ;;  %v5628_v61 = vpack.c.bf16 %v399_v50, %v398_v57  ;;  %v5630_v45 = vpack.c.bf16 %v400_v52, %v400_v52  ;;  %v5632_v62 = vadd.bf16 %v886_v58, %v847_v33  ;;  %v5634_v63 = vadd.bf16 %v887_v44, %v848_v46 }
  0xa2   : > { %4830 = vmatmul.mubr.msk.bf16.gmra.mxu0 %vm232_vm0, %v1450_v47  ;;  %v5637_v0 = vpack.c.bf16 %v402_v59, %v401_v56  ;;  %v5639_v1 = vpack.c.bf16 %v403_v60, %v403_v60  ;;  %v485_v2 = vmul.bf16 %v5377_v31, %v5624_v53  ;;  %v626_v6 = vmul.bf16 %v5383_v36, %v5624_v53  ;;  %v389_v19 = vld [vmem:[#allocation2 + $0x90] sm:$0xff] }
  0xa3   : > { %359 = vst.msk [vmem:[#allocation2 + $0x109] sm:$0xff] %vm232_vm0, %v327_v55  ;;  %v508_v9 = vmul.bf16 %v5393_v42, %v5628_v61  ;;  %v627_v10 = vmul.bf16 %v5383_v36, %v5626_v54  ;;  %v665_v11 = vmul.bf16 %v5405_v48, %v5628_v61  ;;  %v666_v12 = vmul.bf16 %v5405_v48, %v5630_v45  ;;  %v390_v20 = vld [vmem:[#allocation2 + $0x98] sm:$0xff]  ;;  %v391_v18 = vld [vmem:[#allocation2 + $0xa0] sm:$0x3] }
  0xa4   : > { %v547_v13 = vmul.bf16 %v5396_v43, %v5637_v0  ;;  %v736_v14 = vmul.bf16 %v5412_v51, %v5637_v0  ;;  %v737_v15 = vmul.bf16 %v5412_v51, %v5639_v1  ;;  %v855_v16 = vmul.bf16 %v5386_v38, %v5624_v53 }
  0xa5   : > { %v524_v22 = vadd.bf16 %v508_v9, %v485_v2  ;;  %v697_v23 = vadd.bf16 %v665_v11, %v626_v6  ;;  %v698_v26 = vadd.bf16 %v666_v12, %v627_v10  ;;  %v856_v27 = vmul.bf16 %v5386_v38, %v5626_v54 }
  0xa6   : > { %v894_v28 = vmul.bf16 %v5408_v49, %v5628_v61  ;;  %v895_v29 = vmul.bf16 %v5408_v49, %v5630_v45  ;;  %v965_v25 = vmul.bf16 %v5425_v5, %v5637_v0  ;;  %v966_v21 = vmul.bf16 %v5425_v5, %v5639_v1 }
  0xa7   : > { %v563_v30 = vadd.bf16 %v547_v13, %v524_v22  ;;  %v768_v32 = vadd.bf16 %v736_v14, %v697_v23  ;;  %v769_v33 = vadd.bf16 %v737_v15, %v698_v26  ;;  %v5673_v34 = vpack.c.bf16 %v390_v20, %v389_v19 }
  0xa8   : > { %v926_v3 = vadd.bf16 %v894_v28, %v855_v16  ;;  %v927_v7 = vadd.bf16 %v895_v29, %v856_v27  ;;  %v5675_v39 = vpack.c.bf16 %v391_v18, %v391_v18  ;;  %v328_v4 = vmax.f32 %v296_v24, 0.0 }
  0xa9   : > { %v587_v57 = vunpack.c.l.bf16 %v563_v30  ;;  %v588_v46 = vunpack.c.h.bf16 %v563_v30  ;;  %v808_v58 = vunpack.c.l.bf16 %v768_v32  ;;  %v809_v44 = vunpack.c.h.bf16 %v768_v32 }
  0xaa   : > { %v810_v47 = vunpack.c.l.bf16 %v769_v33  ;;  %v997_v50 = vadd.bf16 %v965_v25, %v926_v3  ;;  %v998_v52 = vadd.bf16 %v966_v21, %v927_v7  ;;  %v543_v55 = vmul.bf16 %v5396_v43, %v5673_v34  ;;  %360 = vst.msk [vmem:[#allocation2 + $0x111] sm:$0xff] %vm232_vm0, %v328_v4  ;;  %v404_v21 = vld [vmem:[#allocation2 + $0x108] sm:$0xff] }
  0xab   : > { %v1150_v56 = vrot.slane %v808_v58, 1  ;;  %v1151_v59 = vrot.slane %v809_v44, 1  ;;  %v728_v60 = vmul.bf16 %v5412_v51, %v5673_v34  ;;  %v729_v2 = vmul.bf16 %v5412_v51, %v5675_v39 }
  0xac   : > { %v1037_v6 = vunpack.c.l.bf16 %v997_v50  ;;  %v1038_v9 = vunpack.c.h.bf16 %v997_v50  ;;  %v1039_v10 = vunpack.c.l.bf16 %v998_v52  ;;  %v1153_v11 = vrot.slane %v810_v47, 1 }
  0xad   : > { %v1152_v12 = vsel %vm1109_vm3, %v1150_v56, %v1151_v59  ;;  %v559_v13 = vadd.bf16 %v543_v55, %v5612_v35  ;;  %v760_v14 = vadd.bf16 %v728_v60, %v5614_v37  ;;  %v761_v15 = vadd.bf16 %v729_v2, %v5616_v8 }
  0xae   : > { %v1154_v16 = vsel %vm1109_vm3, %v1151_v59, %v1153_v11  ;;  %v1238_v19 = vadd.f32 %v1152_v12, %v587_v57  ;;  %v1343_v20 = vrot.slane %v1037_v6, 2  ;;  %v1344_v22 = vrot.slane %v1038_v9, 2 }
  0xaf   : > { %v1239_v23 = vadd.f32 %v1154_v16, %v588_v46  ;;  %v1346_v26 = vrot.slane %v1039_v10, 2  ;;  %v579_v27 = vunpack.c.l.bf16 %v559_v13  ;;  %v580_v18 = vunpack.c.h.bf16 %v559_v13 }
  0xb0   : > { %v1345_v24 = vsel %vm1302_vm4, %v1343_v20, %v1344_v22  ;;  %v796_v28 = vunpack.c.l.bf16 %v760_v14  ;;  %v797_v29 = vunpack.c.h.bf16 %v760_v14  ;;  %v798_v25 = vunpack.c.l.bf16 %v761_v15 }
  0xb1   : > { %v1347_v35 = vsel %vm1302_vm4, %v1344_v22, %v1346_v26  ;;  %v1431_v37 = vadd.f32 %v1345_v24, %v1238_v19  ;;  %v957_v8 = vmul.bf16 %v5425_v5, %v5673_v34  ;;  %v958_v30 = vmul.bf16 %v5425_v5, %v5675_v39  ;;  %v405_v32 = vld [vmem:[#allocation2 + $0x110] sm:$0xff]  ;;  %v406_v33 = vld [vmem:[#allocation2 + $0x118] sm:$0x3] }
  0xb2   : > { %v1432_v3 = vadd.f32 %v1347_v35, %v1239_v23  ;;  %v1130_v7 = vrot.slane %v796_v28, 1  ;;  %v1131_v4 = vrot.slane %v797_v29, 1  ;;  %v1133_v57 = vrot.slane %v798_v25, 1 }
  0xb3   : > { %v989_v46 = vadd.bf16 %v957_v8, %v5632_v62  ;;  %v990_v58 = vadd.bf16 %v958_v30, %v5634_v63  ;;  %v5697_v44 = vpack.c.bf16 %v405_v32, %v404_v21  ;;  %v5699_v47 = vpack.c.bf16 %v406_v33, %v406_v33  ;;  %v287_v8 = vld [vmem:[%s5286_s9 + $0x60] sm:$0xff] }
  0xb4   : > { %v1455_v50 = vpack.c.bf16 %v1432_v3, %v1431_v37  ;;  %v1132_v52 = vsel %vm1109_vm3, %v1130_v7, %v1131_v4  ;;  %v1134_v55 = vsel %vm1109_vm3, %v1131_v4, %v1133_v57  ;;  %v486_v56 = vmul.bf16 %v5377_v31, %v5628_v61  ;;  %v288_v7 = vld [vmem:[%s5286_s9 + $0x68] sm:$0xff] }
  0xb5   : > { %v1025_v59 = vunpack.c.l.bf16 %v989_v46  ;;  %v1026_v60 = vunpack.c.h.bf16 %v989_v46  ;;  %v1027_v2 = vunpack.c.l.bf16 %v990_v58  ;;  %v1230_v6 = vadd.f32 %v1132_v52, %v579_v27 }
  0xb6   : > { %4841 = vmatprep.mubr.msk.bf16.mxu1 %vm232_vm0, %v1455_v50  ;;  %v1231_v62 = vadd.f32 %v1134_v55, %v580_v18  ;;  %v509_v63 = vmul.bf16 %v5393_v42, %v5637_v0  ;;  %v548_v9 = vmul.bf16 %v5396_v43, %v5697_v44  ;;  %v628_v10 = vmul.bf16 %v5383_v36, %v5628_v61 }
  0xb7   : > { %v1323_v11 = vrot.slane %v1025_v59, 2  ;;  %v1324_v12 = vrot.slane %v1026_v60, 2  ;;  %v1326_v13 = vrot.slane %v1027_v2, 2  ;;  %v629_v14 = vmul.bf16 %v5383_v36, %v5630_v45 }
  0xb8   : > { %v525_v15 = vadd.bf16 %v509_v63, %v486_v56  ;;  %v667_v16 = vmul.bf16 %v5405_v48, %v5637_v0  ;;  %v668_v19 = vmul.bf16 %v5405_v48, %v5639_v1  ;;  %v738_v20 = vmul.bf16 %v5412_v51, %v5697_v44 }
  0xb9   : > { %v1325_v22 = vsel %vm1302_vm4, %v1323_v11, %v1324_v12  ;;  %v1327_v23 = vsel %vm1302_vm4, %v1324_v12, %v1326_v13  ;;  %v739_v26 = vmul.bf16 %v5412_v51, %v5699_v47  ;;  %v857_v27 = vmul.bf16 %v5386_v38, %v5628_v61 }
  0xba   : > { %v1423_v18 = vadd.f32 %v1325_v22, %v1230_v6  ;;  %v1424_v24 = vadd.f32 %v1327_v23, %v1231_v62  ;;  %v564_v28 = vadd.bf16 %v548_v9, %v525_v15  ;;  %v699_v29 = vadd.bf16 %v667_v16, %v628_v10 }
  0xbb   : > { %v700_v25 = vadd.bf16 %v668_v19, %v629_v14  ;;  %v858_v21 = vmul.bf16 %v5386_v38, %v5630_v45  ;;  %v896_v35 = vmul.bf16 %v5408_v49, %v5637_v0  ;;  %v897_v37 = vmul.bf16 %v5408_v49, %v5639_v1 }
  0xbc   : > { %v1451_v30 = vpack.c.bf16 %v1424_v24, %v1423_v18  ;;  %v589_v32 = vunpack.c.l.bf16 %v564_v28  ;;  %v590_v33 = vunpack.c.h.bf16 %v564_v28  ;;  %v770_v3 = vadd.bf16 %v738_v20, %v699_v29 }
  0xbd   : > { %v771_v4 = vadd.bf16 %v739_v26, %v700_v25  ;;  %v928_v57 = vadd.bf16 %v896_v35, %v857_v27  ;;  %v929_v46 = vadd.bf16 %v897_v37, %v858_v21  ;;  %v967_v58 = vmul.bf16 %v5425_v5, %v5697_v44  ;;  %v297_v25 = vld [vmem:[%s5286_s9 + $0xb0] sm:$0xff] }
  0xbe   : > { %4833 = vmatprep.mubr.msk.bf16.mxu0 %vm232_vm0, %v1451_v30  ;;  %v811_v50 = vunpack.c.l.bf16 %v770_v3  ;;  %v812_v52 = vunpack.c.h.bf16 %v770_v3  ;;  %v968_v55 = vmul.bf16 %v5425_v5, %v5699_v47  ;;  %v319_v56 = vmax.f32 %v287_v8, 0.0  ;;  %v298_v30 = vld [vmem:[%s5286_s9 + $0xb8] sm:$0xff] }
  0xbf   : > { %v813_v59 = vunpack.c.l.bf16 %v771_v4  ;;  %v999_v60 = vadd.bf16 %v967_v58, %v928_v57  ;;  %v320_v2 = vmax.f32 %v288_v7, 0.0  ;;  %v482_v6 = vmul.bf16 %v5377_v31, %v5535_v40 }
  0xc0   : > { %v1000_v62 = vadd.bf16 %v968_v55, %v929_v46  ;;  %v1155_v63 = vrot.slane %v811_v50, 1  ;;  %v1156_v9 = vrot.slane %v812_v52, 1  ;;  %351 = vst.msk [vmem:[#allocation2 + $0xa9] sm:$0xff] %vm232_vm0, %v319_v56  ;;  %v505_v10 = vmul.bf16 %v5393_v42, %v5673_v34 }
  0xc1   : > { %v1040_v11 = vunpack.c.l.bf16 %v999_v60  ;;  %v1041_v12 = vunpack.c.h.bf16 %v999_v60  ;;  %v1158_v13 = vrot.slane %v813_v59, 1  ;;  %352 = vst.msk [vmem:[#allocation2 + $0xb1] sm:$0xff] %vm232_vm0, %v320_v2  ;;  %v620_v14 = vmul.bf16 %v5383_v36, %v5535_v40 }
  0xc2   : > { %v1042_v15 = vunpack.c.l.bf16 %v1000_v62  ;;  %v1157_v16 = vsel %vm1109_vm3, %v1155_v63, %v1156_v9  ;;  %v521_v19 = vadd.bf16 %v505_v10, %v482_v6  ;;  %v621_v20 = vmul.bf16 %v5383_v36, %v5538_v41 }
  0xc3   : > { %v1159_v22 = vsel %vm1109_vm3, %v1156_v9, %v1158_v13  ;;  %v1240_v23 = vadd.f32 %v1157_v16, %v589_v32  ;;  %v1348_v26 = vrot.slane %v1040_v11, 2  ;;  %v1349_v27 = vrot.slane %v1041_v12, 2 }
  0xc4   : > { %v1241_v18 = vadd.f32 %v1159_v22, %v590_v33  ;;  %v1351_v24 = vrot.slane %v1042_v15, 2  ;;  %v659_v28 = vmul.bf16 %v5405_v48, %v5673_v34  ;;  %v660_v29 = vmul.bf16 %v5405_v48, %v5675_v39 }
  0xc5   : > { %v1350_v21 = vsel %vm1302_vm4, %v1348_v26, %v1349_v27  ;;  %v849_v35 = vmul.bf16 %v5386_v38, %v5535_v40  ;;  %v850_v37 = vmul.bf16 %v5386_v38, %v5538_v41  ;;  %v888_v8 = vmul.bf16 %v5408_v49, %v5673_v34 }
  0xc6   : > { %v1352_v32 = vsel %vm1302_vm4, %v1349_v27, %v1351_v24  ;;  %v1433_v33 = vadd.f32 %v1350_v21, %v1240_v23  ;;  %v691_v3 = vadd.bf16 %v659_v28, %v620_v14  ;;  %v692_v7 = vadd.bf16 %v660_v29, %v621_v20 }
  0xc7   : > { %v1434_v4 = vadd.f32 %v1352_v32, %v1241_v18  ;;  %v392_v57 = vld [vmem:[#allocation2 + $0xa8] sm:$0xff]  ;;  %v889_v46 = vmul.bf16 %v5408_v49, %v5675_v39  ;;  %v920_v58 = vadd.bf16 %v888_v8, %v849_v35  ;;  %v329_v50 = vmax.f32 %v297_v25, 0.0 }
  0xc8   : > { %v393_v40 = vld [vmem:[#allocation2 + $0xb0] sm:$0xff]  ;;  %v394_v52 = vld [vmem:[#allocation2 + $0xb8] sm:$0x3]  ;;  %v330_v55 = vmax.f32 %v298_v30, 0.0  ;;  %v487_v41 = vmul.bf16 %v5377_v31, %v5637_v0  ;;  %v510_v56 = vmul.bf16 %v5393_v42, %v5697_v44  ;;  %v630_v59 = vmul.bf16 %v5383_v36, %v5637_v0 }
  0xc9   : > { %v1456_v60 = vpack.c.bf16 %v1434_v4, %v1433_v33  ;;  %v5773_v2 = vpack.c.bf16 %v393_v40, %v392_v57  ;;  %v5775_v6 = vpack.c.bf16 %v394_v52, %v394_v52  ;;  %v921_v62 = vadd.bf16 %v889_v46, %v850_v37  ;;  %361 = vst.msk [vmem:[#allocation2 + $0x121] sm:$0xff] %vm232_vm0, %v329_v50 }
  0xca   : > { %362 = vst.msk [vmem:[#allocation2 + $0x129] sm:$0xff] %vm232_vm0, %v330_v55  ;;  %v526_v63 = vadd.bf16 %v510_v56, %v487_v41  ;;  %v631_v9 = vmul.bf16 %v5383_v36, %v5639_v1  ;;  %v669_v10 = vmul.bf16 %v5405_v48, %v5697_v44  ;;  %v670_v11 = vmul.bf16 %v5405_v48, %v5699_v47 }
  0xcb   : > { %4842 = vmatmul.mubr.msk.bf16.vlgmr.msra.gmra.mxu1 %vm232_vm0, %v1456_v60  ;;  %v544_v12 = vmul.bf16 %v5396_v43, %v5773_v2  ;;  %v730_v13 = vmul.bf16 %v5412_v51, %v5773_v2  ;;  %v731_v14 = vmul.bf16 %v5412_v51, %v5775_v6  ;;  %v959_v15 = vmul.bf16 %v5425_v5, %v5773_v2 }
  0xcc   : > { %v960_v16 = vmul.bf16 %v5425_v5, %v5775_v6  ;;  %v701_v20 = vadd.bf16 %v669_v10, %v630_v59  ;;  %v702_v22 = vadd.bf16 %v670_v11, %v631_v9  ;;  %v859_v23 = vmul.bf16 %v5386_v38, %v5637_v0 }
  0xcd   : > { %v560_v26 = vadd.bf16 %v544_v12, %v521_v19  ;;  %v762_v27 = vadd.bf16 %v730_v13, %v691_v3  ;;  %v763_v18 = vadd.bf16 %v731_v14, %v692_v7  ;;  %v991_v24 = vadd.bf16 %v959_v15, %v920_v58 }
  0xce   : > { %v992_v28 = vadd.bf16 %v960_v16, %v921_v62  ;;  %v860_v29 = vmul.bf16 %v5386_v38, %v5639_v1  ;;  %v898_v25 = vmul.bf16 %v5408_v49, %v5697_v44  ;;  %v899_v21 = vmul.bf16 %v5408_v49, %v5699_v47 }
  0xcf   : > { %v581_v35 = vunpack.c.l.bf16 %v560_v26  ;;  %v582_v37 = vunpack.c.h.bf16 %v560_v26  ;;  %v799_v8 = vunpack.c.l.bf16 %v762_v27  ;;  %v800_v30 = vunpack.c.h.bf16 %v762_v27 }
  0xd0   : > { %v801_v32 = vunpack.c.l.bf16 %v763_v18  ;;  %v1028_v0 = vunpack.c.l.bf16 %v991_v24  ;;  %v1029_v19 = vunpack.c.h.bf16 %v991_v24  ;;  %v1030_v33 = vunpack.c.l.bf16 %v992_v28  ;;  %v407_v3 = vld [vmem:[#allocation2 + $0x120] sm:$0xff] }
  0xd1   : > { %v1135_v7 = vrot.slane %v799_v8, 1  ;;  %v1136_v4 = vrot.slane %v800_v30, 1  ;;  %v408_v57 = vld [vmem:[#allocation2 + $0x128] sm:$0xff]  ;;  %v409_v46 = vld [vmem:[#allocation2 + $0x130] sm:$0x3]  ;;  %v930_v1 = vadd.bf16 %v898_v25, %v859_v23  ;;  %v931_v58 = vadd.bf16 %v899_v21, %v860_v29 }
  0xd2   : > { %v1138_v50 = vrot.slane %v801_v32, 1  ;;  %v1328_v40 = vrot.slane %v1028_v0, 2  ;;  %v1329_v52 = vrot.slane %v1029_v19, 2  ;;  %v1331_v55 = vrot.slane %v1030_v33, 2 }
  0xd3   : > { %v1137_v41 = vsel %vm1109_vm3, %v1135_v7, %v1136_v4  ;;  %v5805_v56 = vpack.c.bf16 %v408_v57, %v407_v3  ;;  %v5807_v59 = vpack.c.bf16 %v409_v46, %v409_v46  ;;  %v483_v60 = vmul.bf16 %v5377_v31, %v5673_v34 }
  0xd4   : > { %v1139_v62 = vsel %vm1109_vm3, %v1136_v4, %v1138_v50  ;;  %v1232_v9 = vadd.f32 %v1137_v41, %v581_v35  ;;  %v1330_v10 = vsel %vm1302_vm4, %v1328_v40, %v1329_v52  ;;  %v1332_v11 = vsel %vm1302_vm4, %v1329_v52, %v1331_v55 }
  0xd5   : > { %v1233_v12 = vadd.f32 %v1139_v62, %v582_v37  ;;  %v549_v13 = vmul.bf16 %v5396_v43, %v5805_v56  ;;  %v740_v14 = vmul.bf16 %v5412_v51, %v5805_v56  ;;  %v741_v15 = vmul.bf16 %v5412_v51, %v5807_v59 }
  0xd6   : > { %v1425_v16 = vadd.f32 %v1330_v10, %v1232_v9  ;;  %v969_v23 = vmul.bf16 %v5425_v5, %v5805_v56  ;;  %v970_v26 = vmul.bf16 %v5425_v5, %v5807_v59  ;;  %v506_v27 = vmul.bf16 %v5393_v42, %v5773_v2 }
  0xd7   : > { %v1426_v18 = vadd.f32 %v1332_v11, %v1233_v12  ;;  %v565_v24 = vadd.bf16 %v549_v13, %v526_v63  ;;  %v772_v28 = vadd.bf16 %v740_v14, %v701_v20  ;;  %v773_v29 = vadd.bf16 %v741_v15, %v702_v22 }
  0xd8   : > { %v1001_v25 = vadd.bf16 %v969_v23, %v930_v1  ;;  %v1002_v21 = vadd.bf16 %v970_v26, %v931_v58  ;;  %v522_v35 = vadd.bf16 %v506_v27, %v483_v60  ;;  %v545_v37 = vmul.bf16 %v5396_v43, %v5624_v53  ;;  %v299_v26 = vld [vmem:[%s5286_s9 + $0xc0] sm:$0xff] }
  0xd9   : > { %v1452_v8 = vpack.c.bf16 %v1426_v18, %v1425_v16  ;;  %v591_v30 = vunpack.c.l.bf16 %v565_v24  ;;  %v592_v32 = vunpack.c.h.bf16 %v565_v24  ;;  %v814_v0 = vunpack.c.l.bf16 %v772_v28 }
  0xda   : > { %v815_v19 = vunpack.c.h.bf16 %v772_v28  ;;  %v816_v33 = vunpack.c.l.bf16 %v773_v29  ;;  %v1043_v3 = vunpack.c.l.bf16 %v1001_v25  ;;  %v1044_v7 = vunpack.c.h.bf16 %v1001_v25 }
  0xdb   : > { %4834 = vmatmul.mubr.msk.bf16.gmra.mxu0 %vm232_vm0, %v1452_v8  ;;  %v1045_v4 = vunpack.c.l.bf16 %v1002_v21  ;;  %v1160_v63 = vrot.slane %v814_v0, 1  ;;  %v5829_v20 = vadd.bf16 %v545_v37, %v522_v35  ;;  %v622_v22 = vmul.bf16 %v5383_v36, %v5673_v34  ;;  %v300_v37 = vld [vmem:[%s5286_s9 + $0xc8] sm:$0xff] }
  0xdc   : > { %v1161_v57 = vrot.slane %v815_v19, 1  ;;  %v1163_v46 = vrot.slane %v816_v33, 1  ;;  %v1353_v1 = vrot.slane %v1043_v3, 2  ;;  %v1354_v58 = vrot.slane %v1044_v7, 2 }
  0xdd   : > { %v1356_v50 = vrot.slane %v1045_v4, 2  ;;  %v583_v40 = vunpack.c.l.bf16 %v5829_v20  ;;  %v584_v52 = vunpack.c.h.bf16 %v5829_v20  ;;  %v623_v55 = vmul.bf16 %v5383_v36, %v5675_v39 }
  0xde   : > { %v1162_v41 = vsel %vm1109_vm3, %v1160_v63, %v1161_v57  ;;  %v1164_v60 = vsel %vm1109_vm3, %v1161_v57, %v1163_v46  ;;  %v1355_v62 = vsel %vm1302_vm4, %v1353_v1, %v1354_v58  ;;  %v661_v9 = vmul.bf16 %v5405_v48, %v5773_v2 }
  0xdf   : > { %v1242_v10 = vadd.f32 %v1162_v41, %v591_v30  ;;  %v1243_v11 = vadd.f32 %v1164_v60, %v592_v32  ;;  %v1357_v12 = vsel %vm1302_vm4, %v1354_v58, %v1356_v50  ;;  %v662_v13 = vmul.bf16 %v5405_v48, %v5775_v6 }
  0xe0   : > { %v693_v14 = vadd.bf16 %v661_v9, %v622_v22  ;;  %v732_v15 = vmul.bf16 %v5412_v51, %v5624_v53  ;;  %v733_v16 = vmul.bf16 %v5412_v51, %v5626_v54  ;;  %v851_v23 = vmul.bf16 %v5386_v38, %v5673_v34 }
  0xe1   : > { %v1435_v27 = vadd.f32 %v1355_v62, %v1242_v10  ;;  %v1436_v18 = vadd.f32 %v1357_v12, %v1243_v11  ;;  %v694_v24 = vadd.bf16 %v662_v13, %v623_v55  ;;  %v852_v28 = vmul.bf16 %v5386_v38, %v5675_v39 }
  0xe2   : > { %v764_v29 = vadd.bf16 %v732_v15, %v693_v14  ;;  %v890_v25 = vmul.bf16 %v5408_v49, %v5773_v2  ;;  %v891_v21 = vmul.bf16 %v5408_v49, %v5775_v6  ;;  %v961_v35 = vmul.bf16 %v5425_v5, %v5624_v53 }
  0xe3   : > { %v1457_v8 = vpack.c.bf16 %v1436_v18, %v1435_v27  ;;  %v765_v34 = vadd.bf16 %v733_v16, %v694_v24  ;;  %v962_v30 = vmul.bf16 %v5425_v5, %v5626_v54  ;;  %v331_v32 = vmax.f32 %v299_v26, 0.0 }
  0xe4   : > { %v802_v0 = vunpack.c.l.bf16 %v764_v29  ;;  %v803_v19 = vunpack.c.h.bf16 %v764_v29  ;;  %v922_v39 = vadd.bf16 %v890_v25, %v851_v23  ;;  %v923_v33 = vadd.bf16 %v891_v21, %v852_v28 }
  0xe5   : > { %4845 = vmatprep.mubr.msk.bf16.mxu1 %vm232_vm0, %v1457_v8  ;;  %v804_v3 = vunpack.c.l.bf16 %v765_v34  ;;  %v332_v7 = vmax.f32 %v300_v37, 0.0  ;;  %363 = vst.msk [vmem:[#allocation2 + $0x139] sm:$0xff] %vm232_vm0, %v331_v32  ;;  %v488_v4 = vmul.bf16 %v5377_v31, %v5697_v44  ;;  %v511_v63 = vmul.bf16 %v5393_v42, %v5805_v56 }
  0xe6   : > { %v993_v20 = vadd.bf16 %v961_v35, %v922_v39  ;;  %v994_v22 = vadd.bf16 %v962_v30, %v923_v33  ;;  %v1140_v57 = vrot.slane %v802_v0, 1  ;;  %v1141_v46 = vrot.slane %v803_v19, 1 }
  0xe7   : > { %v1143_v1 = vrot.slane %v804_v3, 1  ;;  %364 = vst.msk [vmem:[#allocation2 + $0x141] sm:$0xff] %vm232_vm0, %v332_v7  ;;  %v527_v58 = vadd.bf16 %v511_v63, %v488_v4  ;;  %v632_v50 = vmul.bf16 %v5383_v36, %v5697_v44  ;;  %v633_v55 = vmul.bf16 %v5383_v36, %v5699_v47 }
  0xe8   : > { %v1031_v41 = vunpack.c.l.bf16 %v993_v20  ;;  %v1032_v60 = vunpack.c.h.bf16 %v993_v20  ;;  %v1033_v62 = vunpack.c.l.bf16 %v994_v22  ;;  %v1142_v9 = vsel %vm1109_vm3, %v1140_v57, %v1141_v46  ;;  %v4999_v22 = vld [vmem:[%s7999_s2 + $0x18] sm:$0xff]  }
  0xe9   : > { %v1144_v10 = vsel %vm1109_vm3, %v1141_v46, %v1143_v1  ;;  %v1234_v11 = vadd.f32 %v1142_v9, %v583_v40  ;;  %v671_v12 = vmul.bf16 %v5405_v48, %v5805_v56  ;;  %v672_v13 = vmul.bf16 %v5405_v48, %v5807_v59  ;;  %4857 = vmatprep.subr.bf16.mxu1 %v4999_v22 }
  0xea   : > { %v1235_v14 = vadd.f32 %v1144_v10, %v584_v52  ;;  %v1333_v15 = vrot.slane %v1031_v41, 2  ;;  %v1334_v16 = vrot.slane %v1032_v60, 2  ;;  %v1336_v23 = vrot.slane %v1033_v62, 2  ;;  %4858 = vmatpush3.bf16.msra.mxu1 %v4999_v22 }
  0xeb   : > { %v703_v26 = vadd.bf16 %v671_v12, %v632_v50  ;;  %v704_v27 = vadd.bf16 %v672_v13, %v633_v55  ;;  %v861_v18 = vmul.bf16 %v5386_v38, %v5697_v44  ;;  %v862_v24 = vmul.bf16 %v5386_v38, %v5699_v47 }
  0xec   : > { %v1335_v40 = vsel %vm1302_vm4, %v1333_v15, %v1334_v16  ;;  %v1337_v28 = vsel %vm1302_vm4, %v1334_v16, %v1336_v23  ;;  %v410_v29 = vld [vmem:[#allocation2 + $0x138] sm:$0xff]  ;;  %v900_v25 = vmul.bf16 %v5408_v49, %v5805_v56  ;;  %v901_v52 = vmul.bf16 %v5408_v49, %v5807_v59 }
  0xed   : > { %v1427_v21 = vadd.f32 %v1335_v40, %v1234_v11  ;;  %v1428_v35 = vadd.f32 %v1337_v28, %v1235_v14  ;;  %v484_v37 = vmul.bf16 %v5377_v31, %v5773_v2  ;;  %v507_v44 = vmul.bf16 %v5393_v42, %v5624_v53 }
  0xee   : > { %v411_v47 = vld [vmem:[#allocation2 + $0x140] sm:$0xff]  ;;  %v412_v8 = vld [vmem:[#allocation2 + $0x148] sm:$0x3]  ;;  %v932_v34 = vadd.bf16 %v900_v25, %v861_v18  ;;  %v933_v30 = vadd.bf16 %v901_v52, %v862_v24  ;;  %v546_v32 = vmul.bf16 %v5396_v43, %v5628_v61  ;;  %v624_v0 = vmul.bf16 %v5383_v36, %v5773_v2 }
  0xef   : > { %v1453_v19 = vpack.c.bf16 %v1428_v35, %v1427_v21  ;;  %v5898_v39 = vpack.c.bf16 %v411_v47, %v410_v29  ;;  %v5900_v33 = vpack.c.bf16 %v412_v8, %v412_v8  ;;  %v523_v3 = vadd.bf16 %v507_v44, %v484_v37 }
  0xf0   : > { %v625_v7 = vmul.bf16 %v5383_v36, %v5775_v6  ;;  %v663_v4 = vmul.bf16 %v5405_v48, %v5624_v53  ;;  %v664_v63 = vmul.bf16 %v5405_v48, %v5626_v54  ;;  %v734_v20 = vmul.bf16 %v5412_v51, %v5628_v61 }
  0xf1   : > { %4837 = vmatprep.mubr.msk.bf16.mxu0 %vm232_vm0, %v1453_v19  ;;  %v550_v57 = vmul.bf16 %v5396_v43, %v5898_v39  ;;  %v742_v46 = vmul.bf16 %v5412_v51, %v5898_v39  ;;  %v743_v1 = vmul.bf16 %v5412_v51, %v5900_v33  ;;  %v971_v50 = vmul.bf16 %v5425_v5, %v5898_v39 }
  0xf2   : > { %v972_v55 = vmul.bf16 %v5425_v5, %v5900_v33  ;;  %v5924_v41 = vadd.bf16 %v546_v32, %v523_v3  ;;  %v695_v60 = vadd.bf16 %v663_v4, %v624_v0  ;;  %v696_v62 = vadd.bf16 %v664_v63, %v625_v7 }
  0xf3   : > { %v566_v9 = vadd.bf16 %v550_v57, %v527_v58  ;;  %v774_v10 = vadd.bf16 %v742_v46, %v703_v26  ;;  %v775_v11 = vadd.bf16 %v743_v1, %v704_v27  ;;  %v1003_v12 = vadd.bf16 %v971_v50, %v932_v34  ;;  %v301_v57 = vld [vmem:[%s5286_s9 + $0xd0] sm:$0xff]  ;;  %v302_v46 = vld [vmem:[%s5286_s9 + $0xd8] sm:$0xff] }
  0xf4   : > { %v1004_v13 = vadd.bf16 %v972_v55, %v933_v30  ;;  %v585_v14 = vunpack.c.l.bf16 %v5924_v41  ;;  %v586_v15 = vunpack.c.h.bf16 %v5924_v41  ;;  %v735_v16 = vmul.bf16 %v5412_v51, %v5630_v45 }
  0xf5   : > { %v593_v23 = vunpack.c.l.bf16 %v566_v9  ;;  %v594_v18 = vunpack.c.h.bf16 %v566_v9  ;;  %v817_v24 = vunpack.c.l.bf16 %v774_v10  ;;  %v818_v40 = vunpack.c.h.bf16 %v774_v10 }
  0xf6   : > { %v819_v28 = vunpack.c.l.bf16 %v775_v11  ;;  %v1046_v29 = vunpack.c.l.bf16 %v1003_v12  ;;  %v1047_v25 = vunpack.c.h.bf16 %v1003_v12  ;;  %v1048_v58 = vunpack.c.l.bf16 %v1004_v13 }
  0xf7   : > { %v1165_v26 = vrot.slane %v817_v24, 1  ;;  %v1166_v27 = vrot.slane %v818_v40, 1  ;;  %v766_v52 = vadd.bf16 %v734_v20, %v695_v60  ;;  %v767_v21 = vadd.bf16 %v735_v16, %v696_v62 }
  0xf8   : > { %v1168_v35 = vrot.slane %v819_v28, 1  ;;  %v1358_v37 = vrot.slane %v1046_v29, 2  ;;  %v1359_v44 = vrot.slane %v1047_v25, 2  ;;  %v1361_v47 = vrot.slane %v1048_v58, 2 }
  0xf9   : > { %v1167_v8 = vsel %vm1109_vm3, %v1165_v26, %v1166_v27  ;;  %v805_v34 = vunpack.c.l.bf16 %v766_v52  ;;  %v806_v30 = vunpack.c.h.bf16 %v766_v52  ;;  %v807_v32 = vunpack.c.l.bf16 %v767_v21 }
  0xfa   : > { %v1169_v0 = vsel %vm1109_vm3, %v1166_v27, %v1168_v35  ;;  %v1244_v19 = vadd.f32 %v1167_v8, %v593_v23  ;;  %v1360_v3 = vsel %vm1302_vm4, %v1358_v37, %v1359_v44  ;;  %v1362_v7 = vsel %vm1302_vm4, %v1359_v44, %v1361_v47  ;;  %v303_v27 = vld [vmem:[%s5286_s9 + $0xe0] sm:$0xff]  ;;  %v304_v37 = vld [vmem:[%s5286_s9 + $0xe8] sm:$0xff] }
  0xfb   : > { %v1245_v4 = vadd.f32 %v1169_v0, %v594_v18  ;;  %v853_v63 = vmul.bf16 %v5386_v38, %v5773_v2  ;;  %v854_v20 = vmul.bf16 %v5386_v38, %v5775_v6  ;;  %v892_v22 = vmul.bf16 %v5408_v49, %v5624_v53 }
  0xfc   : > { %v1437_v1 = vadd.f32 %v1360_v3, %v1244_v19  ;;  %v893_v50 = vmul.bf16 %v5408_v49, %v5626_v54  ;;  %v963_v55 = vmul.bf16 %v5425_v5, %v5628_v61  ;;  %v964_v41 = vmul.bf16 %v5425_v5, %v5630_v45 }
  0xfd   : > { %v1438_v60 = vadd.f32 %v1362_v7, %v1245_v4  ;;  %v924_v2 = vadd.bf16 %v892_v22, %v853_v63  ;;  %v1145_v62 = vrot.slane %v805_v34, 1  ;;  %v1146_v9 = vrot.slane %v806_v30, 1  ;;  %v305_v63 = vld [vmem:[%s5286_s9 + $0xf0] sm:$0xff] }
  0xfe   : > { %v925_v6 = vadd.bf16 %v893_v50, %v854_v20  ;;  %v1148_v10 = vrot.slane %v807_v32, 1  ;;  %v333_v11 = vmax.f32 %v301_v57, 0.0  ;;  %v334_v53 = vmax.f32 %v302_v46, 0.0  ;;  %v306_v20 = vld [vmem:[%s5286_s9 + $0xf8] sm:$0xff] }
  0xff   : > { %v1458_v12 = vpack.c.bf16 %v1438_v60, %v1437_v1  ;;  %v995_v13 = vadd.bf16 %v963_v55, %v924_v2  ;;  %v1147_v16 = vsel %vm1109_vm3, %v1145_v62, %v1146_v9  ;;  %v489_v54 = vmul.bf16 %v5377_v31, %v5805_v56 }
 0x100   : > { %v996_v61 = vadd.bf16 %v964_v41, %v925_v6  ;;  %v1149_v23 = vsel %vm1109_vm3, %v1146_v9, %v1148_v10  ;;  %v1236_v45 = vadd.f32 %v1147_v16, %v585_v14  ;;  %365 = vst.msk [vmem:[#allocation2 + $0x151] sm:$0xff] %vm232_vm0, %v333_v11  ;;  %366 = vst.msk [vmem:[#allocation2 + $0x159] sm:$0xff] %vm232_vm0, %v334_v53  ;;  %v335_v19 = vmax.f32 %v303_v27, 0.0 }
 0x101   : > { %v512_v18 = vmul.bf16 %v5393_v42, %v5898_v39  ;;  %4846 = vmatmul.mubr.msk.bf16.gmra.mxu1 %vm232_vm0, %v1458_v12  ;;  %v1034_v24 = vunpack.c.l.bf16 %v995_v13  ;;  %v1035_v40 = vunpack.c.h.bf16 %v995_v13  ;;  %v1237_v28 = vadd.f32 %v1149_v23, %v586_v15 }
 0x102   : > { %v634_v29 = vmul.bf16 %v5383_v36, %v5805_v56  ;;  %v1036_v25 = vunpack.c.l.bf16 %v996_v61  ;;  %v635_v14 = vmul.bf16 %v5383_v36, %v5807_v59  ;;  %v673_v26 = vmul.bf16 %v5405_v48, %v5898_v39  ;;  %367 = vst.msk [vmem:[#allocation2 + $0x169] sm:$0xff] %vm232_vm0, %v335_v19 }
 0x103   : > { %v528_v58 = vadd.bf16 %v512_v18, %v489_v54  ;;  %v1338_v52 = vrot.slane %v1034_v24, 2  ;;  %v1339_v21 = vrot.slane %v1035_v40, 2  ;;  %v674_v35 = vmul.bf16 %v5405_v48, %v5900_v33 }
 0x104   : > { %v863_v15 = vmul.bf16 %v5386_v38, %v5805_v56  ;;  %v1341_v44 = vrot.slane %v1036_v25, 2  ;;  %v705_v47 = vadd.bf16 %v673_v26, %v634_v29  ;;  %v864_v8 = vmul.bf16 %v5386_v38, %v5807_v59 }
 0x105   : > { %v902_v34 = vmul.bf16 %v5408_v49, %v5898_v39  ;;  %v1340_v30 = vsel %vm1302_vm4, %v1338_v52, %v1339_v21  ;;  %v706_v32 = vadd.bf16 %v674_v35, %v635_v14  ;;  %v903_v0 = vmul.bf16 %v5408_v49, %v5900_v33 }
 0x106   : > { %v1342_v3 = vsel %vm1302_vm4, %v1339_v21, %v1341_v44  ;;  %v1429_v7 = vadd.f32 %v1340_v30, %v1236_v45  ;;  %v336_v4 = vmax.f32 %v304_v37, 0.0  ;;  %v490_v50 = vmul.bf16 %v5377_v31, %v5898_v39 }
 0x107   : > { %v934_v56 = vadd.bf16 %v902_v34, %v863_v15  ;;  %v1430_v22 = vadd.f32 %v1342_v3, %v1237_v28  ;;  %v413_v57 = vld [vmem:[#allocation2 + $0x150] sm:$0xff]  ;;  %v414_v59 = vld [vmem:[#allocation2 + $0x158] sm:$0xff]  ;;  %v415_v46 = vld [vmem:[#allocation2 + $0x160] sm:$0x3]  ;;  %v935_v1 = vadd.bf16 %v903_v0, %v864_v8  ;;  %v636_v55 = vmul.bf16 %v5383_v36, %v5898_v39 }
 0x108   : > { %v5984_v41 = vpack.c.bf16 %v414_v59, %v413_v57  ;;  %v5986_v60 = vpack.c.bf16 %v415_v46, %v415_v46  ;;  %368 = vst.msk [vmem:[#allocation2 + $0x171] sm:$0xff] %vm232_vm0, %v336_v4  ;;  %v637_v2 = vmul.bf16 %v5383_v36, %v5900_v33  ;;  %v865_v62 = vmul.bf16 %v5386_v38, %v5898_v39 }
 0x109   : > { %v1454_v9 = vpack.c.bf16 %v1430_v22, %v1429_v7  ;;  %v866_v6 = vmul.bf16 %v5386_v38, %v5900_v33  ;;  %v337_v10 = vmax.f32 %v305_v63, 0.0  ;;  %v338_v11 = vmax.f32 %v306_v20, 0.0  ;;  %v416_v15 = vld [vmem:[#allocation2 + $0x168] sm:$0xff] }
 0x10a   : > { %v551_v53 = vmul.bf16 %v5396_v43, %v5984_v41  ;;  %v744_v12 = vmul.bf16 %v5412_v51, %v5984_v41  ;;  %v745_v13 = vmul.bf16 %v5412_v51, %v5986_v60  ;;  %v973_v16 = vmul.bf16 %v5425_v5, %v5984_v41 }
 0x10b   : > { %4838 = vmatmul.mubr.msk.bf16.gmra.mxu0 %vm232_vm0, %v1454_v9  ;;  %v974_v54 = vmul.bf16 %v5425_v5, %v5986_v60  ;;  %v513_v61 = vmul.bf16 %v5393_v42, %v5984_v41  ;;  %v675_v23 = vmul.bf16 %v5405_v48, %v5984_v41  ;;  %v676_v45 = vmul.bf16 %v5405_v48, %v5986_v60 }
 0x10c   : > { %369 = vst.msk [vmem:[#allocation2 + $0x181] sm:$0xff] %vm232_vm0, %v337_v10  ;;  %370 = vst.msk [vmem:[#allocation2 + $0x189] sm:$0xff] %vm232_vm0, %v338_v11  ;;  %v567_v18 = vadd.bf16 %v551_v53, %v528_v58  ;;  %v776_v24 = vadd.bf16 %v744_v12, %v705_v47  ;;  %v777_v40 = vadd.bf16 %v745_v13, %v706_v32 }
 0x10d   : > { %v1005_v28 = vadd.bf16 %v973_v16, %v934_v56  ;;  %v1006_v29 = vadd.bf16 %v974_v54, %v935_v1  ;;  %v529_v25 = vadd.bf16 %v513_v61, %v490_v50  ;;  %v707_v14 = vadd.bf16 %v675_v23, %v636_v55 }
 0x10e   : > { %v708_v26 = vadd.bf16 %v676_v45, %v637_v2  ;;  %v595_v27 = vunpack.c.l.bf16 %v567_v18  ;;  %v596_v52 = vunpack.c.h.bf16 %v567_v18  ;;  %v820_v21 = vunpack.c.l.bf16 %v776_v24 }
 0x10f   : > { %v821_v35 = vunpack.c.h.bf16 %v776_v24  ;;  %v822_v37 = vunpack.c.l.bf16 %v777_v40  ;;  %v1049_v44 = vunpack.c.l.bf16 %v1005_v28  ;;  %v1050_v8 = vunpack.c.h.bf16 %v1005_v28  ;;  %v417_v30 = vld [vmem:[#allocation2 + $0x170] sm:$0xff]  ;;  %v418_v0 = vld [vmem:[#allocation2 + $0x178] sm:$0x3] }
 0x110   : > { %v1051_v34 = vunpack.c.l.bf16 %v1006_v29  ;;  %v1170_v19 = vrot.slane %v820_v21, 1  ;;  %v6014_v47 = vpack.c.bf16 %v417_v30, %v416_v15  ;;  %v6016_v32 = vpack.c.bf16 %v418_v0, %v418_v0 }
 0x111   : > { %v1171_v58 = vrot.slane %v821_v35, 1  ;;  %v1173_v3 = vrot.slane %v822_v37, 1  ;;  %v1363_v7 = vrot.slane %v1049_v44, 2  ;;  %v1364_v56 = vrot.slane %v1050_v8, 2 }
 0x112   : > { %v1366_v4 = vrot.slane %v1051_v34, 2  ;;  %v552_v20 = vmul.bf16 %v5396_v43, %v6014_v47  ;;  %v746_v22 = vmul.bf16 %v5412_v51, %v6014_v47  ;;  %v747_v57 = vmul.bf16 %v5412_v51, %v6016_v32 }
 0x113   : > { %v1172_v63 = vsel %vm1109_vm3, %v1170_v19, %v1171_v58  ;;  %v1174_v59 = vsel %vm1109_vm3, %v1171_v58, %v1173_v3  ;;  %v1365_v1 = vsel %vm1302_vm4, %v1363_v7, %v1364_v56  ;;  %v904_v53 = vmul.bf16 %v5408_v49, %v5984_v41  ;;  %v419_v16 = vld [vmem:[#allocation2 + $0x180] sm:$0xff]  ;;  %v420_v54 = vld [vmem:[#allocation2 + $0x188] sm:$0xff]  ;;  %v421_v24 = vld [vmem:[#allocation2 + $0x190] sm:$0x3] }
 0x114   : > { %v1246_v46 = vadd.f32 %v1172_v63, %v595_v27  ;;  %v1367_v50 = vsel %vm1302_vm4, %v1364_v56, %v1366_v4  ;;  %v1247_v55 = vadd.f32 %v1174_v59, %v596_v52  ;;  %v568_v2 = vadd.bf16 %v552_v20, %v529_v25 }
 0x115   : > { %v778_v9 = vadd.bf16 %v746_v22, %v707_v14  ;;  %v779_v10 = vadd.bf16 %v747_v57, %v708_v26  ;;  %v905_v12 = vmul.bf16 %v5408_v49, %v5986_v60  ;;  %v975_v13 = vmul.bf16 %v5425_v5, %v6014_v47 }
 0x116   : > { %v1439_v11 = vadd.f32 %v1365_v1, %v1246_v46  ;;  %v1440_v61 = vadd.f32 %v1367_v50, %v1247_v55  ;;  %v597_v23 = vunpack.c.l.bf16 %v568_v2  ;;  %v598_v45 = vunpack.c.h.bf16 %v568_v2 }
 0x117   : > { %v823_v18 = vunpack.c.l.bf16 %v778_v9  ;;  %v824_v40 = vunpack.c.h.bf16 %v778_v9  ;;  %v825_v28 = vunpack.c.l.bf16 %v779_v10  ;;  %v936_v29 = vadd.bf16 %v904_v53, %v865_v62 }
 0x118   : > { %v937_v25 = vadd.bf16 %v905_v12, %v866_v6  ;;  %v1459_v14 = vpack.c.bf16 %v1440_v61, %v1439_v11  ;;  %v976_v26 = vmul.bf16 %v5425_v5, %v6016_v32  ;;  %v6042_v52 = vpack.c.bf16 %v420_v54, %v419_v16  ;;  %v422_v16 = vld [vmem:[#allocation2 + $0x198] sm:$0xff]  ;;  %v423_v54 = vld [vmem:[#allocation2 + $0x1a0] sm:$0xff] }
 0x119   : > { %v1175_v27 = vrot.slane %v823_v18, 1  ;;  %v1007_v21 = vadd.bf16 %v975_v13, %v936_v29  ;;  %v1176_v35 = vrot.slane %v824_v40, 1  ;;  %v1178_v15 = vrot.slane %v825_v28, 1  ;;  %v424_v29 = vld [vmem:[#allocation2 + $0x1a8] sm:$0x3] }
 0x11a   : > { %v6044_v37 = vpack.c.bf16 %v421_v24, %v421_v24  ;;  %4849 = vmatprep.mubr.msk.bf16.mxu1 %vm232_vm0, %v1459_v14  ;;  %v1008_v39 = vadd.bf16 %v976_v26, %v937_v25  ;;  %v491_v62 = vmul.bf16 %v5377_v31, %v5984_v41  ;;  %v514_v33 = vmul.bf16 %v5393_v42, %v6014_v47 }
 0x11b   : > { %v553_v6 = vmul.bf16 %v5396_v43, %v6042_v52  ;;  %v1052_v44 = vunpack.c.l.bf16 %v1007_v21  ;;  %v1053_v8 = vunpack.c.h.bf16 %v1007_v21  ;;  %v1177_v34 = vsel %vm1109_vm3, %v1175_v27, %v1176_v35 }
 0x11c   : > { %v1179_v30 = vsel %vm1109_vm3, %v1176_v35, %v1178_v15  ;;  %v1054_v0 = vunpack.c.l.bf16 %v1008_v39  ;;  %v1248_v19 = vadd.f32 %v1177_v34, %v597_v23  ;;  %v530_v3 = vadd.bf16 %v514_v33, %v491_v62 }
 0x11d   : > { %v1249_v58 = vadd.f32 %v1179_v30, %v598_v45  ;;  %v1368_v7 = vrot.slane %v1052_v44, 2  ;;  %v1369_v56 = vrot.slane %v1053_v8, 2  ;;  %v638_v4 = vmul.bf16 %v5383_v36, %v5984_v41 }
 0x11e   : > { %v639_v63 = vmul.bf16 %v5383_v36, %v5986_v60  ;;  %v1371_v20 = vrot.slane %v1054_v0, 2  ;;  %v569_v22 = vadd.bf16 %v553_v6, %v530_v3  ;;  %v677_v57 = vmul.bf16 %v5405_v48, %v6014_v47 }
 0x11f   : > { %v678_v59 = vmul.bf16 %v5405_v48, %v6016_v32  ;;  %v1370_v46 = vsel %vm1302_vm4, %v1368_v7, %v1369_v56  ;;  %v748_v1 = vmul.bf16 %v5412_v51, %v6042_v52  ;;  %v749_v50 = vmul.bf16 %v5412_v51, %v6044_v37 }
 0x120   : > { %v1372_v55 = vsel %vm1302_vm4, %v1369_v56, %v1371_v20  ;;  %v1441_v2 = vadd.f32 %v1370_v46, %v1248_v19  ;;  %v599_v9 = vunpack.c.l.bf16 %v569_v22  ;;  %v867_v10 = vmul.bf16 %v5386_v38, %v5984_v41 }
 0x121   : > { %v1442_v11 = vadd.f32 %v1372_v55, %v1249_v58  ;;  %v709_v53 = vadd.bf16 %v677_v57, %v638_v4  ;;  %v710_v12 = vadd.bf16 %v678_v59, %v639_v63  ;;  %v868_v13 = vmul.bf16 %v5386_v38, %v5986_v60 }
 0x122   : > { %v906_v61 = vmul.bf16 %v5408_v49, %v6014_v47  ;;  %v907_v23 = vmul.bf16 %v5408_v49, %v6016_v32  ;;  %v977_v45 = vmul.bf16 %v5425_v5, %v6042_v52  ;;  %v978_v41 = vmul.bf16 %v5425_v5, %v6044_v37 }
 0x123   : > { %v1460_v18 = vpack.c.bf16 %v1442_v11, %v1441_v2  ;;  %v600_v24 = vunpack.c.h.bf16 %v569_v22  ;;  %v780_v40 = vadd.bf16 %v748_v1, %v709_v53  ;;  %v781_v28 = vadd.bf16 %v749_v50, %v710_v12 }
 0x124   : > { %v938_v60 = vadd.bf16 %v906_v61, %v867_v10  ;;  %v939_v25 = vadd.bf16 %v907_v23, %v868_v13  ;;  %v459_v14 = vpack.c.bf16 %v423_v54, %v422_v16  ;;  %v492_v26 = vmul.bf16 %v5377_v31, %v6014_v47 }
 0x125   : > { %4850 = vmatmul.mubr.msk.bf16.gmra.mxu1 %vm232_vm0, %v1460_v18  ;;  %v826_v27 = vunpack.c.l.bf16 %v780_v40  ;;  %v827_v21 = vunpack.c.h.bf16 %v780_v40  ;;  %v828_v35 = vunpack.c.l.bf16 %v781_v28  ;;  %v515_v15 = vmul.bf16 %v5393_v42, %v6042_v52 }
 0x126   : > { %v1009_v39 = vadd.bf16 %v977_v45, %v938_v60  ;;  %v1010_v62 = vadd.bf16 %v978_v41, %v939_v25  ;;  %v460_v33 = vpack.c.bf16 %v424_v29, %v424_v29  ;;  %v554_v6 = vmul.bf16 %v5396_v43, %v459_v14 }
 0x127   : > { %v1180_v44 = vrot.slane %v826_v27, 1  ;;  %v1181_v8 = vrot.slane %v827_v21, 1  ;;  %v1183_v34 = vrot.slane %v828_v35, 1  ;;  %v531_v30 = vadd.bf16 %v515_v15, %v492_v26 }
 0x128   : > { %v1055_v0 = vunpack.c.l.bf16 %v1009_v39  ;;  %v1056_v19 = vunpack.c.h.bf16 %v1009_v39  ;;  %v1057_v31 = vunpack.c.l.bf16 %v1010_v62  ;;  %v640_v58 = vmul.bf16 %v5383_v36, %v6014_v47 }
 0x129   : > { %v1182_v3 = vsel %vm1109_vm3, %v1180_v44, %v1181_v8  ;;  %v1184_v7 = vsel %vm1109_vm3, %v1181_v8, %v1183_v34  ;;  %v641_v42 = vmul.bf16 %v5383_v36, %v6016_v32  ;;  %v679_v43 = vmul.bf16 %v5405_v48, %v6042_v52  ;;  %v6117_v44 = vld [vmem:[#allocation6] ss:$0 sm:$0xff] }
 0x12a   : > { %v1250_v56 = vadd.f32 %v1182_v3, %v599_v9  ;;  %v1251_v4 = vadd.f32 %v1184_v7, %v600_v24  ;;  %v1373_v63 = vrot.slane %v1055_v0, 2  ;;  %v1374_v20 = vrot.slane %v1056_v19, 2 }
 0x12b   : > { %v1376_v22 = vrot.slane %v1057_v31, 2  ;;  %v570_v57 = vadd.bf16 %v554_v6, %v531_v30  ;;  %v680_v59 = vmul.bf16 %v5405_v48, %v6044_v37  ;;  %v711_v1 = vadd.bf16 %v679_v43, %v640_v58 }
 0x12c   : > { %v1375_v46 = vsel %vm1302_vm4, %v1373_v63, %v1374_v20  ;;  %v750_v50 = vmul.bf16 %v5412_v51, %v459_v14  ;;  %v751_v55 = vmul.bf16 %v5412_v51, %v460_v33  ;;  %v869_v9 = vmul.bf16 %v5386_v38, %v6014_v47 }
 0x12d   : > { %v1377_v36 = vsel %vm1302_vm4, %v1374_v20, %v1376_v22  ;;  %v1443_v2 = vadd.f32 %v1375_v46, %v1250_v56  ;;  %v712_v10 = vadd.bf16 %v680_v59, %v641_v42  ;;  %v870_v12 = vmul.bf16 %v5386_v38, %v6016_v32 }
 0x12e   : > { %v1444_v11 = vadd.f32 %v1377_v36, %v1251_v4  ;;  %v782_v53 = vadd.bf16 %v750_v50, %v711_v1  ;;  %v908_v48 = vmul.bf16 %v5408_v49, %v6042_v52  ;;  %v909_v16 = vmul.bf16 %v5408_v49, %v6044_v37  ;;  %v5000_v4 = vld [vmem:[%s7999_s2 + $0x10] sm:$0xff]   ;;  %v4696_v50 = vld [vmem:[%s7998_s1 + $0x9] sm:$0x1] }
 0x12f   : > { %v783_v13 = vadd.bf16 %v751_v55, %v712_v10  ;;  %v979_v51 = vmul.bf16 %v5425_v5, %v459_v14  ;;  %v980_v54 = vmul.bf16 %v5425_v5, %v460_v33  ;;  %v601_v41 = vunpack.c.l.bf16 %v570_v57  ;;  %4859 = vmatprep.subr.bf16.mxu1 %v5000_v4  ;;  %v4697_v55 = vld [vmem:[%s7998_s1 + $0xa] sm:$0x1]  ;;  %v4698_v10 = vld [vmem:[%s7998_s1 + $0xb] sm:$0x1] }
 0x130   : > { %v1461_v61 = vpack.c.bf16 %v1444_v11, %v1443_v2  ;;  %v829_v23 = vunpack.c.l.bf16 %v782_v53  ;;  %v830_v45 = vunpack.c.h.bf16 %v782_v53  ;;  %v940_v47 = vadd.bf16 %v908_v48, %v869_v9  ;;  %4860 = vmatpush3.bf16.msra.mxu1 %v5000_v4  ;;  %v4699_v9 = vld [vmem:[%s7998_s1 + $0xc] sm:$0x1]  ;;  %v4700_v11 = vld [vmem:[%s7998_s1 + $0xd] sm:$0x1] }
 0x131   : > { %v831_v18 = vunpack.c.l.bf16 %v783_v13  ;;  %v941_v24 = vadd.bf16 %v909_v16, %v870_v12  ;;  %v602_v38 = vunpack.c.h.bf16 %v570_v57  ;;  %v1860_v53 = vpack.i.b16 %v4696_v50, %v4696_v50 }
 0x132   : > { %4853 = vmatprep.mubr.msk.bf16.mxu1 %vm232_vm0, %v1461_v61  ;;  %v1011_v32 = vadd.bf16 %v979_v51, %v940_v47  ;;  %v1185_v52 = vrot.slane %v829_v23, 1  ;;  %v1186_v40 = vrot.slane %v830_v45, 1  ;;  %v1993_v12 = vpack.i.b16 %v4697_v55, %v4697_v55  ;;  %v4702_v45 = vld [vmem:[%s7998_s1 + $0xf] sm:$0x1]  ;;  %v4703_v47 = vld [vmem:[%s7998_s1 + $0x10] sm:$0x1] }
 0x133   : > { %v1012_v28 = vadd.bf16 %v980_v54, %v941_v24  ;;  %v1188_v29 = vrot.slane %v831_v18, 1  ;;  %v1883_v51 = vpack.i.b16 %v4699_v9, %v4699_v9  ;;  %v2032_v54 = vpack.i.b16 %v4700_v11, %v4700_v11 }
 0x134   : > { %v1058_v49 = vunpack.c.l.bf16 %v1011_v32  ;;  %v1059_v37 = vunpack.c.h.bf16 %v1011_v32  ;;  %v1187_v60 = vsel %vm1109_vm3, %v1185_v52, %v1186_v40  ;;  %v6163_v18 = vrot.slane %v1993_v12, %v5345_v17  ;;  %v1759_v52 = vld [vmem:[#allocation2] sm:$0xff] }
 0x135   : > { %v1060_v5 = vunpack.c.l.bf16 %v1012_v28  ;;  %v1189_v25 = vsel %vm1109_vm3, %v1186_v40, %v1188_v29  ;;  %v1252_v14 = vadd.f32 %v1187_v60, %v601_v41  ;;  %v6160_v41 = vrot.slane %v1860_v53, %v5345_v17  ;;  %v1760_v40 = vld [vmem:[#allocation2 + $0x8] sm:$0xff]  ;;  %v1761_v28 = vld [vmem:[#allocation2 + $0x10] sm:$0x3] }
 0x136   : > { %v1253_v26 = vadd.f32 %v1189_v25, %v602_v38  ;;  %v1378_v27 = vrot.slane %v1058_v49, 2  ;;  %v1379_v21 = vrot.slane %v1059_v37, 2  ;;  %v2222_v24 = vpack.i.b16 %v4698_v10, %v4698_v10 }
 0x137   : > { %v1381_v35 = vrot.slane %v1060_v5, 2  ;;  %v6168_v29 = vrot.slane %v1883_v51, %v5345_v17  ;;  %v1922_v49 = vpack.i.b16 %v4702_v45, %v4702_v45  ;;  %v1813_v25 = vpack.c.bf16 %v1760_v40, %v1759_v52 }
 0x138   : > { %v1380_v15 = vsel %vm1302_vm4, %v1378_v27, %v1379_v21  ;;  %v2103_v27 = vpack.i.b16 %v4703_v47, %v4703_v47 }
 0x139   : > { %v1382_v39 = vsel %vm1302_vm4, %v1379_v21, %v1381_v35  ;;  %v1445_v62 = vadd.f32 %v1380_v15, %v1252_v14  ;;  %v1814_v14 = vpack.c.bf16 %v1761_v28, %v1761_v28 }
 0x13a   : > { %v1446_v33 = vadd.f32 %v1382_v39, %v1253_v26  ;;  %v6171_v26 = vrot.slane %v2032_v54, %v5345_v17  ;;  %v4701_v39 = vld [vmem:[%s7998_s1 + $0xe] sm:$0x1] }
 0x13c   : > { %v1462_v6 = vpack.c.bf16 %v1446_v33, %v1445_v62  ;;  %v6182_v62 = vrot.slane %v1922_v49, %v5345_v17  ;;  %v4704_v33 = vld [vmem:[%s7998_s1 + $0x11] sm:$0x1] }
 0x13e   : > { %4854 = vmatmul.mubr.msk.bf16.gmra.mxu1 %vm232_vm0, %v1462_v6  ;;  %v1866_v6 = vmul.bf16 %v6160_v41, %v1813_v25 }
 0x149   : > { %v4827_v8 = vpop.f32.mrf.mxu0 }
 0x14a   : > { %v1577_v34 = vadd.f32 %v4827_v8, %v6117_v44  ;;  %v1999_v8 = vmul.bf16 %v6163_v18, %v1813_v25 }
 0x14b   : > { %v1568_v30 = vpop.f32.mrf.mxu0 }
 0x14c   : > { %v1697_v0 = vmax.f32 %v1577_v34, 0.0  ;;  %v1569_v19 = vadd.f32 %v6117_v44, %v1568_v30  ;;  %v2000_v34 = vmul.bf16 %v6163_v18, %v1814_v14  ;;  %v6191_v30 = vrot.slane %v2103_v27, %v5345_v17 }
 0x14d   : > { %v4828_v31 = vpop.f32.mrf.mxu0 }
 0x14e   : > { %1729 = vst.msk [vmem:[#allocation2 + $0x31] sm:$0xff] %vm232_vm0, %v1697_v0  ;;  %v1695_v58 = vmax.f32 %v1569_v19, 0.0  ;;  %v1580_v3 = vadd.f32 %v4828_v31, %v6117_v44 }
 0x14f   : > { %v1571_v7 = vpop.f32.mrf.mxu0 }
 0x150   : > { %1727 = vst.msk [vmem:[#allocation2 + $0x19] sm:$0xff] %vm232_vm0, %v1695_v58  ;;  %v1698_v42 = vmax.f32 %v1580_v3, 0.0  ;;  %v1572_v43 = vadd.f32 %v6117_v44, %v1571_v7 }
 0x152   : > { %1730 = vst.msk [vmem:[#allocation2 + $0x39] sm:$0xff] %vm232_vm0, %v1698_v42  ;;  %v1696_v56 = vmax.f32 %v1572_v43, 0.0  ;;  %v6207_v42 = vrot.slane %v2222_v24, %v5345_v17  ;;  %v2261_v43 = vpack.i.b16 %v4701_v39, %v4701_v39 }
 0x154   : > { %1728 = vst.msk [vmem:[#allocation2 + $0x21] sm:$0xff] %vm232_vm0, %v1696_v56 }
 0x155   : > { %v1765_v59 = vld [vmem:[#allocation2 + $0x30] sm:$0xff] }
 0x157   : > { %v1762_v37 = vld [vmem:[#allocation2 + $0x18] sm:$0xff] }
 0x159   : > { %v1766_v20 = vld [vmem:[#allocation2 + $0x38] sm:$0xff]  ;;  %v1767_v16 = vld [vmem:[#allocation2 + $0x40] sm:$0x3] }
 0x15a   : > { %v6138_v36 = vpack.c.bf16 %v1766_v20, %v1765_v59  ;;  %v6151_v23 = vpack.c.bf16 %v1767_v16, %v1767_v16  ;;  %v2332_v20 = vpack.i.b16 %v4704_v33, %v4704_v33  ;;  %v6212_v59 = vrot.slane %v2261_v43, %v5345_v17 }
 0x15b   : > { %v1763_v60 = vld [vmem:[#allocation2 + $0x20] sm:$0xff]  ;;  %v1764_v5 = vld [vmem:[#allocation2 + $0x28] sm:$0x3] }
 0x15c   : > { %v6174_v35 = vpack.c.bf16 %v1763_v60, %v1762_v37  ;;  %v6176_v15 = vpack.c.bf16 %v1764_v5, %v1764_v5  ;;  %v1928_v19 = vmul.bf16 %v6182_v62, %v6138_v36  ;;  %v2109_v3 = vmul.bf16 %v6191_v30, %v6138_v36 }
 0x15d   : > { %v2110_v7 = vmul.bf16 %v6191_v30, %v6151_v23  ;;  %v6215_v55 = vrot.slane %v2332_v20, %v5345_v17  ;;  %v1890_v12 = vmul.bf16 %v6168_v29, %v6138_v36 }
 0x15e   : > { %v1889_v0 = vmul.bf16 %v6168_v29, %v6174_v35  ;;  %v2038_v31 = vmul.bf16 %v6171_v26, %v6174_v35  ;;  %v2039_v58 = vmul.bf16 %v6171_v26, %v6176_v15  ;;  %v2267_v9 = vmul.bf16 %v6212_v59, %v6174_v35 }
 0x15f   : > { %v2268_v11 = vmul.bf16 %v6212_v59, %v6176_v15  ;;  %v1867_v53 = vmul.bf16 %v6160_v41, %v6174_v35  ;;  %v2001_v51 = vmul.bf16 %v6163_v18, %v6174_v35  ;;  %v2338_v40 = vmul.bf16 %v6215_v55, %v6138_v36 }
 0x160   : > { %v1905_v56 = vadd.bf16 %v1889_v0, %v1866_v6  ;;  %v2070_v4 = vadd.bf16 %v2038_v31, %v1999_v8  ;;  %v2339_v28 = vmul.bf16 %v6215_v55, %v6151_v23  ;;  %v2002_v8 = vmul.bf16 %v6163_v18, %v6176_v15 }
 0x162   : > { %v4831_v63 = vpop.f32.mrf.mxu0 }
 0x163   : > { %v1593_v22 = vadd.f32 %v4831_v63, %v6117_v44  ;;  %v2071_v63 = vadd.bf16 %v2039_v58, %v2000_v34  ;;  %v2040_v34 = vmul.bf16 %v6171_v26, %v6138_v36  ;;  %v2041_v58 = vmul.bf16 %v6171_v26, %v6151_v23 }
 0x164   : > { %v1584_v57 = vpop.f32.mrf.mxu0 }
 0x165   : > { %v1701_v46 = vmax.f32 %v1593_v22, 0.0  ;;  %v1585_v1 = vadd.f32 %v6117_v44, %v1584_v57  ;;  %v2228_v22 = vmul.bf16 %v6207_v42, %v1813_v25  ;;  %v2229_v57 = vmul.bf16 %v6207_v42, %v1814_v14 }
 0x166   : > { %v4832_v2 = vpop.f32.mrf.mxu0  ;;  %v2142_v50 = vadd.bf16 %v2110_v7, %v2071_v63 }
 0x167   : > { %1733 = vst.msk [vmem:[#allocation2 + $0x61] sm:$0xff] %vm232_vm0, %v1701_v46  ;;  %v1699_v48 = vmax.f32 %v1585_v1, 0.0  ;;  %v1596_v13 = vadd.f32 %v4832_v2, %v6117_v44  ;;  %v1944_v46 = vadd.bf16 %v1928_v19, %v1905_v56  ;;  %v2141_v1 = vadd.bf16 %v2109_v3, %v2070_v4 }
 0x168   : > { %v1587_v61 = vpop.f32.mrf.mxu0  ;;  %v2175_v47 = vunpack.c.l.bf16 %v2142_v50  ;;  %v2299_v24 = vadd.bf16 %v2267_v9, %v2228_v22  ;;  %v2072_v56 = vadd.bf16 %v2040_v34, %v2001_v51  ;;  %v2230_v50 = vmul.bf16 %v6207_v42, %v6174_v35 }
 0x169   : > { %1731 = vst.msk [vmem:[#allocation2 + $0x49] sm:$0xff] %vm232_vm0, %v1699_v48  ;;  %v1702_v38 = vmax.f32 %v1596_v13, 0.0  ;;  %v1588_v32 = vadd.f32 %v6117_v44, %v1587_v61  ;;  %v1960_v13 = vunpack.c.l.bf16 %v1944_v46  ;;  %v2173_v16 = vunpack.c.l.bf16 %v2141_v1 }
 0x16a   : > { %v2174_v45 = vunpack.c.h.bf16 %v2141_v1  ;;  %v1961_v37 = vunpack.c.h.bf16 %v1944_v46  ;;  %v2501_v5 = vrot.slane %v2175_v47, 1  ;;  %v2370_v14 = vadd.bf16 %v2338_v40, %v2299_v24 }
 0x16b   : > { %1734 = vst.msk [vmem:[#allocation2 + $0x69] sm:$0xff] %vm232_vm0, %v1702_v38  ;;  %v1700_v21 = vmax.f32 %v1588_v32, 0.0  ;;  %v2300_v38 = vadd.bf16 %v2268_v11, %v2229_v57  ;;  %v2498_v49 = vrot.slane %v2173_v16, 1  ;;  %v2073_v46 = vadd.bf16 %v2041_v58, %v2002_v8 }
 0x16c   : > { %v2499_v60 = vrot.slane %v2174_v45, 1  ;;  %v2402_v0 = vunpack.c.l.bf16 %v2370_v14  ;;  %v2403_v19 = vunpack.c.h.bf16 %v2370_v14  ;;  %v2231_v11 = vmul.bf16 %v6207_v42, %v6176_v15 }
 0x16d   : > { %1732 = vst.msk [vmem:[#allocation2 + $0x51] sm:$0xff] %vm232_vm0, %v1700_v21  ;;  %v2371_v27 = vadd.bf16 %v2339_v28, %v2300_v38  ;;  %v1906_v21 = vadd.bf16 %v1890_v12, %v1867_v53  ;;  %v2269_v16 = vmul.bf16 %v6212_v59, %v6138_v36 }
 0x16e   : > { %v1771_v2 = vld [vmem:[#allocation2 + $0x60] sm:$0xff]  ;;  %v2500_v33 = vsel %vm1109_vm3, %v2498_v49, %v2499_v60  ;;  %v2502_v6 = vsel %vm1109_vm3, %v2499_v60, %v2501_v5  ;;  %v2690_v4 = vrot.slane %v2402_v0, 2  ;;  %v2691_v63 = vrot.slane %v2403_v19, 2 }
 0x16f   : > { %v2404_v31 = vunpack.c.l.bf16 %v2371_v27  ;;  %v2610_v3 = vadd.f32 %v2500_v33, %v1960_v13  ;;  %v2611_v7 = vadd.f32 %v2502_v6, %v1961_v37  ;;  %v2301_v38 = vadd.bf16 %v2269_v16, %v2230_v50 }
 0x170   : > { %v1768_v54 = vld [vmem:[#allocation2 + $0x48] sm:$0xff]  ;;  %v2003_v33 = vmul.bf16 %v6163_v18, %v6138_v36 }
 0x171   : > { %v2693_v20 = vrot.slane %v2404_v31, 2 }
 0x172   : > { %v1772_v10 = vld [vmem:[#allocation2 + $0x68] sm:$0xff]  ;;  %v1773_v45 = vld [vmem:[#allocation2 + $0x70] sm:$0x3] }
 0x173   : > { %v6225_v48 = vpack.c.bf16 %v1772_v10, %v1771_v2  ;;  %v2692_v2 = vsel %vm1302_vm4, %v2690_v4, %v2691_v63  ;;  %v2694_v10 = vsel %vm1302_vm4, %v2691_v63, %v2693_v20  ;;  %v6266_v5 = vpack.c.bf16 %v1773_v45, %v1773_v45 }
 0x174   : > { %v1769_v61 = vld [vmem:[#allocation2 + $0x50] sm:$0xff]  ;;  %v1770_v32 = vld [vmem:[#allocation2 + $0x58] sm:$0x3]  ;;  %v2802_v53 = vadd.f32 %v2692_v2, %v2610_v3  ;;  %v2803_v12 = vadd.f32 %v2694_v10, %v2611_v7  ;;  %v2004_v3 = vmul.bf16 %v6163_v18, %v6151_v23 }
 0x175   : > { %v6229_v52 = vpack.c.bf16 %v1769_v61, %v1768_v54  ;;  %v6235_v25 = vpack.c.bf16 %v1770_v32, %v1770_v32  ;;  %v2270_v61 = vmul.bf16 %v6212_v59, %v6151_v23  ;;  %v1930_v20 = vmul.bf16 %v6182_v62, %v6225_v48 }
 0x176   : > { %v2834_v47 = vpack.c.bf16 %v2803_v12, %v2802_v53  ;;  %v2114_v50 = vmul.bf16 %v6191_v30, %v6266_v5 }
 0x177   : > { %v1929_v39 = vmul.bf16 %v6182_v62, %v6229_v52  ;;  %v2111_v22 = vmul.bf16 %v6191_v30, %v6229_v52  ;;  %v2112_v1 = vmul.bf16 %v6191_v30, %v6235_v25  ;;  %v2340_v35 = vmul.bf16 %v6215_v55, %v6229_v52 }
 0x178   : > { %v2341_v15 = vmul.bf16 %v6215_v55, %v6235_v25  ;;  %v2302_v40 = vadd.bf16 %v2270_v61, %v2231_v11  ;;  %4861 = vmatprep.mubr.msk.bf16.mxu1 %vm232_vm0, %v2834_v47  ;;  %v1891_v14 = vmul.bf16 %v6168_v29, %v6229_v52  ;;  %v2043_v4 = vmul.bf16 %v6171_v26, %v6235_v25 }
 0x179   : > { %v1945_v43 = vadd.bf16 %v1929_v39, %v1906_v21  ;;  %v2143_v9 = vadd.bf16 %v2111_v22, %v2072_v56  ;;  %v2144_v13 = vadd.bf16 %v2112_v1, %v2073_v46  ;;  %v2372_v37 = vadd.bf16 %v2340_v35, %v2301_v38 }
 0x17a   : > { %v2373_v27 = vadd.bf16 %v2341_v15, %v2302_v40  ;;  %v1868_v39 = vmul.bf16 %v6160_v41, %v6138_v36  ;;  %v2042_v56 = vmul.bf16 %v6171_v26, %v6229_v52  ;;  %v2113_v22 = vmul.bf16 %v6191_v30, %v6225_v48 }
 0x17b   : > { %v1962_v57 = vunpack.c.l.bf16 %v1945_v43  ;;  %v2176_v51 = vunpack.c.l.bf16 %v2143_v9  ;;  %v2177_v54 = vunpack.c.h.bf16 %v2143_v9  ;;  %v2178_v24 = vunpack.c.l.bf16 %v2144_v13 }
 0x17c   : > { %v1963_v32 = vunpack.c.h.bf16 %v1945_v43  ;;  %v2405_v6 = vunpack.c.l.bf16 %v2372_v37  ;;  %v2406_v8 = vunpack.c.h.bf16 %v2372_v37  ;;  %v2407_v19 = vunpack.c.l.bf16 %v2373_v27 }
 0x17d   : > { %v2503_v28 = vrot.slane %v2176_v51, 1  ;;  %v2504_v49 = vrot.slane %v2177_v54, 1  ;;  %v2506_v60 = vrot.slane %v2178_v24, 1  ;;  %v1907_v58 = vadd.bf16 %v1891_v14, %v1868_v39 }
 0x17e   : > { %v2695_v7 = vrot.slane %v2405_v6, 2  ;;  %v2696_v43 = vrot.slane %v2406_v8, 2  ;;  %v2698_v63 = vrot.slane %v2407_v19, 2  ;;  %v2074_v46 = vadd.bf16 %v2042_v56, %v2003_v33 }
 0x17f   : > { %v2505_v21 = vsel %vm1109_vm3, %v2503_v28, %v2504_v49  ;;  %v2507_v34 = vsel %vm1109_vm3, %v2504_v49, %v2506_v60  ;;  %v2075_v1 = vadd.bf16 %v2043_v4, %v2004_v3  ;;  %v1946_v9 = vadd.bf16 %v1930_v20, %v1907_v58 }
 0x180   : > { %v2612_v0 = vadd.f32 %v2505_v21, %v1962_v57  ;;  %v2613_v31 = vadd.f32 %v2507_v34, %v1963_v32  ;;  %v2697_v57 = vsel %vm1302_vm4, %v2695_v7, %v2696_v43  ;;  %v2699_v2 = vsel %vm1302_vm4, %v2696_v43, %v2698_v63 }
 0x181   : > { %v2145_v53 = vadd.bf16 %v2113_v22, %v2074_v46  ;;  %v2146_v12 = vadd.bf16 %v2114_v50, %v2075_v1  ;;  %v2232_v13 = vmul.bf16 %v6207_v42, %v6138_v36  ;;  %v2233_v51 = vmul.bf16 %v6207_v42, %v6151_v23 }
 0x182   : > { %v2804_v10 = vadd.f32 %v2697_v57, %v2612_v0  ;;  %v2805_v11 = vadd.f32 %v2699_v2, %v2613_v31  ;;  %v2271_v54 = vmul.bf16 %v6212_v59, %v6229_v52  ;;  %v2272_v61 = vmul.bf16 %v6212_v59, %v6235_v25 }
 0x183   : > { %v2342_v35 = vmul.bf16 %v6215_v55, %v6225_v48  ;;  %v2179_v24 = vunpack.c.l.bf16 %v2145_v53  ;;  %v2180_v38 = vunpack.c.h.bf16 %v2145_v53  ;;  %v2181_v36 = vunpack.c.l.bf16 %v2146_v12 }
 0x184   : > { %v2835_v47 = vpack.c.bf16 %v2805_v11, %v2804_v10  ;;  %v2303_v32 = vadd.bf16 %v2271_v54, %v2232_v13  ;;  %v2304_v40 = vadd.bf16 %v2272_v61, %v2233_v51  ;;  %v2343_v23 = vmul.bf16 %v6215_v55, %v6266_v5 }
 0x185   : > { %v2508_v37 = vrot.slane %v2179_v24, 1  ;;  %v2509_v60 = vrot.slane %v2180_v38, 1  ;;  %v1964_v27 = vunpack.c.l.bf16 %v1946_v9  ;;  %v2511_v33 = vrot.slane %v2181_v36, 1 }
 0x186   : > { %4862 = vmatmul.mubr.msk.bf16.vlgmr.msra.gmra.mxu1 %vm232_vm0, %v2835_v47  ;;  %v2374_v21 = vadd.bf16 %v2342_v35, %v2303_v32  ;;  %v2375_v39 = vadd.bf16 %v2343_v23, %v2304_v40  ;;  %v1965_v34 = vunpack.c.h.bf16 %v1946_v9  ;;  %v1869_v38 = vmul.bf16 %v6160_v41, %v6229_v52 }
 0x187   : > { %v2510_v0 = vsel %vm1109_vm3, %v2508_v37, %v2509_v60  ;;  %v2512_v7 = vsel %vm1109_vm3, %v2509_v60, %v2511_v33  ;;  %v1892_v40 = vmul.bf16 %v6168_v29, %v6225_v48  ;;  %v2006_v23 = vmul.bf16 %v6163_v18, %v6235_v25 }
 0x188   : > { %v2408_v31 = vunpack.c.l.bf16 %v2374_v21  ;;  %v2409_v58 = vunpack.c.h.bf16 %v2374_v21  ;;  %v2410_v3 = vunpack.c.l.bf16 %v2375_v39  ;;  %v2614_v4 = vadd.f32 %v2510_v0, %v1964_v27 }
 0x189   : > { %v2615_v63 = vadd.f32 %v2512_v7, %v1965_v34  ;;  %v2234_v37 = vmul.bf16 %v6207_v42, %v6229_v52  ;;  %v1908_v60 = vadd.bf16 %v1892_v40, %v1869_v38  ;;  %v2235_v27 = vmul.bf16 %v6207_v42, %v6235_v25 }
 0x18a   : > { %v2700_v20 = vrot.slane %v2408_v31, 2  ;;  %v2701_v22 = vrot.slane %v2409_v58, 2  ;;  %v2703_v57 = vrot.slane %v2410_v3, 2  ;;  %v1870_v31 = vmul.bf16 %v6160_v41, %v6225_v48 }
 0x18b   : > { %v4843_v16 = vpop.f32.mrf.mxu1  ;;  %v2007_v25 = vmul.bf16 %v6163_v18, %v6225_v48 }
 0x18c   : > { %v1641_v45 = vadd.f32 %v4843_v16, %v6117_v44  ;;  %v2702_v1 = vsel %vm1302_vm4, %v2700_v20, %v2701_v22  ;;  %v2704_v50 = vsel %vm1302_vm4, %v2701_v22, %v2703_v57 }
 0x18d   : > { %v1632_v15 = vpop.f32.mrf.mxu1  ;;  %v2806_v2 = vadd.f32 %v2702_v1, %v2614_v4  ;;  %v2807_v10 = vadd.f32 %v2704_v50, %v2615_v63  ;;  %v2237_v4 = vmul.bf16 %v6207_v42, %v6266_v5 }
 0x18e   : > { %v1713_v28 = vmax.f32 %v1641_v45, 0.0  ;;  %v1633_v49 = vadd.f32 %v6117_v44, %v1632_v15  ;;  %v2005_v15 = vmul.bf16 %v6163_v18, %v6229_v52  ;;  %v2274_v52 = vmul.bf16 %v6212_v59, %v6266_v5 }
 0x18f   : > { %v4844_v14 = vpop.f32.mrf.mxu1  ;;  %v2836_v9 = vpack.c.bf16 %v2807_v10, %v2806_v2 }
 0x190   : > { %1745 = vst.msk [vmem:[#allocation2 + $0xf1] sm:$0xff] %vm232_vm0, %v1713_v28  ;;  %v1711_v6 = vmax.f32 %v1633_v49, 0.0  ;;  %v1644_v8 = vadd.f32 %v4844_v14, %v6117_v44  ;;  %v2044_v49 = vmul.bf16 %v6171_v26, %v6225_v48  ;;  %v2045_v14 = vmul.bf16 %v6171_v26, %v6266_v5 }
 0x191   : > { %v1635_v19 = vpop.f32.mrf.mxu1  ;;  %4865 = vmatprep.mubr.msk.bf16.mxu1 %vm232_vm0, %v2836_v9  ;;  %v2306_v22 = vadd.bf16 %v2274_v52, %v2235_v27 }
 0x192   : > { %1743 = vst.msk [vmem:[#allocation2 + $0xd9] sm:$0xff] %vm232_vm0, %v1711_v6  ;;  %v1714_v43 = vmax.f32 %v1644_v8, 0.0  ;;  %v1636_v56 = vadd.f32 %v6117_v44, %v1635_v19  ;;  %v2076_v6 = vadd.bf16 %v2044_v49, %v2005_v15  ;;  %v2273_v8 = vmul.bf16 %v6212_v59, %v6225_v48 }
 0x193   : > { %v2077_v19 = vadd.bf16 %v2045_v14, %v2006_v23 }
 0x194   : > { %1746 = vst.msk [vmem:[#allocation2 + $0xf9] sm:$0xff] %vm232_vm0, %v1714_v43  ;;  %v1712_v46 = vmax.f32 %v1636_v56, 0.0  ;;  %v2305_v7 = vadd.bf16 %v2273_v8, %v2234_v37  ;;  %v2008_v43 = vmul.bf16 %v6163_v18, %v6266_v5  ;;  %v2236_v56 = vmul.bf16 %v6207_v42, %v6225_v48 }
 0x196   : > { %1744 = vst.msk [vmem:[#allocation2 + $0xe1] sm:$0xff] %vm232_vm0, %v1712_v46 }
 0x197   : > { %v1789_v36 = vld [vmem:[#allocation2 + $0xf0] sm:$0xff] }
 0x199   : > { %v1786_v21 = vld [vmem:[#allocation2 + $0xd8] sm:$0xff] }
 0x19b   : > { %v4835_v11 = vpop.f32.mrf.mxu0  ;;  %v1790_v32 = vld [vmem:[#allocation2 + $0xf8] sm:$0xff]  ;;  %v1791_v28 = vld [vmem:[#allocation2 + $0x100] sm:$0x3] }
 0x19c   : > { %v1609_v53 = vadd.f32 %v4835_v11, %v6117_v44  ;;  %v6340_v39 = vpack.c.bf16 %v1790_v32, %v1789_v36  ;;  %v6344_v0 = vpack.c.bf16 %v1791_v28, %v1791_v28 }
 0x19d   : > { %v1600_v12 = vpop.f32.mrf.mxu0  ;;  %v1787_v33 = vld [vmem:[#allocation2 + $0xe0] sm:$0xff]  ;;  %v1788_v34 = vld [vmem:[#allocation2 + $0xe8] sm:$0x3] }
 0x19e   : > { %v1705_v13 = vmax.f32 %v1609_v53, 0.0  ;;  %v1601_v16 = vadd.f32 %v6117_v44, %v1600_v12  ;;  %v6360_v20 = vpack.c.bf16 %v1787_v33, %v1786_v21  ;;  %v6362_v46 = vpack.c.bf16 %v1788_v34, %v1788_v34 }
 0x19f   : > { %v4836_v51 = vpop.f32.mrf.mxu0 }
 0x1a0   : > { %1737 = vst.msk [vmem:[#allocation2 + $0x91] sm:$0xff] %vm232_vm0, %v1705_v13  ;;  %v1703_v54 = vmax.f32 %v1601_v16, 0.0  ;;  %v1612_v61 = vadd.f32 %v4836_v51, %v6117_v44 }
 0x1a1   : > { %v1603_v35 = vpop.f32.mrf.mxu0 }
 0x1a2   : > { %1735 = vst.msk [vmem:[#allocation2 + $0x79] sm:$0xff] %vm232_vm0, %v1703_v54  ;;  %v1706_v45 = vmax.f32 %v1612_v61, 0.0  ;;  %v1604_v47 = vadd.f32 %v6117_v44, %v1603_v35 }
 0x1a4   : > { %1738 = vst.msk [vmem:[#allocation2 + $0x99] sm:$0xff] %vm232_vm0, %v1706_v45  ;;  %v1704_v24 = vmax.f32 %v1604_v47, 0.0 }
 0x1a6   : > { %1736 = vst.msk [vmem:[#allocation2 + $0x81] sm:$0xff] %vm232_vm0, %v1704_v24 }
 0x1a7   : > { %v1777_v58 = vld [vmem:[#allocation2 + $0x90] sm:$0xff] }
 0x1a9   : > { %v1774_v1 = vld [vmem:[#allocation2 + $0x78] sm:$0xff] }
 0x1ab   : > { %v1778_v3 = vld [vmem:[#allocation2 + $0x98] sm:$0xff]  ;;  %v1779_v57 = vld [vmem:[#allocation2 + $0xa0] sm:$0x3] }
 0x1ac   : > { %v6358_v63 = vpack.c.bf16 %v1778_v3, %v1777_v58  ;;  %v6380_v54 = vpack.c.bf16 %v1779_v57, %v1779_v57 }
 0x1ad   : > { %v1775_v50 = vld [vmem:[#allocation2 + $0x80] sm:$0xff]  ;;  %v1776_v2 = vld [vmem:[#allocation2 + $0x88] sm:$0x3] }
 0x1ae   : > { %v6372_v12 = vpack.c.bf16 %v1775_v50, %v1774_v1  ;;  %v6374_v13 = vpack.c.bf16 %v1776_v2, %v1776_v2  ;;  %v1932_v61 = vmul.bf16 %v6182_v62, %v6358_v63  ;;  %v2117_v33 = vmul.bf16 %v6191_v30, %v6358_v63 }
 0x1af   : > { %v2118_v8 = vmul.bf16 %v6191_v30, %v6380_v54 }
 0x1b0   : > { %v1931_v47 = vmul.bf16 %v6182_v62, %v6372_v12  ;;  %v2115_v24 = vmul.bf16 %v6191_v30, %v6372_v12  ;;  %v2116_v38 = vmul.bf16 %v6191_v30, %v6374_v13  ;;  %v2344_v15 = vmul.bf16 %v6215_v55, %v6372_v12 }
 0x1b1   : > { %v2345_v36 = vmul.bf16 %v6215_v55, %v6374_v13  ;;  %v1893_v32 = vmul.bf16 %v6168_v29, %v6372_v12  ;;  %v2046_v40 = vmul.bf16 %v6171_v26, %v6372_v12  ;;  %v2047_v23 = vmul.bf16 %v6171_v26, %v6374_v13 }
 0x1b2   : > { %v1947_v28 = vadd.bf16 %v1931_v47, %v1908_v60  ;;  %v2147_v49 = vadd.bf16 %v2115_v24, %v2076_v6  ;;  %v2148_v37 = vadd.bf16 %v2116_v38, %v2077_v19  ;;  %v2376_v14 = vadd.bf16 %v2344_v15, %v2305_v7 }
 0x1b3   : > { %v2377_v27 = vadd.bf16 %v2345_v36, %v2306_v22  ;;  %v2078_v21 = vadd.bf16 %v2046_v40, %v2007_v25  ;;  %v1909_v58 = vadd.bf16 %v1893_v32, %v1870_v31  ;;  %v2079_v3 = vadd.bf16 %v2047_v23, %v2008_v43 }
 0x1b4   : > { %v2182_v34 = vunpack.c.l.bf16 %v2147_v49  ;;  %v2183_v52 = vunpack.c.h.bf16 %v2147_v49  ;;  %v2184_v57 = vunpack.c.l.bf16 %v2148_v37  ;;  %v2411_v1 = vunpack.c.l.bf16 %v2376_v14 }
 0x1b5   : > { %v2412_v50 = vunpack.c.h.bf16 %v2376_v14  ;;  %v2413_v2 = vunpack.c.l.bf16 %v2377_v27  ;;  %v1966_v60 = vunpack.c.l.bf16 %v1947_v28  ;;  %v2149_v7 = vadd.bf16 %v2117_v33, %v2078_v21 }
 0x1b6   : > { %v2513_v6 = vrot.slane %v2182_v34, 1  ;;  %v2514_v19 = vrot.slane %v2183_v52, 1  ;;  %v2516_v22 = vrot.slane %v2184_v57, 1  ;;  %v2705_v25 = vrot.slane %v2411_v1, 2 }
 0x1b7   : > { %v2706_v47 = vrot.slane %v2412_v50, 2  ;;  %v2708_v24 = vrot.slane %v2413_v2, 2  ;;  %v1967_v38 = vunpack.c.h.bf16 %v1947_v28  ;;  %v2150_v36 = vadd.bf16 %v2118_v8, %v2079_v3 }
 0x1b8   : > { %v2515_v15 = vsel %vm1109_vm3, %v2513_v6, %v2514_v19  ;;  %v2517_v43 = vsel %vm1109_vm3, %v2514_v19, %v2516_v22  ;;  %v1948_v23 = vadd.bf16 %v1932_v61, %v1909_v58  ;;  %v2185_v37 = vunpack.c.l.bf16 %v2149_v7 }
 0x1b9   : > { %v2616_v32 = vadd.f32 %v2515_v15, %v1966_v60  ;;  %v2707_v40 = vsel %vm1302_vm4, %v2705_v25, %v2706_v47  ;;  %v2617_v49 = vadd.f32 %v2517_v43, %v1967_v38  ;;  %v2186_v14 = vunpack.c.h.bf16 %v2149_v7 }
 0x1ba   : > { %v2187_v27 = vunpack.c.l.bf16 %v2150_v36  ;;  %v2709_v21 = vsel %vm1302_vm4, %v2706_v47, %v2708_v24  ;;  %v2275_v28 = vmul.bf16 %v6212_v59, %v6372_v12  ;;  %v2276_v8 = vmul.bf16 %v6212_v59, %v6374_v13 }
 0x1bb   : > { %v2808_v33 = vadd.f32 %v2707_v40, %v2616_v32  ;;  %v2809_v34 = vadd.f32 %v2709_v21, %v2617_v49  ;;  %v2518_v52 = vrot.slane %v2185_v37, 1  ;;  %v2519_v3 = vrot.slane %v2186_v14, 1 }
 0x1bc   : > { %v2521_v57 = vrot.slane %v2187_v27, 1  ;;  %v2307_v61 = vadd.bf16 %v2275_v28, %v2236_v56  ;;  %v2308_v58 = vadd.bf16 %v2276_v8, %v2237_v4  ;;  %v2346_v1 = vmul.bf16 %v6215_v55, %v6358_v63 }
 0x1bd   : > { %v2347_v50 = vmul.bf16 %v6215_v55, %v6380_v54  ;;  %v2837_v2 = vpack.c.bf16 %v2809_v34, %v2808_v33  ;;  %v2520_v5 = vsel %vm1109_vm3, %v2518_v52, %v2519_v3  ;;  %v1968_v7 = vunpack.c.l.bf16 %v1948_v23 }
 0x1be   : > { %v2378_v56 = vadd.bf16 %v2346_v1, %v2307_v61  ;;  %v2522_v4 = vsel %vm1109_vm3, %v2519_v3, %v2521_v57  ;;  %v1969_v22 = vunpack.c.h.bf16 %v1948_v23  ;;  %v1875_v47 = vmul.bf16 %v6160_v41, %v6360_v20 }
 0x1bf   : > { %v2379_v19 = vadd.bf16 %v2347_v50, %v2308_v58  ;;  %4866 = vmatmul.mubr.msk.bf16.gmra.mxu1 %vm232_vm0, %v2837_v2  ;;  %v1898_v43 = vmul.bf16 %v6168_v29, %v6340_v39  ;;  %v2618_v40 = vadd.f32 %v2520_v5, %v1968_v7  ;;  %v2017_v23 = vmul.bf16 %v6163_v18, %v6360_v20 }
 0x1c0   : > { %v2414_v38 = vunpack.c.l.bf16 %v2378_v56  ;;  %v2415_v15 = vunpack.c.h.bf16 %v2378_v56  ;;  %v2619_v49 = vadd.f32 %v2522_v4, %v1969_v22  ;;  %v2018_v33 = vmul.bf16 %v6163_v18, %v6362_v46 }
 0x1c1   : > { %v4847_v24 = vpop.f32.mrf.mxu1  ;;  %v2416_v36 = vunpack.c.l.bf16 %v2379_v19  ;;  %v2056_v34 = vmul.bf16 %v6171_v26, %v6340_v39  ;;  %v2057_v52 = vmul.bf16 %v6171_v26, %v6344_v0  ;;  %v2246_v58 = vmul.bf16 %v6207_v42, %v6360_v20 }
 0x1c2   : > { %v1657_v32 = vadd.f32 %v4847_v24, %v6117_v44  ;;  %v2710_v14 = vrot.slane %v2414_v38, 2  ;;  %v2711_v27 = vrot.slane %v2415_v15, 2  ;;  %v2285_v1 = vmul.bf16 %v6212_v59, %v6340_v39 }
 0x1c3   : > { %v1648_v37 = vpop.f32.mrf.mxu1  ;;  %v2713_v21 = vrot.slane %v2416_v36, 2  ;;  %v2247_v22 = vmul.bf16 %v6207_v42, %v6362_v46  ;;  %v2286_v24 = vmul.bf16 %v6212_v59, %v6344_v0 }
 0x1c4   : > { %v1717_v28 = vmax.f32 %v1657_v32, 0.0  ;;  %v1649_v8 = vadd.f32 %v6117_v44, %v1648_v37  ;;  %v2712_v57 = vsel %vm1302_vm4, %v2710_v14, %v2711_v27  ;;  %v6471_v32 = vadd.bf16 %v1898_v43, %v1875_v47 }
 0x1c5   : > { %v4848_v3 = vpop.f32.mrf.mxu1  ;;  %v2714_v61 = vsel %vm1302_vm4, %v2711_v27, %v2713_v21  ;;  %v2810_v56 = vadd.f32 %v2712_v57, %v2618_v40  ;;  %v1871_v40 = vmul.bf16 %v6160_v41, %v6372_v12  ;;  %v6477_v37 = vadd.bf16 %v2057_v52, %v2018_v33 }
 0x1c6   : > { %1749 = vst.msk [vmem:[#allocation2 + $0x121] sm:$0xff] %vm232_vm0, %v1717_v28  ;;  %v1715_v50 = vmax.f32 %v1649_v8, 0.0  ;;  %v1660_v2 = vadd.f32 %v4848_v3, %v6117_v44  ;;  %v2811_v19 = vadd.f32 %v2714_v61, %v2619_v49  ;;  %v6475_v49 = vadd.bf16 %v2056_v34, %v2017_v23 }
 0x1c7   : > { %v1651_v5 = vpop.f32.mrf.mxu1  ;;  %v1876_v14 = vmul.bf16 %v6160_v41, %v6340_v39  ;;  %v6483_v21 = vadd.bf16 %v2285_v1, %v2246_v58  ;;  %v2019_v47 = vmul.bf16 %v6163_v18, %v6340_v39  ;;  %v2020_v43 = vmul.bf16 %v6163_v18, %v6344_v0  ;;  %v1810_v58 = vld [vmem:[#allocation2 + $0x198] sm:$0xff]  ;;  %v1811_v1 = vld [vmem:[#allocation2 + $0x1a0] sm:$0xff] }
 0x1c8   : > { %1747 = vst.msk [vmem:[#allocation2 + $0x109] sm:$0xff] %vm232_vm0, %v1715_v50  ;;  %v1718_v38 = vmax.f32 %v1660_v2, 0.0  ;;  %v1652_v15 = vadd.f32 %v6117_v44, %v1651_v5  ;;  %v2838_v36 = vpack.c.bf16 %v2811_v19, %v2810_v56  ;;  %v1894_v33 = vmul.bf16 %v6168_v29, %v6358_v63  ;;  %v1812_v50 = vld [vmem:[#allocation2 + $0x1a8] sm:$0x3] }
 0x1c9   : > { %v2009_v28 = vmul.bf16 %v6163_v18, %v6372_v12  ;;  %v2010_v8 = vmul.bf16 %v6163_v18, %v6374_v13  ;;  %v6495_v34 = vadd.bf16 %v2286_v24, %v2247_v22  ;;  %v2238_v3 = vmul.bf16 %v6207_v42, %v6372_v12 }
 0x1ca   : > { %1750 = vst.msk [vmem:[#allocation2 + $0x129] sm:$0xff] %vm232_vm0, %v1718_v38  ;;  %v1716_v27 = vmax.f32 %v1652_v15, 0.0  ;;  %4869 = vmatprep.mubr.msk.bf16.mxu1 %vm232_vm0, %v2838_v36  ;;  %v2239_v57 = vmul.bf16 %v6207_v42, %v6374_v13  ;;  %v6505_v56 = vadd.bf16 %v1894_v33, %v1871_v40  ;;  %v2048_v19 = vmul.bf16 %v6171_v26, %v6358_v63 }
 0x1cb   : > { %v4839_v23 = vpop.f32.mrf.mxu0  ;;  %v2049_v5 = vmul.bf16 %v6171_v26, %v6380_v54  ;;  %v2277_v24 = vmul.bf16 %v6212_v59, %v6358_v63  ;;  %v2278_v38 = vmul.bf16 %v6212_v59, %v6380_v54  ;;  %v6524_v33 = vpack.c.bf16 %v1812_v50, %v1812_v50 }
 0x1cc   : > { %v1625_v52 = vadd.f32 %v4839_v23, %v6117_v44  ;;  %1748 = vst.msk [vmem:[#allocation2 + $0x111] sm:$0xff] %vm232_vm0, %v1716_v27  ;;  %v6518_v40 = vadd.bf16 %v2048_v19, %v2009_v28  ;;  %v6522_v23 = vpack.c.bf16 %v1811_v1, %v1810_v58  ;;  %v1872_v28 = vmul.bf16 %v6160_v41, %v6358_v63 }
 0x1cd   : > { %v1616_v2 = vpop.f32.mrf.mxu0  ;;  %v1795_v15 = vld [vmem:[#allocation2 + $0x120] sm:$0xff]  ;;  %v6520_v27 = vadd.bf16 %v2049_v5, %v2010_v8  ;;  %8026 = vst [vmem:[#allocation14_spill] sm:$0xff] %v6524_v33  ;;  %v6528_v12 = vadd.bf16 %v2277_v24, %v2238_v3  ;;  %v6530_v61 = vadd.bf16 %v2278_v38, %v2239_v57  ;;  %v2011_v8 = vmul.bf16 %v6163_v18, %v6358_v63 }
 0x1ce   : > { %v1709_v22 = vmax.f32 %v1625_v52, 0.0  ;;  %v1617_v13 = vadd.f32 %v6117_v44, %v1616_v2  ;;  %8025 = vst [vmem:[#allocation13_spill] sm:$0xff] %v6522_v23  ;;  %v2012_v58 = vmul.bf16 %v6163_v18, %v6380_v54 }
 0x1cf   : > { %v4840_v36 = vpop.f32.mrf.mxu0  ;;  %v1792_v7 = vld [vmem:[#allocation2 + $0x108] sm:$0xff] }
 0x1d0   : > { %1741 = vst.msk [vmem:[#allocation2 + $0xc1] sm:$0xff] %vm232_vm0, %v1709_v22  ;;  %v1707_v52 = vmax.f32 %v1617_v13, 0.0  ;;  %v1628_v2 = vadd.f32 %v4840_v36, %v6117_v44  ;;  %v6673_v13 = vld [vmem:[#allocation6] ss:$0 sm:$0xff] }
 0x1d1   : > { %v1796_v53 = vld [vmem:[#allocation2 + $0x128] sm:$0xff]  ;;  %v1619_v4 = vpop.f32.mrf.mxu0  ;;  %v1797_v50 = vld [vmem:[#allocation2 + $0x130] sm:$0x3] }
 0x1d2   : > { %1739 = vst.msk [vmem:[#allocation2 + $0xa9] sm:$0xff] %vm232_vm0, %v1707_v52  ;;  %v6541_v3 = vpack.c.bf16 %v1796_v53, %v1795_v15  ;;  %v1710_v57 = vmax.f32 %v1628_v2, 0.0  ;;  %v1620_v19 = vadd.f32 %v6117_v44, %v1619_v4  ;;  %v6544_v5 = vpack.c.bf16 %v1797_v50, %v1797_v50 }
 0x1d3   : > { %v1793_v22 = vld [vmem:[#allocation2 + $0x110] sm:$0xff]  ;;  %v1794_v24 = vld [vmem:[#allocation2 + $0x118] sm:$0x3] }
 0x1d4   : > { %1742 = vst.msk [vmem:[#allocation2 + $0xc9] sm:$0xff] %vm232_vm0, %v1710_v57  ;;  %v6555_v15 = vpack.c.bf16 %v1793_v22, %v1792_v7  ;;  %v1708_v44 = vmax.f32 %v1620_v19, 0.0  ;;  %v6557_v4 = vpack.c.bf16 %v1794_v24, %v1794_v24  ;;  %v1938_v52 = vmul.bf16 %v6182_v62, %v6541_v3 }
 0x1d6   : > { %8027 = vst [vmem:[#allocation15_spill] sm:$0xff] %v6557_v4  ;;  %1740 = vst.msk [vmem:[#allocation2 + $0xb1] sm:$0xff] %vm232_vm0, %v1708_v44  ;;  %v1937_v7 = vmul.bf16 %v6182_v62, %v6555_v15  ;;  %v2127_v19 = vmul.bf16 %v6191_v30, %v6555_v15  ;;  %v2128_v22 = vmul.bf16 %v6191_v30, %v6557_v4 }
 0x1d7   : > { %v2356_v24 = vmul.bf16 %v6215_v55, %v6555_v15  ;;  %v2357_v53 = vmul.bf16 %v6215_v55, %v6557_v4  ;;  %v1899_v38 = vmul.bf16 %v6168_v29, %v6555_v15  ;;  %v2058_v44 = vmul.bf16 %v6171_v26, %v6555_v15 }
 0x1d8   : > { %v2059_v57 = vmul.bf16 %v6171_v26, %v6557_v4  ;;  %v6587_v36 = vadd.bf16 %v1937_v7, %v6471_v32  ;;  %v2159_v50 = vadd.bf16 %v2127_v19, %v6475_v49  ;;  %v2160_v2 = vadd.bf16 %v2128_v22, %v6477_v37 }
 0x1d9   : > { %v2388_v25 = vadd.bf16 %v2356_v24, %v6483_v21  ;;  %v6593_v11 = vadd.bf16 %v2357_v53, %v6495_v34  ;;  %v1915_v9 = vadd.bf16 %v1899_v38, %v1876_v14  ;;  %v6601_v48 = vadd.bf16 %v2058_v44, %v2019_v47  ;;  %v1783_v53 = vld [vmem:[#allocation2 + $0xc0] sm:$0xff]  ;;  %v1780_v24 = vld [vmem:[#allocation2 + $0xa8] sm:$0xff] }
 0x1da   : > { %v6606_v32 = vadd.bf16 %v2059_v57, %v2020_v43  ;;  %v2200_v21 = vunpack.c.l.bf16 %v2159_v50  ;;  %v2201_v34 = vunpack.c.h.bf16 %v2159_v50  ;;  %v2202_v14 = vunpack.c.l.bf16 %v2160_v2 }
 0x1db   : > { %v1784_v7 = vld [vmem:[#allocation2 + $0xc8] sm:$0xff]  ;;  %v1785_v19 = vld [vmem:[#allocation2 + $0xd0] sm:$0x3]  ;;  %v2429_v38 = vunpack.c.l.bf16 %v2388_v25  ;;  %v2430_v22 = vunpack.c.h.bf16 %v2388_v25  ;;  %v6625_v25 = vadd.bf16 %v1938_v52, %v1915_v9 }
 0x1dc   : > { %v6611_v44 = vpack.c.bf16 %v1784_v7, %v1783_v53  ;;  %v6613_v10 = vpack.c.bf16 %v1785_v19, %v1785_v19  ;;  %v6615_v43 = vrot.slane %v2200_v21, 1  ;;  %v6617_v57 = vrot.slane %v2201_v34, 1 }
 0x1dd   : > { %v1781_v37 = vld [vmem:[#allocation2 + $0xb0] sm:$0xff]  ;;  %v1782_v49 = vld [vmem:[#allocation2 + $0xb8] sm:$0x3]  ;;  %v6619_v50 = vrot.slane %v2202_v14, 1  ;;  %v6621_v31 = vrot.slane %v2429_v38, 2  ;;  %v6623_v2 = vrot.slane %v2430_v22, 2 }
 0x1de   : > { %v6627_v47 = vpack.c.bf16 %v1781_v37, %v1780_v24  ;;  %v6629_v53 = vpack.c.bf16 %v1782_v49, %v1782_v49  ;;  %v1934_v21 = vmul.bf16 %v6182_v62, %v6611_v44  ;;  %v2121_v34 = vmul.bf16 %v6191_v30, %v6611_v44 }
 0x1df   : > { %v2122_v7 = vmul.bf16 %v6191_v30, %v6613_v10 }
 0x1e0   : > { %v1933_v49 = vmul.bf16 %v6182_v62, %v6627_v47  ;;  %v2119_v37 = vmul.bf16 %v6191_v30, %v6627_v47  ;;  %v2120_v14 = vmul.bf16 %v6191_v30, %v6629_v53  ;;  %v2348_v38 = vmul.bf16 %v6215_v55, %v6627_v47 }
 0x1e1   : > { %v2349_v22 = vmul.bf16 %v6215_v55, %v6629_v53  ;;  %v1895_v24 = vmul.bf16 %v6168_v29, %v6627_v47  ;;  %v2050_v6 = vmul.bf16 %v6171_v26, %v6627_v47  ;;  %v2051_v60 = vmul.bf16 %v6171_v26, %v6629_v53 }
 0x1e2   : > { %v1949_v45 = vadd.bf16 %v1933_v49, %v6505_v56  ;;  %v2151_v35 = vadd.bf16 %v2119_v37, %v6518_v40  ;;  %v2152_v51 = vadd.bf16 %v2120_v14, %v6520_v27  ;;  %v2380_v16 = vadd.bf16 %v2348_v38, %v6528_v12 }
 0x1e3   : > { %v2381_v52 = vadd.bf16 %v2349_v22, %v6530_v61  ;;  %v1911_v9 = vadd.bf16 %v1895_v24, %v1872_v28  ;;  %v2082_v19 = vadd.bf16 %v2050_v6, %v2011_v8  ;;  %v2083_v56 = vadd.bf16 %v2051_v60, %v2012_v58 }
 0x1e4   : > { %v1970_v49 = vunpack.c.l.bf16 %v1949_v45  ;;  %v1971_v40 = vunpack.c.h.bf16 %v1949_v45  ;;  %v2188_v37 = vunpack.c.l.bf16 %v2151_v35  ;;  %v2189_v27 = vunpack.c.h.bf16 %v2151_v35 }
 0x1e5   : > { %v4851_v14 = vpop.f32.mrf.mxu1  ;;  %v2190_v12 = vunpack.c.l.bf16 %v2152_v51  ;;  %v2417_v38 = vunpack.c.l.bf16 %v2380_v16  ;;  %v2418_v61 = vunpack.c.h.bf16 %v2380_v16  ;;  %v2419_v22 = vunpack.c.l.bf16 %v2381_v52 }
 0x1e6   : > { %v1673_v28 = vadd.f32 %v6673_v13, %v4851_v14  ;;  %v2523_v24 = vrot.slane %v2188_v37, 1  ;;  %v2524_v1 = vrot.slane %v2189_v27, 1  ;;  %v1950_v6 = vadd.bf16 %v1934_v21, %v1911_v9 }
 0x1e7   : > { %v1664_v8 = vpop.f32.mrf.mxu1  ;;  %v2526_v17 = vrot.slane %v2190_v12, 1  ;;  %v2715_v33 = vrot.slane %v2417_v38, 2  ;;  %v2716_v60 = vrot.slane %v2418_v61, 2  ;;  %v2718_v58 = vrot.slane %v2419_v22, 2 }
 0x1e8   : > { %v1721_v45 = vmax.f32 %v1673_v28, 0.0  ;;  %v1665_v35 = vadd.f32 %v6673_v13, %v1664_v8  ;;  %v2525_v51 = vsel %vm1109_vm3, %v2523_v24, %v2524_v1  ;;  %v1972_v23 = vunpack.c.l.bf16 %v1950_v6 }
 0x1e9   : > { %v4852_v16 = vpop.f32.mrf.mxu1  ;;  %v2527_v52 = vsel %vm1109_vm3, %v2524_v1, %v2526_v17  ;;  %v2620_v4 = vadd.f32 %v2525_v51, %v1970_v49  ;;  %v2717_v14 = vsel %vm1302_vm4, %v2715_v33, %v2716_v60  ;;  %v2719_v37 = vsel %vm1302_vm4, %v2716_v60, %v2718_v58 }
 0x1ea   : > { %1753 = vst.msk [vmem:[#allocation2 + $0x151] sm:$0xff] %vm232_vm0, %v1721_v45  ;;  %v1719_v21 = vmax.f32 %v1665_v35, 0.0  ;;  %v1676_v9 = vadd.f32 %v6673_v13, %v4852_v16  ;;  %v2621_v27 = vadd.f32 %v2527_v52, %v1971_v40  ;;  %v1973_v12 = vunpack.c.h.bf16 %v1950_v6 }
 0x1eb   : > { %v1667_v38 = vpop.f32.mrf.mxu1  ;;  %v2812_v61 = vadd.f32 %v2717_v14, %v2620_v4  ;;  %v2153_v22 = vadd.bf16 %v2121_v34, %v2082_v19  ;;  %v2154_v28 = vadd.bf16 %v2122_v7, %v2083_v56  ;;  %v2279_v24 = vmul.bf16 %v6212_v59, %v6627_v47 }
 0x1ec   : > { %1751 = vst.msk [vmem:[#allocation2 + $0x139] sm:$0xff] %vm232_vm0, %v1719_v21  ;;  %v1722_v17 = vmax.f32 %v1676_v9, 0.0  ;;  %v1668_v33 = vadd.f32 %v6673_v13, %v1667_v38  ;;  %v2813_v1 = vadd.f32 %v2719_v37, %v2621_v27  ;;  %v2280_v49 = vmul.bf16 %v6212_v59, %v6629_v53 }
 0x1ed   : > { %v2191_v8 = vunpack.c.l.bf16 %v2153_v22  ;;  %v2192_v60 = vunpack.c.h.bf16 %v2153_v22  ;;  %v2193_v40 = vunpack.c.l.bf16 %v2154_v28  ;;  %v8028_v4 = vmul.bf16 %v6207_v42, %v6358_v63 }
 0x1ee   : > { %1754 = vst.msk [vmem:[#allocation2 + $0x159] sm:$0xff] %vm232_vm0, %v1722_v17  ;;  %v1720_v7 = vmax.f32 %v1668_v33, 0.0  ;;  %v2839_v19 = vpack.c.bf16 %v2813_v1, %v2812_v61  ;;  %v8029_v56 = vmul.bf16 %v6207_v42, %v6380_v54  ;;  %v1873_v58 = vmul.bf16 %v6160_v41, %v6627_v47 }
 0x1ef   : > { %v2311_v34 = vadd.bf16 %v2279_v24, %v8028_v4  ;;  %v8030_v45 = vmul.bf16 %v6215_v55, %v6611_v44  ;;  %v2528_v51 = vrot.slane %v2191_v8, 1  ;;  %v2529_v16 = vrot.slane %v2192_v60, 1 }
 0x1f0   : > { %v2312_v6 = vadd.bf16 %v2280_v49, %v8029_v56  ;;  %v2531_v52 = vrot.slane %v2193_v40, 1  ;;  %1752 = vst.msk [vmem:[#allocation2 + $0x141] sm:$0xff] %vm232_vm0, %v1720_v7  ;;  %4870 = vmatmul.mubr.msk.bf16.gmra.mxu1 %vm232_vm0, %v2839_v19  ;;  %v8031_v63 = vmul.bf16 %v6215_v55, %v6613_v10  ;;  %v8032_v54 = vmul.bf16 %v6168_v29, %v6611_v44 }
 0x1f1   : > { %v2382_v35 = vadd.bf16 %v8030_v45, %v2311_v34  ;;  %v2013_v21 = vmul.bf16 %v6163_v18, %v6627_v47  ;;  %v2014_v9 = vmul.bf16 %v6163_v18, %v6629_v53  ;;  %v2530_v61 = vsel %vm1109_vm3, %v2528_v51, %v2529_v16  ;;  %v1801_v49 = vld [vmem:[#allocation2 + $0x150] sm:$0xff] }
 0x1f2   : > { %v2383_v14 = vadd.bf16 %v8031_v63, %v2312_v6  ;;  %v1912_v37 = vadd.bf16 %v8032_v54, %v1873_v58  ;;  %v2532_v22 = vsel %vm1109_vm3, %v2529_v16, %v2531_v52  ;;  %v2622_v24 = vadd.f32 %v2530_v61, %v1972_v23 }
 0x1f3   : > { %v2420_v27 = vunpack.c.l.bf16 %v2382_v35  ;;  %v2421_v38 = vunpack.c.h.bf16 %v2382_v35  ;;  %v2623_v17 = vadd.f32 %v2532_v22, %v1973_v12  ;;  %v8033_v33 = vmul.bf16 %v6182_v62, %v6360_v20  ;;  %v1798_v12 = vld [vmem:[#allocation2 + $0x138] sm:$0xff] }
 0x1f4   : > { %v2422_v28 = vunpack.c.l.bf16 %v2383_v14  ;;  %v2052_v40 = vmul.bf16 %v6171_v26, %v6611_v44  ;;  %v2053_v4 = vmul.bf16 %v6171_v26, %v6613_v10  ;;  %v2242_v23 = vmul.bf16 %v6207_v42, %v6627_v47 }
 0x1f5   : > { %v1951_v1 = vadd.bf16 %v8033_v33, %v1912_v37  ;;  %v2720_v8 = vrot.slane %v2420_v27, 2  ;;  %v2721_v60 = vrot.slane %v2421_v38, 2  ;;  %v1802_v56 = vld [vmem:[#allocation2 + $0x158] sm:$0xff]  ;;  %v2243_v35 = vmul.bf16 %v6207_v42, %v6629_v53 }
 0x1f6   : > { %v2723_v34 = vrot.slane %v2422_v28, 2  ;;  %v2084_v58 = vadd.bf16 %v2052_v40, %v2013_v21  ;;  %v2085_v45 = vadd.bf16 %v2053_v4, %v2014_v9  ;;  %v6727_v51 = vpack.c.bf16 %v1802_v56, %v1801_v49 }
 0x1f7   : > { %v1974_v7 = vunpack.c.l.bf16 %v1951_v1  ;;  %v1975_v19 = vunpack.c.h.bf16 %v1951_v1  ;;  %v2722_v6 = vsel %vm1302_vm4, %v2720_v8, %v2721_v60  ;;  %v2281_v63 = vmul.bf16 %v6212_v59, %v6611_v44  ;;  %v1799_v14 = vld [vmem:[#allocation2 + $0x140] sm:$0xff] }
 0x1f8   : > { %v2724_v16 = vsel %vm1302_vm4, %v2721_v60, %v2723_v34  ;;  %v2814_v52 = vadd.f32 %v2722_v6, %v2622_v24  ;;  %v8034_v47 = vmul.bf16 %v6191_v30, %v6360_v20  ;;  %v8035_v21 = vmul.bf16 %v6191_v30, %v6362_v46 }
 0x1f9   : > { %v2815_v54 = vadd.f32 %v2724_v16, %v2623_v17  ;;  %v2282_v53 = vmul.bf16 %v6212_v59, %v6613_v10  ;;  %v6740_v27 = vpack.c.bf16 %v1799_v14, %v1798_v12  ;;  %v2313_v38 = vadd.bf16 %v2281_v63, %v2242_v23 }
 0x1fa   : > { %v2155_v37 = vadd.bf16 %v8034_v47, %v2084_v58  ;;  %v2156_v9 = vadd.bf16 %v8035_v21, %v2085_v45  ;;  %v1874_v61 = vmul.bf16 %v6160_v41, %v6611_v44  ;;  %v2015_v22 = vmul.bf16 %v6163_v18, %v6611_v44 }
 0x1fb   : > { %v2840_v28 = vpack.c.bf16 %v2815_v54, %v2814_v52  ;;  %v2314_v1 = vadd.bf16 %v2282_v53, %v2243_v35  ;;  %v8036_v49 = vmul.bf16 %v6215_v55, %v6360_v20  ;;  %v8037_v60 = vmul.bf16 %v6168_v29, %v6360_v20 }
 0x1fc   : > { %v2194_v24 = vunpack.c.l.bf16 %v2155_v37  ;;  %v2195_v17 = vunpack.c.h.bf16 %v2155_v37  ;;  %v2196_v33 = vunpack.c.l.bf16 %v2156_v9  ;;  %v2016_v4 = vmul.bf16 %v6163_v18, %v6613_v10 }
 0x1fd   : > { %v2384_v8 = vadd.bf16 %v8036_v49, %v2313_v38  ;;  %v1913_v40 = vadd.bf16 %v8037_v60, %v1874_v61  ;;  %4873 = vmatprep.mubr.msk.bf16.mxu1 %vm232_vm0, %v2840_v28  ;;  %v8038_v56 = vmul.bf16 %v6171_v26, %v6360_v20  ;;  %v8039_v58 = vmul.bf16 %v6215_v55, %v6362_v46 }
 0x1fe   : > { %v2533_v34 = vrot.slane %v2194_v24, 1  ;;  %v2534_v23 = vrot.slane %v2195_v17, 1  ;;  %v2536_v12 = vrot.slane %v2196_v33, 1  ;;  %v8040_v52 = vmul.bf16 %v6182_v62, %v6340_v39  ;;  %v4855_v53 = vpop.f32.mrf.mxu1 }
 0x1ff   : > { %v2086_v6 = vadd.bf16 %v8038_v56, %v2015_v22  ;;  %v2385_v45 = vadd.bf16 %v8039_v58, %v2314_v1  ;;  %v2423_v35 = vunpack.c.l.bf16 %v2384_v8  ;;  %v2424_v16 = vunpack.c.h.bf16 %v2384_v8 }
 0x200   : > { %v1952_v63 = vadd.bf16 %v8040_v52, %v1913_v40  ;;  %v2535_v14 = vsel %vm1109_vm3, %v2533_v34, %v2534_v23  ;;  %v2537_v54 = vsel %vm1109_vm3, %v2534_v23, %v2536_v12  ;;  %v8041_v47 = vmul.bf16 %v6171_v26, %v6362_v46  ;;  %v1680_v49 = vpop.f32.mrf.mxu1 }
 0x201   : > { %v8042_v21 = vmul.bf16 %v6191_v30, %v6340_v39  ;;  %v2425_v38 = vunpack.c.l.bf16 %v2385_v45  ;;  %v2624_v61 = vadd.f32 %v2535_v14, %v1974_v7  ;;  %v2625_v22 = vadd.f32 %v2537_v54, %v1975_v19 }
 0x202   : > { %v2087_v37 = vadd.bf16 %v8041_v47, %v2016_v4  ;;  %v2725_v28 = vrot.slane %v2423_v35, 2  ;;  %v1689_v24 = vadd.f32 %v6673_v13, %v4855_v53  ;;  %v2726_v17 = vrot.slane %v2424_v16, 2  ;;  %v4856_v56 = vpop.f32.mrf.mxu1 }
 0x203   : > { %v2157_v9 = vadd.bf16 %v8042_v21, %v2086_v6  ;;  %v1976_v33 = vunpack.c.l.bf16 %v1952_v63  ;;  %v1977_v1 = vunpack.c.h.bf16 %v1952_v63  ;;  %v2728_v8 = vrot.slane %v2425_v38, 2 }
 0x204   : > { %v8043_v60 = vmul.bf16 %v6191_v30, %v6344_v0  ;;  %v1725_v23 = vmax.f32 %v1689_v24, 0.0  ;;  %v1681_v12 = vadd.f32 %v6673_v13, %v1680_v49  ;;  %v2727_v7 = vsel %vm1302_vm4, %v2725_v28, %v2726_v17  ;;  %v1683_v47 = vpop.f32.mrf.mxu1 }
 0x205   : > { %v2197_v4 = vunpack.c.l.bf16 %v2157_v9  ;;  %v2198_v34 = vunpack.c.h.bf16 %v2157_v9  ;;  %v2244_v19 = vmul.bf16 %v6207_v42, %v6611_v44  ;;  %v2729_v6 = vsel %vm1302_vm4, %v2726_v17, %v2728_v8 }
 0x206   : > { %v2158_v40 = vadd.bf16 %v8043_v60, %v2087_v37  ;;  %v2816_v58 = vadd.f32 %v2727_v7, %v2624_v61  ;;  %v2245_v35 = vmul.bf16 %v6207_v42, %v6613_v10  ;;  %1757 = vst.msk [vmem:[#allocation2 + $0x181] sm:$0xff] %vm232_vm0, %v1725_v23  ;;  %v1723_v16 = vmax.f32 %v1681_v12, 0.0 }
 0x207   : > { %v1692_v52 = vadd.f32 %v6673_v13, %v4856_v56  ;;  %v2817_v63 = vadd.f32 %v2729_v6, %v2625_v22  ;;  %v8044_v14 = vmul.bf16 %v6212_v59, %v6360_v20  ;;  %v8045_v44 = vmul.bf16 %v6212_v59, %v6362_v46 }
 0x208   : > { %v2199_v45 = vunpack.c.l.bf16 %v2158_v40  ;;  %v2538_v21 = vrot.slane %v2197_v4, 1  ;;  %v2539_v9 = vrot.slane %v2198_v34, 1  ;;  %1755 = vst.msk [vmem:[#allocation2 + $0x169] sm:$0xff] %vm232_vm0, %v1723_v16  ;;  %v1684_v38 = vadd.f32 %v6673_v13, %v1683_v47 }
 0x209   : > { %v2315_v54 = vadd.bf16 %v8044_v14, %v2244_v19  ;;  %v2316_v37 = vadd.bf16 %v8045_v44, %v2245_v35  ;;  %v1726_v10 = vmax.f32 %v1692_v52, 0.0  ;;  %v2841_v61 = vpack.c.bf16 %v2817_v63, %v2816_v58  ;;  %v1800_v14 = vld [vmem:[#allocation2 + $0x148] sm:$0x3] }
 0x20a   : > { %v2541_v53 = vrot.slane %v2199_v45, 1  ;;  %v8046_v22 = vmul.bf16 %v6215_v55, %v6340_v39  ;;  %v8047_v20 = vmul.bf16 %v6215_v55, %v6344_v0  ;;  %v2540_v46 = vsel %vm1109_vm3, %v2538_v21, %v2539_v9 }
 0x20b   : > { %v2545_v49 = vsel %vm1109_vm3, %v6615_v43, %v6617_v57  ;;  %1758 = vst.msk [vmem:[#allocation2 + $0x189] sm:$0xff] %vm232_vm0, %v1726_v10  ;;  %v1724_v13 = vmax.f32 %v1684_v38, 0.0  ;;  %4874 = vmatmul.mubr.msk.bf16.gmra.mxu1 %vm232_vm0, %v2841_v61  ;;  %v2626_v40 = vadd.f32 %v2540_v46, %v1976_v33  ;;  %v2547_v23 = vsel %vm1109_vm3, %v6617_v57, %v6619_v50  ;;  %v8053_v10 = vld [vmem:[#allocation15_spill] sm:$0xff] }
 0x20c   : > { %v2386_v28 = vadd.bf16 %v8046_v22, %v2315_v54  ;;  %v2387_v24 = vadd.bf16 %v8047_v20, %v2316_v37  ;;  %v2542_v17 = vsel %vm1109_vm3, %v2539_v9, %v2541_v53  ;;  %v8048_v12 = vunpack.c.l.bf16 %v6587_v36 }
 0x20d   : > { %v2627_v34 = vadd.f32 %v2542_v17, %v1977_v1  ;;  %1756 = vst.msk [vmem:[#allocation2 + $0x171] sm:$0xff] %vm232_vm0, %v1724_v13  ;;  %v8049_v56 = vunpack.c.h.bf16 %v6587_v36  ;;  %v2737_v33 = vsel %vm1302_vm4, %v6621_v31, %v6623_v2  ;;  %v8050_v1 = vunpack.c.l.bf16 %v6593_v11 }
 0x20e   : > { %v2426_v8 = vunpack.c.l.bf16 %v2386_v28  ;;  %v2427_v60 = vunpack.c.h.bf16 %v2386_v28  ;;  %v2428_v4 = vunpack.c.l.bf16 %v2387_v24  ;;  %v2628_v7 = vadd.f32 %v2545_v49, %v8048_v12 }
 0x20f   : > { %v2629_v6 = vadd.f32 %v2547_v23, %v8049_v56  ;;  %v2738_v45 = vrot.slane %v8050_v1, 2  ;;  %v1980_v57 = vunpack.c.l.bf16 %v6625_v25  ;;  %v1981_v16 = vunpack.c.h.bf16 %v6625_v25 }
 0x210   : > { %v2730_v43 = vrot.slane %v2426_v8, 2  ;;  %v2731_v19 = vrot.slane %v2427_v60, 2  ;;  %v2733_v58 = vrot.slane %v2428_v4, 2  ;;  %v2820_v35 = vadd.f32 %v2737_v33, %v2628_v7 }
 0x211   : > { %v8051_v36 = vmul.bf16 %v6191_v30, %v6541_v3  ;;  %v8052_v31 = vmul.bf16 %v6191_v30, %v6544_v5  ;;  %v2739_v47 = vsel %vm1302_vm4, %v6623_v2, %v2738_v45  ;;  %v2287_v25 = vmul.bf16 %v6212_v59, %v6555_v15  ;;  %v5001_v2 = vld [vmem:[%s7999_s2 + $0x28] sm:$0xff]  }
 0x212   : > { %v2732_v50 = vsel %vm1302_vm4, %v2730_v43, %v2731_v19  ;;  %v2734_v11 = vsel %vm1302_vm4, %v2731_v19, %v2733_v58  ;;  %v2821_v37 = vadd.f32 %v2739_v47, %v2629_v6  ;;  %v2288_v38 = vmul.bf16 %v6212_v59, %v8053_v10  ;;  %4893 = vmatprep.subr.bf16.mxu0 %v5001_v2 }
 0x213   : > { %v2161_v52 = vadd.bf16 %v8051_v36, %v6601_v48  ;;  %v2162_v63 = vadd.bf16 %v8052_v31, %v6606_v32  ;;  %v2818_v54 = vadd.f32 %v2732_v50, %v2626_v40  ;;  %v2819_v44 = vadd.f32 %v2734_v11, %v2627_v34  ;;  %v1804_v48 = vld [vmem:[#allocation2 + $0x168] sm:$0xff]  ;;  %4894 = vmatpush3.bf16.msra.mxu0 %v5001_v2 }
 0x214   : > { %v8054_v32 = vmul.bf16 %v6207_v42, %v6340_v39  ;;  %v6840_v22 = vpack.c.bf16 %v1800_v14, %v1800_v14  ;;  %v2843_v20 = vpack.c.bf16 %v2821_v37, %v2820_v35  ;;  %v1805_v17 = vld [vmem:[#allocation2 + $0x170] sm:$0xff]  ;;  %v8055_v49 = vmul.bf16 %v6207_v42, %v6344_v0 }
 0x215   : > { %v2203_v21 = vunpack.c.l.bf16 %v2161_v52  ;;  %v2204_v9 = vunpack.c.h.bf16 %v2161_v52  ;;  %v2205_v53 = vunpack.c.l.bf16 %v2162_v63  ;;  %v2842_v28 = vpack.c.bf16 %v2819_v44, %v2818_v54 }
 0x216   : > { %v2319_v61 = vadd.bf16 %v2287_v25, %v8054_v32  ;;  %v2320_v13 = vadd.bf16 %v2288_v38, %v8055_v49  ;;  %v8056_v8 = vmul.bf16 %v6215_v55, %v6541_v3  ;;  %v1877_v40 = vmul.bf16 %v6160_v41, %v6555_v15 }
 0x217   : > { %v2548_v24 = vrot.slane %v2203_v21, 1  ;;  %v2549_v46 = vrot.slane %v2204_v9, 1  ;;  %v2551_v60 = vrot.slane %v2205_v53, 1  ;;  %v6853_v4 = vpack.c.bf16 %v1805_v17, %v1804_v48  ;;  %4877 = vmatprep.mubr.msk.bf16.mxu1 %vm232_vm0, %v2842_v28  ;;  %v1803_v21 = vld [vmem:[#allocation2 + $0x160] sm:$0x3] }
 0x218   : > { %v2390_v39 = vadd.bf16 %v8056_v8, %v2319_v61  ;;  %v1900_v23 = vmul.bf16 %v6168_v29, %v6541_v3  ;;  %v1939_v0 = vmul.bf16 %v6182_v62, %v6740_v27  ;;  %4878 = vmatmul.mubr.msk.bf16.gmra.mxu1 %vm232_vm0, %v2843_v20  ;;  %v8057_v12 = vmul.bf16 %v6215_v55, %v6544_v5 }
 0x219   : > { %v2550_v34 = vsel %vm1109_vm3, %v2548_v24, %v2549_v46  ;;  %v2552_v56 = vsel %vm1109_vm3, %v2549_v46, %v2551_v60  ;;  %v2021_v1 = vmul.bf16 %v6163_v18, %v6555_v15  ;;  %v2022_v36 = vmul.bf16 %v6163_v18, %v8053_v10 }
 0x21a   : > { %v2391_v7 = vadd.bf16 %v8057_v12, %v2320_v13  ;;  %v2432_v43 = vunpack.c.l.bf16 %v2390_v39  ;;  %v2433_v19 = vunpack.c.h.bf16 %v2390_v39  ;;  %v2630_v6 = vadd.f32 %v2550_v34, %v1980_v57 }
 0x21b   : > { %v2631_v33 = vadd.f32 %v2552_v56, %v1981_v16  ;;  %v1916_v58 = vadd.bf16 %v1900_v23, %v1877_v40  ;;  %v2060_v31 = vmul.bf16 %v6171_v26, %v6541_v3  ;;  %v2061_v63 = vmul.bf16 %v6171_v26, %v6544_v5 }
 0x21c   : > { %v2434_v45 = vunpack.c.l.bf16 %v2391_v7  ;;  %v2740_v35 = vrot.slane %v2432_v43, 2  ;;  %v2741_v50 = vrot.slane %v2433_v19, 2  ;;  %v2131_v57 = vmul.bf16 %v6191_v30, %v6740_v27 }
 0x21d   : > { %v1955_v52 = vadd.bf16 %v1939_v0, %v1916_v58  ;;  %v2132_v11 = vmul.bf16 %v6191_v30, %v6840_v22  ;;  %v2250_v54 = vmul.bf16 %v6207_v42, %v6555_v15  ;;  %v2092_v37 = vadd.bf16 %v2060_v31, %v2021_v1 }
 0x21e   : > { %v2742_v16 = vsel %vm1302_vm4, %v2740_v35, %v2741_v50  ;;  %v2743_v14 = vrot.slane %v2434_v45, 2  ;;  %v2093_v48 = vadd.bf16 %v2061_v63, %v2022_v36  ;;  %v2251_v53 = vmul.bf16 %v6207_v42, %v8053_v10 }
 0x21f   : > { %v2822_v47 = vadd.f32 %v2742_v16, %v2630_v6  ;;  %v1982_v25 = vunpack.c.l.bf16 %v1955_v52  ;;  %v1983_v44 = vunpack.c.h.bf16 %v1955_v52  ;;  %v2289_v38 = vmul.bf16 %v6212_v59, %v6541_v3 }
 0x220   : > { %v2744_v9 = vsel %vm1302_vm4, %v2741_v50, %v2743_v14  ;;  %v2163_v61 = vadd.bf16 %v2131_v57, %v2092_v37  ;;  %v2290_v2 = vmul.bf16 %v6212_v59, %v6544_v5  ;;  %v2360_v15 = vmul.bf16 %v6215_v55, %v6740_v27 }
 0x221   : > { %v2823_v32 = vadd.f32 %v2744_v9, %v2631_v33  ;;  %v2164_v28 = vadd.bf16 %v2132_v11, %v2093_v48  ;;  %v2321_v20 = vadd.bf16 %v2289_v38, %v2250_v54  ;;  %v2361_v24 = vmul.bf16 %v6215_v55, %v6840_v22  ;;  %v1806_v38 = vld [vmem:[#allocation2 + $0x178] sm:$0x3] }
 0x222   : > { %v6892_v46 = vpack.c.bf16 %v1803_v21, %v1803_v21  ;;  %v2206_v10 = vunpack.c.l.bf16 %v2163_v61  ;;  %v2207_v49 = vunpack.c.h.bf16 %v2163_v61  ;;  %v2322_v13 = vadd.bf16 %v2290_v2, %v2251_v53 }
 0x223   : > { %v2844_v17 = vpack.c.bf16 %v2823_v32, %v2822_v47  ;;  %v2208_v8 = vunpack.c.l.bf16 %v2164_v28  ;;  %v2392_v39 = vadd.bf16 %v2360_v15, %v2321_v20  ;;  %v1878_v60 = vmul.bf16 %v6160_v41, %v6541_v3 }
 0x224   : > { %v1901_v40 = vmul.bf16 %v6168_v29, %v6740_v27  ;;  %v2393_v34 = vadd.bf16 %v2361_v24, %v2322_v13  ;;  %v2553_v23 = vrot.slane %v2206_v10, 1  ;;  %v2554_v0 = vrot.slane %v2207_v49, 1 }
 0x225   : > { %4881 = vmatprep.mubr.msk.bf16.mxu1 %vm232_vm0, %v2844_v17  ;;  %v1940_v12 = vmul.bf16 %v6182_v62, %v6727_v51  ;;  %v2435_v7 = vunpack.c.l.bf16 %v2392_v39  ;;  %v2436_v43 = vunpack.c.h.bf16 %v2392_v39  ;;  %v2556_v19 = vrot.slane %v2208_v8, 1 }
 0x226   : > { %v1917_v56 = vadd.bf16 %v1901_v40, %v1878_v60  ;;  %v2437_v6 = vunpack.c.l.bf16 %v2393_v34  ;;  %v2555_v33 = vsel %vm1109_vm3, %v2553_v23, %v2554_v0  ;;  %v2023_v58 = vmul.bf16 %v6163_v18, %v6541_v3 }
 0x227   : > { %v2024_v1 = vmul.bf16 %v6163_v18, %v6544_v5  ;;  %v2557_v45 = vsel %vm1109_vm3, %v2554_v0, %v2556_v19  ;;  %v2632_v35 = vadd.f32 %v2555_v33, %v1982_v25  ;;  %v2745_v50 = vrot.slane %v2435_v7, 2 }
 0x228   : > { %v2746_v36 = vrot.slane %v2436_v43, 2  ;;  %v2633_v52 = vadd.f32 %v2557_v45, %v1983_v44  ;;  %v2748_v31 = vrot.slane %v2437_v6, 2  ;;  %v1956_v63 = vadd.bf16 %v1940_v12, %v1917_v56 }
 0x229   : > { %v2062_v57 = vmul.bf16 %v6171_v26, %v6740_v27  ;;  %v2063_v14 = vmul.bf16 %v6171_v26, %v6840_v22  ;;  %v2133_v11 = vmul.bf16 %v6191_v30, %v6727_v51  ;;  %v2134_v54 = vmul.bf16 %v6191_v30, %v6892_v46 }
 0x22a   : > { %v2747_v16 = vsel %vm1302_vm4, %v2745_v50, %v2746_v36  ;;  %v2749_v47 = vsel %vm1302_vm4, %v2746_v36, %v2748_v31  ;;  %v1984_v44 = vunpack.c.l.bf16 %v1956_v63  ;;  %v1985_v37 = vunpack.c.h.bf16 %v1956_v63 }
 0x22b   : > { %v2824_v25 = vadd.f32 %v2747_v16, %v2632_v35  ;;  %v2825_v21 = vadd.f32 %v2749_v47, %v2633_v52  ;;  %v2094_v9 = vadd.bf16 %v2062_v57, %v2023_v58  ;;  %v2095_v48 = vadd.bf16 %v2063_v14, %v2024_v1 }
 0x22c   : > { %v2252_v53 = vmul.bf16 %v6207_v42, %v6541_v3  ;;  %v2253_v32 = vmul.bf16 %v6207_v42, %v6544_v5  ;;  %v2291_v61 = vmul.bf16 %v6212_v59, %v6740_v27  ;;  %v2292_v2 = vmul.bf16 %v6212_v59, %v6840_v22 }
 0x22d   : > { %v2362_v15 = vmul.bf16 %v6215_v55, %v6727_v51  ;;  %v2845_v28 = vpack.c.bf16 %v2825_v21, %v2824_v25  ;;  %v2165_v20 = vadd.bf16 %v2133_v11, %v2094_v9  ;;  %v2166_v24 = vadd.bf16 %v2134_v54, %v2095_v48 }
 0x22e   : > { %v2363_v17 = vmul.bf16 %v6215_v55, %v6892_v46  ;;  %v2323_v3 = vadd.bf16 %v2291_v61, %v2252_v53  ;;  %v2324_v10 = vadd.bf16 %v2292_v2, %v2253_v32  ;;  %v6929_v49 = vpack.c.bf16 %v1806_v38, %v1806_v38  ;;  %v1807_v2 = vld [vmem:[#allocation2 + $0x180] sm:$0xff] }
 0x22f   : > { %v1879_v5 = vmul.bf16 %v6160_v41, %v6740_v27  ;;  %4882 = vmatmul.mubr.msk.bf16.gmra.mxu1 %vm232_vm0, %v2845_v28  ;;  %v2209_v13 = vunpack.c.l.bf16 %v2165_v20  ;;  %v2210_v8 = vunpack.c.h.bf16 %v2165_v20  ;;  %v2211_v39 = vunpack.c.l.bf16 %v2166_v24  ;;  %v1809_v28 = vld [vmem:[#allocation2 + $0x190] sm:$0x3] }
 0x230   : > { %v1902_v60 = vmul.bf16 %v6168_v29, %v6727_v51  ;;  %v2394_v40 = vadd.bf16 %v2362_v15, %v2323_v3  ;;  %v2395_v34 = vadd.bf16 %v2363_v17, %v2324_v10  ;;  %v1941_v23 = vmul.bf16 %v6182_v62, %v6853_v4  ;;  %v1808_v15 = vld [vmem:[#allocation2 + $0x188] sm:$0xff] }
 0x231   : > { %v2025_v0 = vmul.bf16 %v6163_v18, %v6740_v27  ;;  %v2558_v12 = vrot.slane %v2209_v13, 1  ;;  %v2559_v7 = vrot.slane %v2210_v8, 1  ;;  %v2561_v43 = vrot.slane %v2211_v39, 1 }
 0x232   : > { %v1918_v19 = vadd.bf16 %v1902_v60, %v1879_v5  ;;  %v2438_v56 = vunpack.c.l.bf16 %v2394_v40  ;;  %v2439_v6 = vunpack.c.h.bf16 %v2394_v40  ;;  %v2440_v33 = vunpack.c.l.bf16 %v2395_v34 }
 0x233   : > { %v2026_v58 = vmul.bf16 %v6163_v18, %v6840_v22  ;;  %v2560_v1 = vsel %vm1109_vm3, %v2558_v12, %v2559_v7  ;;  %v2562_v45 = vsel %vm1109_vm3, %v2559_v7, %v2561_v43  ;;  %v2064_v50 = vmul.bf16 %v6171_v26, %v6727_v51 }
 0x234   : > { %v1957_v35 = vadd.bf16 %v1941_v23, %v1918_v19  ;;  %v2634_v36 = vadd.f32 %v2560_v1, %v1984_v44  ;;  %v2635_v52 = vadd.f32 %v2562_v45, %v1985_v37  ;;  %v2750_v31 = vrot.slane %v2438_v56, 2 }
 0x235   : > { %v2751_v63 = vrot.slane %v2439_v6, 2  ;;  %v2753_v57 = vrot.slane %v2440_v33, 2  ;;  %v2065_v11 = vmul.bf16 %v6171_v26, %v6892_v46  ;;  %v2096_v47 = vadd.bf16 %v2064_v50, %v2025_v0 }
 0x236   : > { %v1986_v16 = vunpack.c.l.bf16 %v1957_v35  ;;  %v1987_v14 = vunpack.c.h.bf16 %v1957_v35  ;;  %v2135_v25 = vmul.bf16 %v6191_v30, %v6853_v4  ;;  %v2136_v21 = vmul.bf16 %v6191_v30, %v6929_v49 }
 0x237   : > { %v2752_v54 = vsel %vm1302_vm4, %v2750_v31, %v2751_v63  ;;  %v2754_v44 = vsel %vm1302_vm4, %v2751_v63, %v2753_v57  ;;  %v2097_v9 = vadd.bf16 %v2065_v11, %v2026_v58  ;;  %v2254_v48 = vmul.bf16 %v6207_v42, %v6740_v27 }
 0x238   : > { %v2826_v37 = vadd.f32 %v2752_v54, %v2634_v36  ;;  %v2827_v53 = vadd.f32 %v2754_v44, %v2635_v52  ;;  %v2167_v38 = vadd.bf16 %v2135_v25, %v2096_v47  ;;  %v2255_v32 = vmul.bf16 %v6207_v42, %v6840_v22 }
 0x239   : > { %v2293_v61 = vmul.bf16 %v6212_v59, %v6727_v51  ;;  %v2168_v20 = vadd.bf16 %v2136_v21, %v2097_v9  ;;  %v2294_v24 = vmul.bf16 %v6212_v59, %v6892_v46  ;;  %v2364_v17 = vmul.bf16 %v6215_v55, %v6853_v4 }
 0x23a   : > { %v2365_v27 = vmul.bf16 %v6215_v55, %v6929_v49  ;;  %v2846_v3 = vpack.c.bf16 %v2827_v53, %v2826_v37  ;;  %v2212_v10 = vunpack.c.l.bf16 %v2167_v38  ;;  %v2213_v5 = vunpack.c.h.bf16 %v2167_v38 }
 0x23b   : > { %v2325_v22 = vadd.bf16 %v2293_v61, %v2254_v48  ;;  %v2214_v13 = vunpack.c.l.bf16 %v2168_v20  ;;  %v2326_v8 = vadd.bf16 %v2294_v24, %v2255_v32  ;;  %v6966_v39 = vpack.c.bf16 %v1808_v15, %v1807_v2 }
 0x23c   : > { %v6968_v60 = vpack.c.bf16 %v1809_v28, %v1809_v28  ;;  %4885 = vmatprep.mubr.msk.bf16.mxu1 %vm232_vm0, %v2846_v3  ;;  %v2563_v34 = vrot.slane %v2212_v10, 1  ;;  %v2564_v23 = vrot.slane %v2213_v5, 1  ;;  %v1880_v0 = vmul.bf16 %v6160_v41, %v6727_v51 }
 0x23d   : > { %v2396_v40 = vadd.bf16 %v2364_v17, %v2325_v22  ;;  %v2397_v12 = vadd.bf16 %v2365_v27, %v2326_v8  ;;  %v2566_v7 = vrot.slane %v2214_v13, 1  ;;  %v1903_v43 = vmul.bf16 %v6168_v29, %v6853_v4 }
 0x23e   : > { %v1942_v19 = vmul.bf16 %v6182_v62, %v6966_v39  ;;  %v2565_v33 = vsel %vm1109_vm3, %v2563_v34, %v2564_v23  ;;  %v2027_v58 = vmul.bf16 %v6163_v18, %v6727_v51  ;;  %v2028_v63 = vmul.bf16 %v6163_v18, %v6892_v46 }
 0x23f   : > { %v2441_v56 = vunpack.c.l.bf16 %v2396_v40  ;;  %v2442_v6 = vunpack.c.h.bf16 %v2396_v40  ;;  %v2443_v1 = vunpack.c.l.bf16 %v2397_v12  ;;  %v2567_v45 = vsel %vm1109_vm3, %v2564_v23, %v2566_v7 }
 0x240   : > { %v2636_v35 = vadd.f32 %v2565_v33, %v1986_v16  ;;  %v1919_v50 = vadd.bf16 %v1903_v43, %v1880_v0  ;;  %v2637_v36 = vadd.f32 %v2567_v45, %v1987_v14  ;;  %v2066_v54 = vmul.bf16 %v6171_v26, %v6853_v4  ;;  %v8058_v33 = vld [vmem:[#allocation13_spill] sm:$0xff] }
 0x241   : > { %v2755_v52 = vrot.slane %v2441_v56, 2  ;;  %v2756_v31 = vrot.slane %v2442_v6, 2  ;;  %v2758_v57 = vrot.slane %v2443_v1, 2  ;;  %v2067_v47 = vmul.bf16 %v6171_v26, %v6929_v49 }
 0x242   : > { %v1958_v11 = vadd.bf16 %v1942_v19, %v1919_v50  ;;  %v2137_v16 = vmul.bf16 %v6191_v30, %v6966_v39  ;;  %v2138_v14 = vmul.bf16 %v6191_v30, %v6968_v60  ;;  %v2256_v21 = vmul.bf16 %v6207_v42, %v6727_v51 }
 0x243   : > { %v2757_v25 = vsel %vm1302_vm4, %v2755_v52, %v2756_v31  ;;  %v2759_v44 = vsel %vm1302_vm4, %v2756_v31, %v2758_v57  ;;  %v2098_v38 = vadd.bf16 %v2066_v54, %v2027_v58  ;;  %v2099_v32 = vadd.bf16 %v2067_v47, %v2028_v63  ;;  %v8061_v47 = vld [vmem:[#allocation14_spill] sm:$0xff] }
 0x244   : > { %v2828_v37 = vadd.f32 %v2757_v25, %v2636_v35  ;;  %v1988_v9 = vunpack.c.l.bf16 %v1958_v11  ;;  %v1989_v48 = vunpack.c.h.bf16 %v1958_v11  ;;  %v2829_v53 = vadd.f32 %v2759_v44, %v2637_v36 }
 0x245   : > { %v2257_v61 = vmul.bf16 %v6207_v42, %v6892_v46  ;;  %v2295_v2 = vmul.bf16 %v6212_v59, %v6853_v4  ;;  %v2296_v15 = vmul.bf16 %v6212_v59, %v6929_v49  ;;  %v2366_v51 = vmul.bf16 %v6215_v55, %v6966_v39 }
 0x246   : > { %v2367_v28 = vmul.bf16 %v6215_v55, %v6968_v60  ;;  %v2847_v20 = vpack.c.bf16 %v2829_v53, %v2828_v37  ;;  %v2169_v24 = vadd.bf16 %v2137_v16, %v2098_v38  ;;  %v2170_v17 = vadd.bf16 %v2138_v14, %v2099_v32 }
 0x247   : > { %v1881_v27 = vmul.bf16 %v6160_v41, %v6853_v4  ;;  %v2327_v3 = vadd.bf16 %v2295_v2, %v2256_v21  ;;  %v2328_v46 = vadd.bf16 %v2296_v15, %v2257_v61  ;;  %v1904_v10 = vmul.bf16 %v6168_v29, %v6966_v39 }
 0x248   : > { %v2029_v5 = vmul.bf16 %v6163_v18, %v6853_v4  ;;  %4886 = vmatmul.mubr.msk.bf16.gmra.mxu1 %vm232_vm0, %v2847_v20  ;;  %v2215_v22 = vunpack.c.l.bf16 %v2169_v24  ;;  %v2216_v13 = vunpack.c.h.bf16 %v2169_v24  ;;  %v2217_v8 = vunpack.c.l.bf16 %v2170_v17 }
 0x249   : > { %v2030_v40 = vmul.bf16 %v6163_v18, %v6929_v49  ;;  %v2398_v34 = vadd.bf16 %v2366_v51, %v2327_v3  ;;  %v2399_v23 = vadd.bf16 %v2367_v28, %v2328_v46  ;;  %v1920_v0 = vadd.bf16 %v1904_v10, %v1881_v27  ;;  %v4863_v3 = vpop.f32.mrf.mxu1 }
 0x24a   : > { %v2068_v41 = vmul.bf16 %v6171_v26, %v6966_v39  ;;  %v2568_v12 = vrot.slane %v2215_v22, 1  ;;  %v2569_v7 = vrot.slane %v2216_v13, 1  ;;  %v2571_v29 = vrot.slane %v2217_v8, 1 }
 0x24b   : > { %v2069_v43 = vmul.bf16 %v6171_v26, %v6968_v60  ;;  %v2444_v19 = vunpack.c.l.bf16 %v2398_v34  ;;  %v2445_v56 = vunpack.c.h.bf16 %v2398_v34  ;;  %v2446_v6 = vunpack.c.l.bf16 %v2399_v23  ;;  %v2957_v22 = vpop.f32.mrf.mxu1 }
 0x24c   : > { %v2368_v58 = vmul.bf16 %v6215_v55, %v8058_v33  ;;  %v2570_v18 = vsel %vm1109_vm3, %v2568_v12, %v2569_v7  ;;  %v2572_v1 = vsel %vm1109_vm3, %v2569_v7, %v2571_v29  ;;  %v2100_v45 = vadd.bf16 %v2068_v41, %v2029_v5 }
 0x24d   : > { %v2101_v35 = vadd.bf16 %v2069_v43, %v2030_v40  ;;  %v2638_v50 = vadd.f32 %v2570_v18, %v1988_v9  ;;  %v2639_v36 = vadd.f32 %v2572_v1, %v1989_v48  ;;  %v2760_v52 = vrot.slane %v2444_v19, 2  ;;  %v4864_v12 = vpop.f32.mrf.mxu1 }
 0x24e   : > { %v2761_v31 = vrot.slane %v2445_v56, 2  ;;  %v2763_v63 = vrot.slane %v2446_v6, 2  ;;  %v8059_v26 = vmul.bf16 %v6182_v62, %v8058_v33  ;;  %v8060_v11 = vmul.bf16 %v6191_v30, %v8058_v33 }
 0x24f   : > { %v2369_v25 = vmul.bf16 %v6215_v55, %v8061_v47  ;;  %v8062_v14 = vmul.bf16 %v6191_v30, %v8061_v47  ;;  %v2258_v44 = vmul.bf16 %v6207_v42, %v6853_v4  ;;  %v2259_v62 = vmul.bf16 %v6207_v42, %v6929_v49  ;;  %v7043_v42 = vld [vmem:[#allocation6 + $0x1] ss:$0 sm:$0xff]  ;;  %v2960_v56 = vpop.f32.mrf.mxu1 }
 0x250   : > { %v1959_v57 = vadd.bf16 %v8059_v26, %v1920_v0  ;;  %v2171_v54 = vadd.bf16 %v8060_v11, %v2100_v45  ;;  %v2762_v16 = vsel %vm1302_vm4, %v2760_v52, %v2761_v31  ;;  %v2764_v37 = vsel %vm1302_vm4, %v2761_v31, %v2763_v63  ;;  %v4728_v11 = vld [vmem:[%s7998_s1 + $0x12] sm:$0x1] }
 0x251   : > { %v2172_v21 = vadd.bf16 %v8062_v14, %v2101_v35  ;;  %v2830_v9 = vadd.f32 %v2762_v16, %v2638_v50  ;;  %v2831_v38 = vadd.f32 %v2764_v37, %v2639_v36  ;;  %v2297_v55 = vmul.bf16 %v6212_v59, %v6966_v39  ;;  %v3148_v35 = vld [vmem:[#allocation2] sm:$0xff]  ;;  %v3149_v50 = vld [vmem:[#allocation2 + $0x8] sm:$0xff]  ;;  %v3150_v36 = vld [vmem:[#allocation2 + $0x10] sm:$0x3] }
 0x252   : > { %v2218_v48 = vunpack.c.l.bf16 %v2171_v54  ;;  %v2219_v53 = vunpack.c.h.bf16 %v2171_v54  ;;  %v2298_v30 = vmul.bf16 %v6212_v59, %v6968_v60  ;;  %v1990_v49 = vunpack.c.l.bf16 %v1959_v57  ;;  %v5002_v59 = vld [vmem:[%s7999_s2 + $0x20] sm:$0xff]   ;;  %v4729_v54 = vld [vmem:[%s7998_s1 + $0x13] sm:$0x1] }
 0x253   : > { %v2220_v32 = vunpack.c.l.bf16 %v2172_v21  ;;  %v2848_v15 = vpack.c.bf16 %v2831_v38, %v2830_v9  ;;  %v2329_v4 = vadd.bf16 %v2297_v55, %v2258_v44  ;;  %v1991_v20 = vunpack.c.h.bf16 %v1959_v57  ;;  %4895 = vmatprep.subr.bf16.mxu0 %v5002_v59  ;;  %v4730_v21 = vld [vmem:[%s7998_s1 + $0x14] sm:$0x1]  ;;  %v4732_v38 = vld [vmem:[%s7998_s1 + $0x16] sm:$0x1] }
 0x254   : > { %v2573_v61 = vrot.slane %v2218_v48, 1  ;;  %v2574_v2 = vrot.slane %v2219_v53, 1  ;;  %v2330_v51 = vadd.bf16 %v2298_v30, %v2259_v62  ;;  %v2966_v60 = vadd.f32 %v4863_v3, %v7043_v42  ;;  %4896 = vmatpush3.bf16.msra.mxu0 %v5002_v59  ;;  %v4731_v53 = vld [vmem:[%s7998_s1 + $0x15] sm:$0x1]  ;;  %v4734_v30 = vld [vmem:[%s7998_s1 + $0x18] sm:$0x1] }
 0x255   : > { %v2576_v28 = vrot.slane %v2220_v32, 1  ;;  %4889 = vmatprep.mubr.msk.bf16.mxu1 %vm232_vm0, %v2848_v15  ;;  %v2400_v24 = vadd.bf16 %v2368_v58, %v2329_v4  ;;  %v2958_v34 = vadd.f32 %v7043_v42, %v2957_v22  ;;  %v2969_v29 = vadd.f32 %v4864_v12, %v7043_v42  ;;  %v4733_v32 = vld [vmem:[%s7998_s1 + $0x17] sm:$0x1] }
 0x256   : > { %v2401_v17 = vadd.bf16 %v2369_v25, %v2330_v51  ;;  %v2575_v27 = vsel %vm1109_vm3, %v2573_v61, %v2574_v2  ;;  %v3086_v40 = vmax.f32 %v2966_v60, 0.0  ;;  %v2961_v18 = vadd.f32 %v7043_v42, %v2960_v56  ;;  %v4735_v61 = vld [vmem:[%s7998_s1 + $0x19] sm:$0x1] }
 0x257   : > { %v2577_v39 = vsel %vm1109_vm3, %v2574_v2, %v2576_v28  ;;  %v2447_v46 = vunpack.c.l.bf16 %v2400_v24  ;;  %v2448_v10 = vunpack.c.h.bf16 %v2400_v24  ;;  %v2640_v13 = vadd.f32 %v2575_v27, %v1990_v49  ;;  %v8063_v2 = vld [vmem:[#allocation12_spill] sm:$0xff] }
 0x258   : > { %v2449_v5 = vunpack.c.l.bf16 %v2401_v17  ;;  %v2641_v8 = vadd.f32 %v2577_v39, %v1991_v20  ;;  %3118 = vst.msk [vmem:[#allocation2 + $0x31] sm:$0xff] %vm232_vm0, %v3086_v40  ;;  %v3084_v7 = vmax.f32 %v2958_v34, 0.0  ;;  %v3087_v58 = vmax.f32 %v2969_v29, 0.0  ;;  %v4736_v49 = vld [vmem:[%s7998_s1 + $0x1a] sm:$0x1] }
 0x259   : > { %v2765_v23 = vrot.slane %v2447_v46, 2  ;;  %v2766_v0 = vrot.slane %v2448_v10, 2  ;;  %v3085_v45 = vmax.f32 %v2961_v18, 0.0  ;;  %v3202_v57 = vpack.c.bf16 %v3149_v50, %v3148_v35 }
 0x25a   : > { %v2768_v41 = vrot.slane %v2449_v5, 2  ;;  %3116 = vst.msk [vmem:[#allocation2 + $0x19] sm:$0xff] %vm232_vm0, %v3084_v7  ;;  %3119 = vst.msk [vmem:[#allocation2 + $0x39] sm:$0xff] %vm232_vm0, %v3087_v58  ;;  %v3203_v16 = vpack.c.bf16 %v3150_v36, %v3150_v36  ;;  %v3249_v44 = vpack.i.b16 %v4728_v11, %v4728_v11  ;;  %v3382_v62 = vpack.i.b16 %v4729_v54, %v4729_v54 }
 0x25b   : > { %v2767_v43 = vsel %vm1302_vm4, %v2765_v23, %v2766_v0  ;;  %3117 = vst.msk [vmem:[#allocation2 + $0x21] sm:$0xff] %vm232_vm0, %v3085_v45  ;;  %v3611_v55 = vpack.i.b16 %v4730_v21, %v4730_v21  ;;  %v3272_v4 = vpack.i.b16 %v4731_v53, %v4731_v53  ;;  %v3421_v28 = vpack.i.b16 %v4732_v38, %v4732_v38 }
 0x25c   : > { %v2769_v19 = vsel %vm1302_vm4, %v2766_v0, %v2768_v41  ;;  %v2832_v6 = vadd.f32 %v2767_v43, %v2640_v13  ;;  %v7095_v15 = vrot.slane %v3249_v44, %v8063_v2  ;;  %v7098_v51 = vrot.slane %v3382_v62, %v8063_v2 }
 0x25d   : > { %v2833_v33 = vadd.f32 %v2769_v19, %v2641_v8  ;;  %v3311_v20 = vpack.i.b16 %v4734_v30, %v4734_v30  ;;  %v3492_v24 = vpack.i.b16 %v4735_v61, %v4735_v61  ;;  %v7104_v17 = vrot.slane %v3611_v55, %v8063_v2 }
 0x25e   : > { %v3650_v27 = vpack.i.b16 %v4733_v32, %v4733_v32  ;;  %v3255_v39 = vmul.bf16 %v7095_v15, %v3202_v57  ;;  %v7108_v3 = vrot.slane %v3272_v4, %v8063_v2  ;;  %v3388_v59 = vmul.bf16 %v7098_v51, %v3202_v57 }
 0x25f   : > { %v2849_v1 = vpack.c.bf16 %v2833_v33, %v2832_v6  ;;  %v3154_v31 = vld [vmem:[#allocation2 + $0x30] sm:$0xff]  ;;  %v3389_v60 = vmul.bf16 %v7098_v51, %v3203_v16  ;;  %v7113_v46 = vrot.slane %v3311_v20, %v8063_v2  ;;  %v7116_v10 = vrot.slane %v3421_v28, %v8063_v2 }
 0x260   : > { %v7119_v5 = vrot.slane %v3492_v24, %v8063_v2  ;;  %v3617_v22 = vmul.bf16 %v7104_v17, %v3202_v57  ;;  %v3618_v8 = vmul.bf16 %v7104_v17, %v3203_v16  ;;  %v7126_v40 = vrot.slane %v3650_v27, %v8063_v2 }
 0x261   : > { %4890 = vmatmul.mubr.msk.bf16.gmra.mxu1 %vm232_vm0, %v2849_v1  ;;  %v3151_v52 = vld [vmem:[#allocation2 + $0x18] sm:$0xff]  ;;  %v3156_v26 = vld [vmem:[#allocation2 + $0x40] sm:$0x3]  ;;  %v3721_v34 = vpack.i.b16 %v4736_v49, %v4736_v49 }
 0x262   : > { %v3155_v63 = vld [vmem:[#allocation2 + $0x38] sm:$0xff]  ;;  %v3152_v47 = vld [vmem:[#allocation2 + $0x20] sm:$0xff]  ;;  %v3153_v25 = vld [vmem:[#allocation2 + $0x28] sm:$0x3]  ;;  %v7077_v48 = vpack.c.bf16 %v3156_v26, %v3156_v26 }
 0x263   : > { %v7068_v14 = vpack.c.bf16 %v3155_v63, %v3154_v31  ;;  %v7073_v37 = vpack.c.bf16 %v3152_v47, %v3151_v52  ;;  %v7075_v9 = vpack.c.bf16 %v3153_v25, %v3153_v25  ;;  %v7141_v6 = vrot.slane %v3721_v34, %v8063_v2 }
 0x264   : > { %v3499_v56 = vmul.bf16 %v7119_v5, %v7077_v48 }
 0x265   : > { %v3278_v13 = vmul.bf16 %v7108_v3, %v7073_v37  ;;  %v3427_v23 = vmul.bf16 %v7116_v10, %v7073_v37  ;;  %v3428_v0 = vmul.bf16 %v7116_v10, %v7075_v9  ;;  %v3498_v12 = vmul.bf16 %v7119_v5, %v7068_v14 }
 0x266   : > { %v3656_v7 = vmul.bf16 %v7126_v40, %v7073_v37  ;;  %v3657_v29 = vmul.bf16 %v7126_v40, %v7075_v9  ;;  %v3317_v33 = vmul.bf16 %v7113_v46, %v7068_v14  ;;  %v3727_v35 = vmul.bf16 %v7141_v6, %v7068_v14 }
 0x267   : > { %v3294_v41 = vadd.bf16 %v3278_v13, %v3255_v39  ;;  %v3459_v43 = vadd.bf16 %v3427_v23, %v3388_v59  ;;  %v3460_v19 = vadd.bf16 %v3428_v0, %v3389_v60  ;;  %v3728_v36 = vmul.bf16 %v7141_v6, %v7077_v48 }
 0x268   : > { %v3688_v58 = vadd.bf16 %v3656_v7, %v3617_v22  ;;  %v3689_v18 = vadd.bf16 %v3657_v29, %v3618_v8  ;;  %v3256_v7 = vmul.bf16 %v7095_v15, %v7073_v37  ;;  %v3390_v29 = vmul.bf16 %v7098_v51, %v7073_v37 }
 0x269   : > { %v3530_v1 = vadd.bf16 %v3498_v12, %v3459_v43  ;;  %v3531_v45 = vadd.bf16 %v3499_v56, %v3460_v19  ;;  %v3333_v50 = vadd.bf16 %v3317_v33, %v3294_v41  ;;  %v3391_v43 = vmul.bf16 %v7098_v51, %v7075_v9 }
 0x26a   : > { %v3759_v26 = vadd.bf16 %v3727_v35, %v3688_v58  ;;  %v3760_v57 = vadd.bf16 %v3728_v36, %v3689_v18  ;;  %v3279_v19 = vmul.bf16 %v7108_v3, %v7068_v14  ;;  %v3429_v56 = vmul.bf16 %v7116_v10, %v7068_v14 }
 0x26b   : > { %v3562_v52 = vunpack.c.l.bf16 %v3530_v1  ;;  %v3563_v31 = vunpack.c.h.bf16 %v3530_v1  ;;  %v3564_v63 = vunpack.c.l.bf16 %v3531_v45  ;;  %v3349_v16 = vunpack.c.l.bf16 %v3333_v50 }
 0x26c   : > { %v3791_v11 = vunpack.c.l.bf16 %v3759_v26  ;;  %v3792_v54 = vunpack.c.h.bf16 %v3759_v26  ;;  %v3793_v21 = vunpack.c.l.bf16 %v3760_v57  ;;  %v3350_v62 = vunpack.c.h.bf16 %v3333_v50 }
 0x26d   : > { %v3887_v47 = vrot.slane %v3562_v52, 1  ;;  %v3888_v25 = vrot.slane %v3563_v31, 1  ;;  %v3890_v44 = vrot.slane %v3564_v63, 1  ;;  %v3619_v33 = vmul.bf16 %v7104_v17, %v7073_v37 }
 0x26e   : > { %v4079_v38 = vrot.slane %v3791_v11, 2  ;;  %v4080_v32 = vrot.slane %v3792_v54, 2  ;;  %v4082_v61 = vrot.slane %v3793_v21, 2  ;;  %v3430_v58 = vmul.bf16 %v7116_v10, %v7077_v48 }
 0x26f   : > { %v3889_v53 = vsel %vm1109_vm3, %v3887_v47, %v3888_v25  ;;  %v3891_v55 = vsel %vm1109_vm3, %v3888_v25, %v3890_v44  ;;  %v3620_v18 = vmul.bf16 %v7104_v17, %v7075_v9  ;;  %v3295_v35 = vadd.bf16 %v3279_v19, %v3256_v7 }
 0x270   : > { %v3999_v30 = vadd.f32 %v3889_v53, %v3349_v16  ;;  %v4000_v2 = vadd.f32 %v3891_v55, %v3350_v62  ;;  %v4081_v4 = vsel %vm1302_vm4, %v4079_v38, %v4080_v32  ;;  %v4083_v28 = vsel %vm1302_vm4, %v4080_v32, %v4082_v61 }
 0x271   : > { %v3461_v50 = vadd.bf16 %v3429_v56, %v3390_v29  ;;  %v3658_v36 = vmul.bf16 %v7126_v40, %v7068_v14  ;;  %v3462_v37 = vadd.bf16 %v3430_v58, %v3391_v43  ;;  %v3659_v11 = vmul.bf16 %v7126_v40, %v7077_v48 }
 0x272   : > { %v4191_v49 = vadd.f32 %v4081_v4, %v3999_v30  ;;  %v4192_v20 = vadd.f32 %v4083_v28, %v4000_v2  ;;  %v3257_v9 = vmul.bf16 %v7095_v15, %v7068_v14  ;;  %v3392_v54 = vmul.bf16 %v7098_v51, %v7068_v14 }
 0x273   : > { %v3690_v16 = vadd.bf16 %v3658_v36, %v3619_v33  ;;  %v3393_v21 = vmul.bf16 %v7098_v51, %v7077_v48  ;;  %v3691_v44 = vadd.bf16 %v3659_v11, %v3620_v18  ;;  %v3621_v38 = vmul.bf16 %v7104_v17, %v7068_v14 }
 0x274   : > { %v4223_v24 = vpack.c.bf16 %v4192_v20, %v4191_v49  ;;  %v3622_v36 = vmul.bf16 %v7104_v17, %v7077_v48 }
 0x276   : > { %4897 = vmatprep.mubr.msk.bf16.mxu0 %vm232_vm0, %v4223_v24 }
 0x27f   : > { %v4867_v27 = vpop.f32.mrf.mxu1 }
 0x280   : > { %v2982_v39 = vadd.f32 %v4867_v27, %v7043_v42 }
 0x281   : > { %v2973_v59 = vpop.f32.mrf.mxu1 }
 0x282   : > { %v3090_v60 = vmax.f32 %v2982_v39, 0.0  ;;  %v2974_v22 = vadd.f32 %v7043_v42, %v2973_v59 }
 0x283   : > { %v4868_v13 = vpop.f32.mrf.mxu1 }
 0x284   : > { %3122 = vst.msk [vmem:[#allocation2 + $0x61] sm:$0xff] %vm232_vm0, %v3090_v60  ;;  %v3088_v8 = vmax.f32 %v2974_v22, 0.0  ;;  %v2985_v34 = vadd.f32 %v4868_v13, %v7043_v42 }
 0x285   : > { %v2976_v23 = vpop.f32.mrf.mxu1 }
 0x286   : > { %3120 = vst.msk [vmem:[#allocation2 + $0x49] sm:$0xff] %vm232_vm0, %v3088_v8  ;;  %v3091_v0 = vmax.f32 %v2985_v34, 0.0  ;;  %v2977_v41 = vadd.f32 %v7043_v42, %v2976_v23 }
 0x288   : > { %3123 = vst.msk [vmem:[#allocation2 + $0x69] sm:$0xff] %vm232_vm0, %v3091_v0  ;;  %v3089_v12 = vmax.f32 %v2977_v41, 0.0 }
 0x28a   : > { %3121 = vst.msk [vmem:[#allocation2 + $0x51] sm:$0xff] %vm232_vm0, %v3089_v12 }
 0x28b   : > { %v3160_v1 = vld [vmem:[#allocation2 + $0x60] sm:$0xff] }
 0x28d   : > { %v3157_v63 = vld [vmem:[#allocation2 + $0x48] sm:$0xff] }
 0x28f   : > { %v3161_v45 = vld [vmem:[#allocation2 + $0x68] sm:$0xff]  ;;  %v3162_v52 = vld [vmem:[#allocation2 + $0x70] sm:$0x3] }
 0x290   : > { %v7180_v31 = vpack.c.bf16 %v3161_v45, %v3160_v1  ;;  %v7194_v62 = vpack.c.bf16 %v3162_v52, %v3162_v52 }
 0x291   : > { %v3158_v26 = vld [vmem:[#allocation2 + $0x50] sm:$0xff]  ;;  %v3159_v57 = vld [vmem:[#allocation2 + $0x58] sm:$0x3] }
 0x292   : > { %v7188_v47 = vpack.c.bf16 %v3158_v26, %v3157_v63  ;;  %v7190_v25 = vpack.c.bf16 %v3159_v57, %v3159_v57  ;;  %v3319_v53 = vmul.bf16 %v7113_v46, %v7180_v31  ;;  %v3502_v60 = vmul.bf16 %v7119_v5, %v7180_v31 }
 0x293   : > { %v3503_v22 = vmul.bf16 %v7119_v5, %v7194_v62 }
 0x294   : > { %v3318_v32 = vmul.bf16 %v7113_v46, %v7188_v47  ;;  %v3500_v55 = vmul.bf16 %v7119_v5, %v7188_v47  ;;  %v3501_v30 = vmul.bf16 %v7119_v5, %v7190_v25  ;;  %v3729_v61 = vmul.bf16 %v7141_v6, %v7188_v47 }
 0x295   : > { %v3730_v2 = vmul.bf16 %v7141_v6, %v7190_v25  ;;  %v3280_v4 = vmul.bf16 %v7108_v3, %v7188_v47  ;;  %v3431_v14 = vmul.bf16 %v7116_v10, %v7188_v47  ;;  %v3432_v28 = vmul.bf16 %v7116_v10, %v7190_v25 }
 0x296   : > { %v3334_v49 = vadd.bf16 %v3318_v32, %v3295_v35  ;;  %v3532_v20 = vadd.bf16 %v3500_v55, %v3461_v50  ;;  %v3533_v24 = vadd.bf16 %v3501_v30, %v3462_v37  ;;  %v3761_v27 = vadd.bf16 %v3729_v61, %v3690_v16 }
 0x297   : > { %v3762_v39 = vadd.bf16 %v3730_v2, %v3691_v44  ;;  %v3463_v59 = vadd.bf16 %v3431_v14, %v3392_v54  ;;  %v3296_v34 = vadd.bf16 %v3280_v4, %v3257_v9  ;;  %v3464_v23 = vadd.bf16 %v3432_v28, %v3393_v21 }
 0x298   : > { %v3565_v13 = vunpack.c.l.bf16 %v3532_v20  ;;  %v3566_v8 = vunpack.c.h.bf16 %v3532_v20  ;;  %v3567_v0 = vunpack.c.l.bf16 %v3533_v24  ;;  %v3794_v41 = vunpack.c.l.bf16 %v3761_v27 }
 0x299   : > { %v3795_v12 = vunpack.c.h.bf16 %v3761_v27  ;;  %v3796_v7 = vunpack.c.l.bf16 %v3762_v39  ;;  %v3351_v29 = vunpack.c.l.bf16 %v3334_v49  ;;  %v3534_v56 = vadd.bf16 %v3502_v60, %v3463_v59 }
 0x29a   : > { %v3892_v43 = vrot.slane %v3565_v13, 1  ;;  %v3893_v19 = vrot.slane %v3566_v8, 1  ;;  %v3895_v33 = vrot.slane %v3567_v0, 1  ;;  %v4084_v58 = vrot.slane %v3794_v41, 2 }
 0x29b   : > { %v4085_v18 = vrot.slane %v3795_v12, 2  ;;  %v4087_v1 = vrot.slane %v3796_v7, 2  ;;  %v3352_v45 = vunpack.c.h.bf16 %v3334_v49  ;;  %v3535_v50 = vadd.bf16 %v3503_v22, %v3464_v23 }
 0x29c   : > { %v3894_v35 = vsel %vm1109_vm3, %v3892_v43, %v3893_v19  ;;  %v3896_v52 = vsel %vm1109_vm3, %v3893_v19, %v3895_v33  ;;  %v3335_v57 = vadd.bf16 %v3319_v53, %v3296_v34  ;;  %v3568_v11 = vunpack.c.l.bf16 %v3534_v56 }
 0x29d   : > { %v4001_v63 = vadd.f32 %v3894_v35, %v3351_v29  ;;  %v4086_v26 = vsel %vm1302_vm4, %v4084_v58, %v4085_v18  ;;  %v4002_v37 = vadd.f32 %v3896_v52, %v3352_v45  ;;  %v3569_v9 = vunpack.c.h.bf16 %v3534_v56 }
 0x29e   : > { %v3570_v54 = vunpack.c.l.bf16 %v3535_v50  ;;  %v4088_v16 = vsel %vm1302_vm4, %v4085_v18, %v4087_v1  ;;  %v3660_v44 = vmul.bf16 %v7126_v40, %v7188_v47  ;;  %v3661_v32 = vmul.bf16 %v7126_v40, %v7190_v25 }
 0x29f   : > { %v4193_v21 = vadd.f32 %v4086_v26, %v4001_v63  ;;  %v4194_v48 = vadd.f32 %v4088_v16, %v4002_v37  ;;  %v3897_v55 = vrot.slane %v3568_v11, 1  ;;  %v3898_v30 = vrot.slane %v3569_v9, 1 }
 0x2a0   : > { %v3900_v61 = vrot.slane %v3570_v54, 1  ;;  %v3692_v2 = vadd.bf16 %v3660_v44, %v3621_v38  ;;  %v3693_v4 = vadd.bf16 %v3661_v32, %v3622_v36  ;;  %v3731_v53 = vmul.bf16 %v7141_v6, %v7180_v31 }
 0x2a1   : > { %v3732_v14 = vmul.bf16 %v7141_v6, %v7194_v62  ;;  %v4224_v28 = vpack.c.bf16 %v4194_v48, %v4193_v21  ;;  %v3899_v24 = vsel %vm1109_vm3, %v3897_v55, %v3898_v30  ;;  %v3353_v39 = vunpack.c.l.bf16 %v3335_v57 }
 0x2a2   : > { %v3763_v49 = vadd.bf16 %v3731_v53, %v3692_v2  ;;  %v3901_v27 = vsel %vm1109_vm3, %v3898_v30, %v3900_v61  ;;  %v3354_v59 = vunpack.c.h.bf16 %v3335_v57  ;;  %v3258_v26 = vmul.bf16 %v7095_v15, %v7188_v47 }
 0x2a3   : > { %v3764_v20 = vadd.bf16 %v3732_v14, %v3693_v4  ;;  %4898 = vmatmul.mubr.msk.bf16.vlgmr.msra.gmra.mxu0 %vm232_vm0, %v4224_v28  ;;  %v4003_v13 = vadd.f32 %v3899_v24, %v3353_v39  ;;  %v3394_v57 = vmul.bf16 %v7098_v51, %v7188_v47  ;;  %v3395_v37 = vmul.bf16 %v7098_v51, %v7190_v25 }
 0x2a4   : > { %v3797_v60 = vunpack.c.l.bf16 %v3763_v49  ;;  %v3798_v38 = vunpack.c.h.bf16 %v3763_v49  ;;  %v4004_v8 = vadd.f32 %v3901_v27, %v3354_v59  ;;  %v3623_v11 = vmul.bf16 %v7104_v17, %v7188_v47 }
 0x2a5   : > { %v3799_v22 = vunpack.c.l.bf16 %v3764_v20  ;;  %v3624_v9 = vmul.bf16 %v7104_v17, %v7190_v25  ;;  %v3281_v54 = vmul.bf16 %v7108_v3, %v7180_v31  ;;  %v3433_v16 = vmul.bf16 %v7116_v10, %v7180_v31 }
 0x2a6   : > { %v4089_v34 = vrot.slane %v3797_v60, 2  ;;  %v4090_v23 = vrot.slane %v3798_v38, 2  ;;  %v3434_v21 = vmul.bf16 %v7116_v10, %v7194_v62  ;;  %v3662_v44 = vmul.bf16 %v7126_v40, %v7180_v31 }
 0x2a7   : > { %v4092_v0 = vrot.slane %v3799_v22, 2  ;;  %v3663_v32 = vmul.bf16 %v7126_v40, %v7194_v62  ;;  %v3297_v48 = vadd.bf16 %v3281_v54, %v3258_v26  ;;  %v3465_v47 = vadd.bf16 %v3433_v16, %v3394_v57 }
 0x2a8   : > { %v4091_v41 = vsel %vm1302_vm4, %v4089_v34, %v4090_v23  ;;  %v3466_v55 = vadd.bf16 %v3434_v21, %v3395_v37  ;;  %v3259_v2 = vmul.bf16 %v7095_v15, %v7180_v31  ;;  %v3694_v4 = vadd.bf16 %v3662_v44, %v3623_v11 }
 0x2a9   : > { %v4093_v12 = vsel %vm1302_vm4, %v4090_v23, %v4092_v0  ;;  %v4195_v7 = vadd.f32 %v4091_v41, %v4003_v13  ;;  %v3695_v53 = vadd.bf16 %v3663_v32, %v3624_v9  ;;  %v3396_v27 = vmul.bf16 %v7098_v51, %v7180_v31 }
 0x2aa   : > { %v4196_v29 = vadd.f32 %v4093_v12, %v4004_v8  ;;  %v3397_v39 = vmul.bf16 %v7098_v51, %v7194_v62  ;;  %v3625_v59 = vmul.bf16 %v7104_v17, %v7180_v31  ;;  %v3626_v60 = vmul.bf16 %v7104_v17, %v7194_v62 }
 0x2ac   : > { %v4225_v43 = vpack.c.bf16 %v4196_v29, %v4195_v7 }
 0x2ae   : > { %4901 = vmatprep.mubr.msk.bf16.mxu0 %vm232_vm0, %v4225_v43 }
 0x2b0   : > { %v4871_v19 = vpop.f32.mrf.mxu1 }
 0x2b1   : > { %v2998_v56 = vadd.f32 %v4871_v19, %v7043_v42 }
 0x2b2   : > { %v2989_v33 = vpop.f32.mrf.mxu1 }
 0x2b3   : > { %v3094_v58 = vmax.f32 %v2998_v56, 0.0  ;;  %v2990_v18 = vadd.f32 %v7043_v42, %v2989_v33 }
 0x2b4   : > { %v4872_v1 = vpop.f32.mrf.mxu1 }
 0x2b5   : > { %3126 = vst.msk [vmem:[#allocation2 + $0x91] sm:$0xff] %vm232_vm0, %v3094_v58  ;;  %v3092_v45 = vmax.f32 %v2990_v18, 0.0  ;;  %v3001_v35 = vadd.f32 %v4872_v1, %v7043_v42 }
 0x2b6   : > { %v2992_v50 = vpop.f32.mrf.mxu1 }
 0x2b7   : > { %3124 = vst.msk [vmem:[#allocation2 + $0x79] sm:$0xff] %vm232_vm0, %v3092_v45  ;;  %v3095_v36 = vmax.f32 %v3001_v35, 0.0  ;;  %v2993_v52 = vadd.f32 %v7043_v42, %v2992_v50 }
 0x2b9   : > { %3127 = vst.msk [vmem:[#allocation2 + $0x99] sm:$0xff] %vm232_vm0, %v3095_v36  ;;  %v3093_v63 = vmax.f32 %v2993_v52, 0.0 }
 0x2bb   : > { %3125 = vst.msk [vmem:[#allocation2 + $0x81] sm:$0xff] %vm232_vm0, %v3093_v63 }
 0x2bc   : > { %v3166_v30 = vld [vmem:[#allocation2 + $0x90] sm:$0xff] }
 0x2be   : > { %v3163_v49 = vld [vmem:[#allocation2 + $0x78] sm:$0xff] }
 0x2c0   : > { %v3167_v25 = vld [vmem:[#allocation2 + $0x98] sm:$0xff]  ;;  %v3168_v61 = vld [vmem:[#allocation2 + $0xa0] sm:$0x3] }
 0x2c1   : > { %v7270_v14 = vpack.c.bf16 %v3167_v25, %v3166_v30  ;;  %v7272_v28 = vpack.c.bf16 %v3168_v61, %v3168_v61 }
 0x2c2   : > { %v3164_v20 = vld [vmem:[#allocation2 + $0x80] sm:$0xff]  ;;  %v3165_v24 = vld [vmem:[#allocation2 + $0x88] sm:$0x3] }
 0x2c3   : > { %v7282_v38 = vpack.c.bf16 %v3164_v20, %v3163_v49  ;;  %v7284_v22 = vpack.c.bf16 %v3165_v24, %v3165_v24  ;;  %v3321_v13 = vmul.bf16 %v7113_v46, %v7270_v14  ;;  %v3506_v8 = vmul.bf16 %v7119_v5, %v7270_v14 }
 0x2c4   : > { %v3507_v34 = vmul.bf16 %v7119_v5, %v7272_v28  ;;  %v3735_v23 = vmul.bf16 %v7141_v6, %v7270_v14  ;;  %v3736_v0 = vmul.bf16 %v7141_v6, %v7272_v28  ;;  %v3283_v41 = vmul.bf16 %v7108_v3, %v7270_v14 }
 0x2c5   : > { %v3320_v12 = vmul.bf16 %v7113_v46, %v7282_v38  ;;  %v3504_v7 = vmul.bf16 %v7119_v5, %v7282_v38  ;;  %v3505_v29 = vmul.bf16 %v7119_v5, %v7284_v22  ;;  %v3733_v43 = vmul.bf16 %v7141_v6, %v7282_v38 }
 0x2c6   : > { %v3734_v19 = vmul.bf16 %v7141_v6, %v7284_v22  ;;  %v3282_v56 = vmul.bf16 %v7108_v3, %v7282_v38  ;;  %v3435_v33 = vmul.bf16 %v7116_v10, %v7282_v38  ;;  %v3436_v58 = vmul.bf16 %v7116_v10, %v7284_v22 }
 0x2c7   : > { %v3336_v1 = vadd.bf16 %v3320_v12, %v3297_v48  ;;  %v3536_v45 = vadd.bf16 %v3504_v7, %v3465_v47  ;;  %v3537_v35 = vadd.bf16 %v3505_v29, %v3466_v55  ;;  %v3765_v50 = vadd.bf16 %v3733_v43, %v3694_v4 }
 0x2c8   : > { %v3766_v52 = vadd.bf16 %v3734_v19, %v3695_v53  ;;  %v3298_v63 = vadd.bf16 %v3282_v56, %v3259_v2  ;;  %v3467_v26 = vadd.bf16 %v3435_v33, %v3396_v27 }
 0x2c9   : > { %v3355_v37 = vunpack.c.l.bf16 %v3336_v1  ;;  %v3356_v11 = vunpack.c.h.bf16 %v3336_v1  ;;  %v3571_v9 = vunpack.c.l.bf16 %v3536_v45  ;;  %v3572_v54 = vunpack.c.h.bf16 %v3536_v45 }
 0x2ca   : > { %v3573_v44 = vunpack.c.l.bf16 %v3537_v35  ;;  %v3800_v32 = vunpack.c.l.bf16 %v3765_v50  ;;  %v3801_v48 = vunpack.c.h.bf16 %v3765_v50  ;;  %v3802_v47 = vunpack.c.l.bf16 %v3766_v52 }
 0x2cb   : > { %v4875_v18 = vpop.f32.mrf.mxu1  ;;  %v3902_v55 = vrot.slane %v3571_v9, 1  ;;  %v3903_v25 = vrot.slane %v3572_v54, 1  ;;  %v3337_v12 = vadd.bf16 %v3321_v13, %v3298_v63  ;;  %v3468_v13 = vadd.bf16 %v3436_v58, %v3397_v39 }
 0x2cc   : > { %v3014_v36 = vadd.f32 %v4875_v18, %v7043_v42  ;;  %v3905_v4 = vrot.slane %v3573_v44, 1  ;;  %v4094_v53 = vrot.slane %v3800_v32, 2  ;;  %v4095_v24 = vrot.slane %v3801_v48, 2 }
 0x2cd   : > { %v3005_v57 = vpop.f32.mrf.mxu1  ;;  %v3904_v20 = vsel %vm1109_vm3, %v3902_v55, %v3903_v25  ;;  %v4097_v27 = vrot.slane %v3802_v47, 2  ;;  %v3357_v1 = vunpack.c.l.bf16 %v3337_v12  ;;  %v3358_v50 = vunpack.c.h.bf16 %v3337_v12 }
 0x2ce   : > { %v3098_v16 = vmax.f32 %v3014_v36, 0.0  ;;  %v3006_v21 = vadd.f32 %v7043_v42, %v3005_v57  ;;  %v3906_v43 = vsel %vm1109_vm3, %v3903_v25, %v3905_v4  ;;  %v4005_v19 = vadd.f32 %v3904_v20, %v3355_v37 }
 0x2cf   : > { %v4876_v30 = vpop.f32.mrf.mxu1  ;;  %v4006_v56 = vadd.f32 %v3906_v43, %v3356_v11  ;;  %v4096_v33 = vsel %vm1302_vm4, %v4094_v53, %v4095_v24  ;;  %v4098_v18 = vsel %vm1302_vm4, %v4095_v24, %v4097_v27  ;;  %v3538_v52 = vadd.bf16 %v3506_v8, %v3467_v26 }
 0x2d0   : > { %3130 = vst.msk [vmem:[#allocation2 + $0xc1] sm:$0xff] %vm232_vm0, %v3098_v16  ;;  %v3096_v61 = vmax.f32 %v3006_v21, 0.0  ;;  %v3017_v2 = vadd.f32 %v4876_v30, %v7043_v42  ;;  %v4197_v35 = vadd.f32 %v4096_v33, %v4005_v19  ;;  %v3664_v63 = vmul.bf16 %v7126_v40, %v7282_v38 }
 0x2d1   : > { %v3008_v49 = vpop.f32.mrf.mxu1  ;;  %v4198_v36 = vadd.f32 %v4098_v18, %v4006_v56  ;;  %v3665_v57 = vmul.bf16 %v7126_v40, %v7284_v22  ;;  %v3539_v11 = vadd.bf16 %v3507_v34, %v3468_v13  ;;  %v3260_v9 = vmul.bf16 %v7095_v15, %v7282_v38 }
 0x2d2   : > { %3128 = vst.msk [vmem:[#allocation2 + $0xa9] sm:$0xff] %vm232_vm0, %v3096_v61  ;;  %v3099_v7 = vmax.f32 %v3017_v2, 0.0  ;;  %v3009_v29 = vadd.f32 %v7043_v42, %v3008_v49  ;;  %v3398_v39 = vmul.bf16 %v7098_v51, %v7282_v38  ;;  %v3399_v8 = vmul.bf16 %v7098_v51, %v7284_v22 }
 0x2d3   : > { %v4226_v26 = vpack.c.bf16 %v4198_v36, %v4197_v35  ;;  %v3574_v54 = vunpack.c.l.bf16 %v3538_v52  ;;  %v3575_v16 = vunpack.c.h.bf16 %v3538_v52  ;;  %v3576_v44 = vunpack.c.l.bf16 %v3539_v11 }
 0x2d4   : > { %3131 = vst.msk [vmem:[#allocation2 + $0xc9] sm:$0xff] %vm232_vm0, %v3099_v7  ;;  %v3097_v45 = vmax.f32 %v3009_v29, 0.0  ;;  %v3696_v34 = vadd.bf16 %v3664_v63, %v3625_v59  ;;  %v3697_v32 = vadd.bf16 %v3665_v57, %v3626_v60  ;;  %v3299_v30 = vadd.bf16 %v3283_v41, %v3260_v9 }
 0x2d5   : > { %4902 = vmatmul.mubr.msk.bf16.gmra.mxu0 %vm232_vm0, %v4226_v26  ;;  %v3907_v55 = vrot.slane %v3574_v54, 1  ;;  %v3908_v25 = vrot.slane %v3575_v16, 1  ;;  %v3910_v59 = vrot.slane %v3576_v44, 1  ;;  %v3437_v60 = vmul.bf16 %v7116_v10, %v7270_v14 }
 0x2d6   : > { %3129 = vst.msk [vmem:[#allocation2 + $0xb1] sm:$0xff] %vm232_vm0, %v3097_v45  ;;  %v3767_v31 = vadd.bf16 %v3735_v23, %v3696_v34  ;;  %v3768_v62 = vadd.bf16 %v3736_v0, %v3697_v32  ;;  %v3438_v53 = vmul.bf16 %v7116_v10, %v7272_v28  ;;  %v3628_v54 = vmul.bf16 %v7104_v17, %v7284_v22 }
 0x2d7   : > { %v3909_v4 = vsel %vm1109_vm3, %v3907_v55, %v3908_v25  ;;  %v3911_v0 = vsel %vm1109_vm3, %v3908_v25, %v3910_v59  ;;  %v3469_v52 = vadd.bf16 %v3437_v60, %v3398_v39  ;;  %v3627_v39 = vmul.bf16 %v7104_v17, %v7282_v38  ;;  %v3172_v59 = vld [vmem:[#allocation2 + $0xc0] sm:$0xff] }
 0x2d8   : > { %v4879_v37 = vpop.f32.mrf.mxu1  ;;  %v3803_v23 = vunpack.c.l.bf16 %v3767_v31  ;;  %v3804_v20 = vunpack.c.h.bf16 %v3767_v31  ;;  %v3805_v24 = vunpack.c.l.bf16 %v3768_v62  ;;  %v4007_v7 = vadd.f32 %v3909_v4, %v3357_v1 }
 0x2d9   : > { %v3030_v58 = vadd.f32 %v4879_v37, %v7043_v42  ;;  %v4008_v29 = vadd.f32 %v3911_v0, %v3358_v50  ;;  %v3169_v43 = vld [vmem:[#allocation2 + $0xa8] sm:$0xff]  ;;  %v3470_v63 = vadd.bf16 %v3438_v53, %v3399_v8  ;;  %v3666_v16 = vmul.bf16 %v7126_v40, %v7270_v14 }
 0x2da   : > { %v3021_v21 = vpop.f32.mrf.mxu1  ;;  %v4099_v33 = vrot.slane %v3803_v23, 2  ;;  %v4100_v18 = vrot.slane %v3804_v20, 2  ;;  %v4102_v45 = vrot.slane %v3805_v24, 2  ;;  %v3667_v34 = vmul.bf16 %v7126_v40, %v7272_v28 }
 0x2db   : > { %v3102_v48 = vmax.f32 %v3030_v58, 0.0  ;;  %v3022_v47 = vadd.f32 %v7043_v42, %v3021_v21  ;;  %v3261_v20 = vmul.bf16 %v7095_v15, %v7270_v14 }
 0x2dc   : > { %v4880_v61 = vpop.f32.mrf.mxu1  ;;  %v4101_v57 = vsel %vm1302_vm4, %v4099_v33, %v4100_v18  ;;  %v4103_v1 = vsel %vm1302_vm4, %v4100_v18, %v4102_v45  ;;  %v3699_v31 = vadd.bf16 %v3667_v34, %v3628_v54  ;;  %v3401_v45 = vmul.bf16 %v7098_v51, %v7272_v28 }
 0x2dd   : > { %3134 = vst.msk [vmem:[#allocation2 + $0xf1] sm:$0xff] %vm232_vm0, %v3102_v48  ;;  %v3100_v41 = vmax.f32 %v3022_v47, 0.0  ;;  %v3033_v2 = vadd.f32 %v4880_v61, %v7043_v42  ;;  %v3170_v19 = vld [vmem:[#allocation2 + $0xb0] sm:$0xff]  ;;  %v3171_v56 = vld [vmem:[#allocation2 + $0xb8] sm:$0x3]  ;;  %v4199_v11 = vadd.f32 %v4101_v57, %v4007_v7  ;;  %v4200_v9 = vadd.f32 %v4103_v1, %v4008_v29  ;;  %v3173_v48 = vld [vmem:[#allocation2 + $0xc8] sm:$0xff] }
 0x2de   : > { %v3024_v49 = vpop.f32.mrf.mxu1  ;;  %v7370_v35 = vpack.c.bf16 %v3170_v19, %v3169_v43  ;;  %v7373_v36 = vpack.c.bf16 %v3171_v56, %v3171_v56  ;;  %v3174_v47 = vld [vmem:[#allocation2 + $0xd0] sm:$0x3]  ;;  %v3698_v61 = vadd.bf16 %v3666_v16, %v3627_v39 }
 0x2df   : > { %3132 = vst.msk [vmem:[#allocation2 + $0xd9] sm:$0xff] %vm232_vm0, %v3100_v41  ;;  %v3103_v27 = vmax.f32 %v3033_v2, 0.0  ;;  %v3025_v12 = vadd.f32 %v7043_v42, %v3024_v49  ;;  %v4227_v21 = vpack.c.bf16 %v4200_v9, %v4199_v11  ;;  %v7397_v2 = vpack.c.bf16 %v3173_v48, %v3172_v59 }
 0x2e0   : > { %v3322_v50 = vmul.bf16 %v7113_v46, %v7370_v35  ;;  %v3508_v37 = vmul.bf16 %v7119_v5, %v7370_v35  ;;  %v3509_v58 = vmul.bf16 %v7119_v5, %v7373_v36  ;;  %v3737_v32 = vmul.bf16 %v7141_v6, %v7370_v35 }
 0x2e1   : > { %3135 = vst.msk [vmem:[#allocation2 + $0xf9] sm:$0xff] %vm232_vm0, %v3103_v27  ;;  %v3101_v13 = vmax.f32 %v3025_v12, 0.0  ;;  %4905 = vmatprep.mubr.msk.bf16.mxu0 %vm232_vm0, %v4227_v21  ;;  %v3738_v62 = vmul.bf16 %v7141_v6, %v7373_v36  ;;  %v7399_v4 = vpack.c.bf16 %v3174_v47, %v3174_v47  ;;  %v3284_v0 = vmul.bf16 %v7108_v3, %v7370_v35 }
 0x2e2   : > { %v3338_v8 = vadd.bf16 %v3322_v50, %v3299_v30  ;;  %v3540_v26 = vadd.bf16 %v3508_v37, %v3469_v52  ;;  %v3541_v44 = vadd.bf16 %v3509_v58, %v3470_v63  ;;  %v3769_v53 = vadd.bf16 %v3737_v32, %v3698_v61 }
 0x2e3   : > { %3133 = vst.msk [vmem:[#allocation2 + $0xe1] sm:$0xff] %vm232_vm0, %v3101_v13  ;;  %v3770_v49 = vadd.bf16 %v3738_v62, %v3699_v31  ;;  %v3323_v27 = vmul.bf16 %v7113_v46, %v7397_v2  ;;  %v3400_v12 = vmul.bf16 %v7098_v51, %v7270_v14  ;;  %v3300_v18 = vadd.bf16 %v3284_v0, %v3261_v20 }
 0x2e4   : > { %v3359_v55 = vunpack.c.l.bf16 %v3338_v8  ;;  %v3360_v38 = vunpack.c.h.bf16 %v3338_v8  ;;  %v3577_v30 = vunpack.c.l.bf16 %v3540_v26  ;;  %v3578_v25 = vunpack.c.h.bf16 %v3540_v26 }
 0x2e5   : > { %v3579_v22 = vunpack.c.l.bf16 %v3541_v44  ;;  %v3806_v7 = vunpack.c.l.bf16 %v3769_v53  ;;  %v3807_v29 = vunpack.c.h.bf16 %v3769_v53  ;;  %v3808_v43 = vunpack.c.l.bf16 %v3770_v49 }
 0x2e6   : > { %v3912_v60 = vrot.slane %v3577_v30, 1  ;;  %v3913_v41 = vrot.slane %v3578_v25, 1  ;;  %v3439_v57 = vmul.bf16 %v7116_v10, %v7370_v35  ;;  %v3339_v50 = vadd.bf16 %v3323_v27, %v3300_v18 }
 0x2e7   : > { %v3915_v23 = vrot.slane %v3579_v22, 1  ;;  %v4104_v13 = vrot.slane %v3806_v7, 2  ;;  %v4105_v52 = vrot.slane %v3807_v29, 2  ;;  %v4107_v63 = vrot.slane %v3808_v43, 2 }
 0x2e8   : > { %v3914_v24 = vsel %vm1109_vm3, %v3912_v60, %v3913_v41  ;;  %v3440_v37 = vmul.bf16 %v7116_v10, %v7373_v36  ;;  %v3510_v11 = vmul.bf16 %v7119_v5, %v7397_v2  ;;  %v3511_v9 = vmul.bf16 %v7119_v5, %v7399_v4 }
 0x2e9   : > { %v3916_v19 = vsel %vm1109_vm3, %v3913_v41, %v3915_v23  ;;  %v4009_v56 = vadd.f32 %v3914_v24, %v3359_v55  ;;  %v4106_v39 = vsel %vm1302_vm4, %v4104_v13, %v4105_v52  ;;  %v4108_v8 = vsel %vm1302_vm4, %v4105_v52, %v4107_v63 }
 0x2ea   : > { %v4010_v33 = vadd.f32 %v3916_v19, %v3360_v38  ;;  %v3471_v26 = vadd.bf16 %v3439_v57, %v3400_v12  ;;  %v3361_v44 = vunpack.c.l.bf16 %v3339_v50  ;;  %v3362_v34 = vunpack.c.h.bf16 %v3339_v50  ;;  %v3176_v23 = vld [vmem:[#allocation2 + $0xe0] sm:$0xff]  ;;  %v3177_v20 = vld [vmem:[#allocation2 + $0xe8] sm:$0x3] }
 0x2eb   : > { %v4201_v16 = vadd.f32 %v4106_v39, %v4009_v56  ;;  %v3472_v47 = vadd.bf16 %v3440_v37, %v3401_v45  ;;  %v3629_v25 = vmul.bf16 %v7104_v17, %v7270_v14  ;;  %v3630_v22 = vmul.bf16 %v7104_v17, %v7272_v28  ;;  %v3175_v56 = vld [vmem:[#allocation2 + $0xd8] sm:$0xff] }
 0x2ec   : > { %v4202_v21 = vadd.f32 %v4108_v8, %v4010_v33  ;;  %v3542_v55 = vadd.bf16 %v3510_v11, %v3471_v26  ;;  %v3668_v61 = vmul.bf16 %v7126_v40, %v7370_v35  ;;  %v3669_v14 = vmul.bf16 %v7126_v40, %v7373_v36 }
 0x2ed   : > { %v3543_v59 = vadd.bf16 %v3511_v9, %v3472_v47  ;;  %v3739_v28 = vmul.bf16 %v7141_v6, %v7397_v2  ;;  %v3740_v12 = vmul.bf16 %v7141_v6, %v7399_v4  ;;  %v7443_v45 = vpack.c.bf16 %v3176_v23, %v3175_v56 }
 0x2ee   : > { %v4228_v30 = vpack.c.bf16 %v4202_v21, %v4201_v16  ;;  %v3580_v60 = vunpack.c.l.bf16 %v3542_v55  ;;  %v3581_v53 = vunpack.c.h.bf16 %v3542_v55  ;;  %v3700_v49 = vadd.bf16 %v3668_v61, %v3629_v25 }
 0x2ef   : > { %v4883_v1 = vpop.f32.mrf.mxu1  ;;  %v3582_v27 = vunpack.c.l.bf16 %v3543_v59  ;;  %v3701_v7 = vadd.bf16 %v3669_v14, %v3630_v22  ;;  %v7445_v13 = vpack.c.bf16 %v3177_v20, %v3177_v20  ;;  %v3262_v37 = vmul.bf16 %v7095_v15, %v7370_v35  ;;  %v3178_v20 = vld [vmem:[#allocation2 + $0xf0] sm:$0xff] }
 0x2f0   : > { %v3046_v58 = vadd.f32 %v4883_v1, %v7043_v42  ;;  %4906 = vmatmul.mubr.msk.bf16.gmra.mxu0 %vm232_vm0, %v4228_v30  ;;  %v3771_v29 = vadd.bf16 %v3739_v28, %v3700_v49  ;;  %v3917_v43 = vrot.slane %v3580_v60, 1  ;;  %v3918_v19 = vrot.slane %v3581_v53, 1 }
 0x2f1   : > { %v3037_v54 = vpop.f32.mrf.mxu1  ;;  %v3920_v18 = vrot.slane %v3582_v27, 1  ;;  %v3772_v52 = vadd.bf16 %v3740_v12, %v3701_v7  ;;  %v3285_v11 = vmul.bf16 %v7108_v3, %v7397_v2  ;;  %v3402_v16 = vmul.bf16 %v7098_v51, %v7370_v35 }
 0x2f2   : > { %v3106_v32 = vmax.f32 %v3046_v58, 0.0  ;;  %v3038_v48 = vadd.f32 %v7043_v42, %v3037_v54  ;;  %v3809_v63 = vunpack.c.l.bf16 %v3771_v29  ;;  %v3919_v57 = vsel %vm1109_vm3, %v3917_v43, %v3918_v19 }
 0x2f3   : > { %v4884_v38 = vpop.f32.mrf.mxu1  ;;  %v3921_v1 = vsel %vm1109_vm3, %v3918_v19, %v3920_v18  ;;  %v4011_v50 = vadd.f32 %v3919_v57, %v3361_v44  ;;  %v3811_v9 = vunpack.c.l.bf16 %v3772_v52  ;;  %v3301_v26 = vadd.bf16 %v3285_v11, %v3262_v37 }
 0x2f4   : > { %3138 = vst.msk [vmem:[#allocation2 + $0x121] sm:$0xff] %vm232_vm0, %v3106_v32  ;;  %v3104_v31 = vmax.f32 %v3038_v48, 0.0  ;;  %v3049_v62 = vadd.f32 %v4884_v38, %v7043_v42  ;;  %v4012_v58 = vadd.f32 %v3921_v1, %v3362_v34  ;;  %v4109_v39 = vrot.slane %v3809_v63, 2 }
 0x2f5   : > { %v3040_v41 = vpop.f32.mrf.mxu1  ;;  %v3324_v54 = vmul.bf16 %v7113_v46, %v7443_v45  ;;  %v3403_v21 = vmul.bf16 %v7098_v51, %v7373_v36  ;;  %v4112_v32 = vrot.slane %v3811_v9, 2  ;;  %v3441_v48 = vmul.bf16 %v7116_v10, %v7397_v2 }
 0x2f6   : > { %3136 = vst.msk [vmem:[#allocation2 + $0x109] sm:$0xff] %vm232_vm0, %v3104_v31  ;;  %v3107_v24 = vmax.f32 %v3049_v62, 0.0  ;;  %v3041_v0 = vadd.f32 %v7043_v42, %v3040_v41  ;;  %v3810_v42 = vunpack.c.h.bf16 %v3771_v29  ;;  %v3442_v34 = vmul.bf16 %v7116_v10, %v7399_v4  ;;  %v3179_v62 = vld [vmem:[#allocation2 + $0xf8] sm:$0xff] }
 0x2f7   : > { %v3340_v55 = vadd.bf16 %v3324_v54, %v3301_v26  ;;  %v3512_v38 = vmul.bf16 %v7119_v5, %v7443_v45  ;;  %v3513_v30 = vmul.bf16 %v7119_v5, %v7445_v13  ;;  %v3473_v22 = vadd.bf16 %v3441_v48, %v3402_v16 }
 0x2f8   : > { %3139 = vst.msk [vmem:[#allocation2 + $0x129] sm:$0xff] %vm232_vm0, %v3107_v24  ;;  %v3105_v33 = vmax.f32 %v3041_v0, 0.0  ;;  %v4110_v8 = vrot.slane %v3810_v42, 2  ;;  %v3474_v61 = vadd.bf16 %v3442_v34, %v3403_v21  ;;  %v3631_v31 = vmul.bf16 %v7104_v17, %v7370_v35  ;;  %v3180_v24 = vld [vmem:[#allocation2 + $0x100] sm:$0x3] }
 0x2f9   : > { %v3363_v60 = vunpack.c.l.bf16 %v3340_v55  ;;  %v3364_v41 = vunpack.c.h.bf16 %v3340_v55  ;;  %v3632_v53 = vmul.bf16 %v7104_v17, %v7373_v36  ;;  %v3544_v14 = vadd.bf16 %v3512_v38, %v3473_v22 }
 0x2fa   : > { %3137 = vst.msk [vmem:[#allocation2 + $0x111] sm:$0xff] %vm232_vm0, %v3105_v33  ;;  %v4111_v44 = vsel %vm1302_vm4, %v4109_v39, %v4110_v8  ;;  %v4113_v25 = vsel %vm1302_vm4, %v4110_v8, %v4112_v32  ;;  %v3545_v49 = vadd.bf16 %v3513_v30, %v3474_v61  ;;  %v3670_v28 = vmul.bf16 %v7126_v40, %v7397_v2  ;;  %v7499_v32 = vld [vmem:[#allocation6 + $0x1] ss:$0 sm:$0xff] }
 0x2fb   : > { %v4203_v47 = vadd.f32 %v4111_v44, %v4011_v50  ;;  %v4204_v59 = vadd.f32 %v4113_v25, %v4012_v58  ;;  %v3671_v23 = vmul.bf16 %v7126_v40, %v7399_v4  ;;  %v3741_v35 = vmul.bf16 %v7141_v6, %v7443_v45 }
 0x2fc   : > { %v3742_v27 = vmul.bf16 %v7141_v6, %v7445_v13  ;;  %v7482_v12 = vpack.c.bf16 %v3179_v62, %v3178_v20  ;;  %v3583_v36 = vunpack.c.l.bf16 %v3544_v14  ;;  %v3584_v7 = vunpack.c.h.bf16 %v3544_v14 }
 0x2fd   : > { %v4229_v0 = vpack.c.bf16 %v4204_v59, %v4203_v47  ;;  %v3585_v29 = vunpack.c.l.bf16 %v3545_v49  ;;  %v3702_v43 = vadd.bf16 %v3670_v28, %v3631_v31  ;;  %v3703_v19 = vadd.bf16 %v3671_v23, %v3632_v53 }
 0x2fe   : > { %v7485_v56 = vpack.c.bf16 %v3180_v24, %v3180_v24  ;;  %v3263_v33 = vmul.bf16 %v7095_v15, %v7397_v2  ;;  %v3286_v18 = vmul.bf16 %v7108_v3, %v7443_v45  ;;  %v3922_v63 = vrot.slane %v3583_v36, 1 }
 0x2ff   : > { %4909 = vmatprep.mubr.msk.bf16.mxu0 %vm232_vm0, %v4229_v0  ;;  %v3773_v52 = vadd.bf16 %v3741_v35, %v3702_v43  ;;  %v3923_v42 = vrot.slane %v3584_v7, 1  ;;  %v3925_v57 = vrot.slane %v3585_v29, 1  ;;  %v3774_v1 = vadd.bf16 %v3742_v27, %v3703_v19 }
 0x300   : > { %v3302_v50 = vadd.bf16 %v3286_v18, %v3263_v33  ;;  %v3325_v37 = vmul.bf16 %v7113_v46, %v7482_v12  ;;  %v3404_v11 = vmul.bf16 %v7098_v51, %v7397_v2  ;;  %v3405_v55 = vmul.bf16 %v7098_v51, %v7399_v4 }
 0x301   : > { %v3812_v9 = vunpack.c.l.bf16 %v3773_v52  ;;  %v3813_v58 = vunpack.c.h.bf16 %v3773_v52  ;;  %v3924_v39 = vsel %vm1109_vm3, %v3922_v63, %v3923_v42  ;;  %v3926_v8 = vsel %vm1109_vm3, %v3923_v42, %v3925_v57 }
 0x302   : > { %v3814_v54 = vunpack.c.l.bf16 %v3774_v1  ;;  %v4013_v16 = vadd.f32 %v3924_v39, %v3363_v60  ;;  %v4014_v21 = vadd.f32 %v3926_v8, %v3364_v41  ;;  %v7497_v44 = vadd.bf16 %v3325_v37, %v3302_v50  ;;  %v3182_v1 = vld [vmem:[#allocation2 + $0x110] sm:$0xff] }
 0x303   : > { %v4114_v34 = vrot.slane %v3812_v9, 2  ;;  %v4115_v47 = vrot.slane %v3813_v58, 2  ;;  %v3443_v61 = vmul.bf16 %v7116_v10, %v7443_v45  ;;  %v3444_v60 = vmul.bf16 %v7116_v10, %v7445_v13 }
 0x304   : > { %v4117_v30 = vrot.slane %v3814_v54, 2  ;;  %v3365_v25 = vunpack.c.l.bf16 %v7497_v44  ;;  %v3366_v22 = vunpack.c.h.bf16 %v7497_v44  ;;  %v3514_v28 = vmul.bf16 %v7119_v5, %v7482_v12 }
 0x305   : > { %v4116_v59 = vsel %vm1302_vm4, %v4114_v34, %v4115_v47  ;;  %v3475_v49 = vadd.bf16 %v3443_v61, %v3404_v11  ;;  %v3476_v0 = vadd.bf16 %v3444_v60, %v3405_v55  ;;  %v3515_v27 = vmul.bf16 %v7119_v5, %v7485_v56 }
 0x306   : > { %v4118_v53 = vsel %vm1302_vm4, %v4115_v47, %v4117_v30  ;;  %v4205_v14 = vadd.f32 %v4116_v59, %v4013_v16  ;;  %v3633_v7 = vmul.bf16 %v7104_v17, %v7397_v2  ;;  %v3634_v29 = vmul.bf16 %v7104_v17, %v7399_v4  ;;  %v3183_v2 = vld [vmem:[#allocation2 + $0x118] sm:$0x3] }
 0x307   : > { %v4206_v24 = vadd.f32 %v4118_v53, %v4014_v21  ;;  %v3546_v36 = vadd.bf16 %v3514_v28, %v3475_v49  ;;  %v3672_v18 = vmul.bf16 %v7126_v40, %v7443_v45  ;;  %v3547_v52 = vadd.bf16 %v3515_v27, %v3476_v0 }
 0x308   : > { %v4887_v26 = vpop.f32.mrf.mxu1  ;;  %v3673_v57 = vmul.bf16 %v7126_v40, %v7445_v13  ;;  %v3743_v37 = vmul.bf16 %v7141_v6, %v7482_v12  ;;  %v3744_v11 = vmul.bf16 %v7141_v6, %v7485_v56  ;;  %v7538_v21 = vpack.c.bf16 %v3183_v2, %v3183_v2 }
 0x309   : > { %v3062_v48 = vadd.f32 %v7499_v32, %v4887_v26  ;;  %v4230_v33 = vpack.c.bf16 %v4206_v24, %v4205_v14  ;;  %v3586_v63 = vunpack.c.l.bf16 %v3546_v36  ;;  %v3587_v42 = vunpack.c.h.bf16 %v3546_v36  ;;  %v3181_v26 = vld [vmem:[#allocation2 + $0x108] sm:$0xff] }
 0x30a   : > { %v3053_v38 = vpop.f32.mrf.mxu1  ;;  %v3704_v50 = vadd.bf16 %v3672_v18, %v3633_v7  ;;  %v3588_v9 = vunpack.c.l.bf16 %v3547_v52  ;;  %v3705_v58 = vadd.bf16 %v3673_v57, %v3634_v29  ;;  %v7536_v16 = vpack.c.bf16 %v3182_v1, %v3181_v26 }
 0x30b   : > { %v3110_v31 = vmax.f32 %v3062_v48, 0.0  ;;  %v3054_v62 = vadd.f32 %v7499_v32, %v3053_v38  ;;  %4910 = vmatmul.mubr.msk.bf16.gmra.mxu0 %vm232_vm0, %v4230_v33  ;;  %v3927_v39 = vrot.slane %v3586_v63, 1  ;;  %v3928_v8 = vrot.slane %v3587_v42, 1  ;;  %v3186_v42 = vld [vmem:[#allocation2 + $0x130] sm:$0x3] }
 0x30c   : > { %v4888_v41 = vpop.f32.mrf.mxu1  ;;  %v3775_v54 = vadd.bf16 %v3743_v37, %v3704_v50  ;;  %v3264_v44 = vmul.bf16 %v7095_v15, %v7443_v45  ;;  %v3776_v48 = vadd.bf16 %v3744_v11, %v3705_v58  ;;  %v3930_v47 = vrot.slane %v3588_v9, 1 }
 0x30d   : > { %3142 = vst.msk [vmem:[#allocation2 + $0x151] sm:$0xff] %vm232_vm0, %v3110_v31  ;;  %v3108_v23 = vmax.f32 %v3054_v62, 0.0  ;;  %v3065_v20 = vadd.f32 %v7499_v32, %v4888_v41  ;;  %v3929_v34 = vsel %vm1109_vm3, %v3927_v39, %v3928_v8  ;;  %v3287_v55 = vmul.bf16 %v7108_v3, %v7482_v12 }
 0x30e   : > { %v3056_v35 = vpop.f32.mrf.mxu1  ;;  %v3815_v38 = vunpack.c.l.bf16 %v3775_v54  ;;  %v3816_v30 = vunpack.c.h.bf16 %v3775_v54  ;;  %v4015_v61 = vadd.f32 %v3929_v34, %v3365_v25  ;;  %v3326_v31 = vmul.bf16 %v7113_v46, %v7536_v16 }
 0x30f   : > { %3140 = vst.msk [vmem:[#allocation2 + $0x139] sm:$0xff] %vm232_vm0, %v3108_v23  ;;  %v3111_v43 = vmax.f32 %v3065_v20, 0.0  ;;  %v3057_v19 = vadd.f32 %v7499_v32, %v3056_v35  ;;  %v3817_v62 = vunpack.c.l.bf16 %v3776_v48  ;;  %v3931_v59 = vsel %vm1109_vm3, %v3928_v8, %v3930_v47 }
 0x310   : > { %v3303_v60 = vadd.bf16 %v3287_v55, %v3264_v44  ;;  %v3406_v41 = vmul.bf16 %v7098_v51, %v7443_v45  ;;  %v4016_v53 = vadd.f32 %v3931_v59, %v3366_v22  ;;  %v4119_v14 = vrot.slane %v3815_v38, 2 }
 0x311   : > { %3143 = vst.msk [vmem:[#allocation2 + $0x159] sm:$0xff] %vm232_vm0, %v3111_v43  ;;  %v3109_v4 = vmax.f32 %v3057_v19, 0.0  ;;  %v4120_v49 = vrot.slane %v3816_v30, 2  ;;  %v3407_v28 = vmul.bf16 %v7098_v51, %v7445_v13  ;;  %v4122_v23 = vrot.slane %v3817_v62, 2  ;;  %v3185_v19 = vld [vmem:[#allocation2 + $0x128] sm:$0xff] }
 0x312   : > { %v3342_v20 = vadd.bf16 %v3326_v31, %v3303_v60  ;;  %v3445_v25 = vmul.bf16 %v7116_v10, %v7482_v12  ;;  %v3446_v24 = vmul.bf16 %v7116_v10, %v7485_v56  ;;  %v3516_v35 = vmul.bf16 %v7119_v5, %v7536_v16 }
 0x313   : > { %3141 = vst.msk [vmem:[#allocation2 + $0x141] sm:$0xff] %vm232_vm0, %v3109_v4  ;;  %v4121_v0 = vsel %vm1302_vm4, %v4119_v14, %v4120_v49  ;;  %v3517_v22 = vmul.bf16 %v7119_v5, %v7538_v21  ;;  %v3635_v27 = vmul.bf16 %v7104_v17, %v7443_v45  ;;  %v4123_v36 = vsel %vm1302_vm4, %v4120_v49, %v4122_v23  ;;  %v3184_v4 = vld [vmem:[#allocation2 + $0x120] sm:$0xff] }
 0x314   : > { %v4207_v7 = vadd.f32 %v4121_v0, %v4015_v61  ;;  %v3367_v29 = vunpack.c.l.bf16 %v3342_v20  ;;  %v3368_v43 = vunpack.c.h.bf16 %v3342_v20  ;;  %v4208_v33 = vadd.f32 %v4123_v36, %v4016_v53 }
 0x315   : > { %v3477_v18 = vadd.bf16 %v3445_v25, %v3406_v41  ;;  %v3478_v52 = vadd.bf16 %v3446_v24, %v3407_v28  ;;  %v3636_v63 = vmul.bf16 %v7104_v17, %v7445_v13  ;;  %v3674_v57 = vmul.bf16 %v7126_v40, %v7482_v12 }
 0x316   : > { %v3675_v1 = vmul.bf16 %v7126_v40, %v7485_v56  ;;  %v3745_v45 = vmul.bf16 %v7141_v6, %v7536_v16  ;;  %v3746_v2 = vmul.bf16 %v7141_v6, %v7538_v21  ;;  %v4231_v50 = vpack.c.bf16 %v4208_v33, %v4207_v7 }
 0x317   : > { %v3548_v37 = vadd.bf16 %v3516_v35, %v3477_v18  ;;  %v3549_v11 = vadd.bf16 %v3517_v22, %v3478_v52  ;;  %v7574_v9 = vpack.c.bf16 %v3185_v19, %v3184_v4  ;;  %v3706_v13 = vadd.bf16 %v3674_v57, %v3635_v27 }
 0x318   : > { %v3707_v58 = vadd.bf16 %v3675_v1, %v3636_v63  ;;  %v7576_v39 = vpack.c.bf16 %v3186_v42, %v3186_v42  ;;  %v3265_v8 = vmul.bf16 %v7095_v15, %v7482_v12  ;;  %4913 = vmatprep.mubr.msk.bf16.mxu0 %vm232_vm0, %v4231_v50  ;;  %v3288_v48 = vmul.bf16 %v7108_v3, %v7536_v16 }
 0x319   : > { %v3589_v26 = vunpack.c.l.bf16 %v3548_v37  ;;  %v3590_v54 = vunpack.c.h.bf16 %v3548_v37  ;;  %v3591_v44 = vunpack.c.l.bf16 %v3549_v11  ;;  %v3777_v47 = vadd.bf16 %v3745_v45, %v3706_v13 }
 0x31a   : > { %v3778_v55 = vadd.bf16 %v3746_v2, %v3707_v58  ;;  %v3327_v38 = vmul.bf16 %v7113_v46, %v7574_v9  ;;  %v3408_v30 = vmul.bf16 %v7098_v51, %v7482_v12  ;;  %v3304_v49 = vadd.bf16 %v3288_v48, %v3265_v8 }
 0x31b   : > { %v3932_v31 = vrot.slane %v3589_v26, 1  ;;  %v3933_v62 = vrot.slane %v3590_v54, 1  ;;  %v3935_v59 = vrot.slane %v3591_v44, 1  ;;  %v3818_v41 = vunpack.c.l.bf16 %v3777_v47  ;;  %v3188_v26 = vld [vmem:[#allocation2 + $0x140] sm:$0xff]  ;;  %v3189_v54 = vld [vmem:[#allocation2 + $0x148] sm:$0x3] }
 0x31c   : > { %v3819_v53 = vunpack.c.h.bf16 %v3777_v47  ;;  %v3820_v14 = vunpack.c.l.bf16 %v3778_v55  ;;  %v3343_v33 = vadd.bf16 %v3327_v38, %v3304_v49  ;;  %v3409_v63 = vmul.bf16 %v7098_v51, %v7485_v56 }
 0x31d   : > { %v3934_v20 = vsel %vm1109_vm3, %v3932_v31, %v3933_v62  ;;  %v3936_v25 = vsel %vm1109_vm3, %v3933_v62, %v3935_v59  ;;  %v4124_v22 = vrot.slane %v3818_v41, 2  ;;  %v3447_v42 = vmul.bf16 %v7116_v10, %v7536_v16 }
 0x31e   : > { %v4017_v0 = vadd.f32 %v3934_v20, %v3367_v29  ;;  %v4018_v35 = vadd.f32 %v3936_v25, %v3368_v43  ;;  %v4125_v27 = vrot.slane %v3819_v53, 2  ;;  %v4127_v19 = vrot.slane %v3820_v14, 2 }
 0x31f   : > { %v3448_v29 = vmul.bf16 %v7116_v10, %v7538_v21  ;;  %v3369_v4 = vunpack.c.l.bf16 %v3343_v33  ;;  %v3370_v50 = vunpack.c.h.bf16 %v3343_v33  ;;  %v3479_v37 = vadd.bf16 %v3447_v42, %v3408_v30 }
 0x320   : > { %v4126_v52 = vsel %vm1302_vm4, %v4124_v22, %v4125_v27  ;;  %v4128_v1 = vsel %vm1302_vm4, %v4125_v27, %v4127_v19  ;;  %v3518_v58 = vmul.bf16 %v7119_v5, %v7574_v9  ;;  %v3519_v8 = vmul.bf16 %v7119_v5, %v7576_v39 }
 0x321   : > { %v4891_v34 = vpop.f32.mrf.mxu1  ;;  %v4209_v45 = vadd.f32 %v4126_v52, %v4017_v0  ;;  %v4210_v2 = vadd.f32 %v4128_v1, %v4018_v35  ;;  %v3480_v13 = vadd.bf16 %v3448_v29, %v3409_v63  ;;  %v3637_v44 = vmul.bf16 %v7104_v17, %v7482_v12 }
 0x322   : > { %v3078_v61 = vadd.f32 %v7499_v32, %v4891_v34  ;;  %v3638_v48 = vmul.bf16 %v7104_v17, %v7485_v56  ;;  %v3676_v34 = vmul.bf16 %v7126_v40, %v7536_v16  ;;  %v3550_v47 = vadd.bf16 %v3518_v58, %v3479_v37 }
 0x323   : > { %v3069_v60 = vpop.f32.mrf.mxu1  ;;  %v3551_v55 = vadd.bf16 %v3519_v8, %v3480_v13  ;;  %v3677_v38 = vmul.bf16 %v7126_v40, %v7538_v21  ;;  %v3747_v30 = vmul.bf16 %v7141_v6, %v7574_v9  ;;  %v3748_v56 = vmul.bf16 %v7141_v6, %v7576_v39 }
 0x324   : > { %v3114_v28 = vmax.f32 %v3078_v61, 0.0  ;;  %v3070_v23 = vadd.f32 %v7499_v32, %v3069_v60  ;;  %v3187_v61 = vld [vmem:[#allocation2 + $0x138] sm:$0xff]  ;;  %v3708_v12 = vadd.bf16 %v3676_v34, %v3637_v44  ;;  %v7624_v62 = vpack.c.bf16 %v3189_v54, %v3189_v54  ;;  %v3192_v34 = vld [vmem:[#allocation2 + $0x160] sm:$0x3] }
 0x325   : > { %v4892_v24 = vpop.f32.mrf.mxu1  ;;  %v7622_v31 = vpack.c.bf16 %v3188_v26, %v3187_v61  ;;  %v3592_v59 = vunpack.c.l.bf16 %v3550_v47  ;;  %v3593_v60 = vunpack.c.h.bf16 %v3550_v47  ;;  %v3594_v41 = vunpack.c.l.bf16 %v3551_v55  ;;  %v3191_v26 = vld [vmem:[#allocation2 + $0x158] sm:$0xff] }
 0x326   : > { %3146 = vst.msk [vmem:[#allocation2 + $0x181] sm:$0xff] %vm232_vm0, %v3114_v28  ;;  %v3112_v36 = vmax.f32 %v3070_v23, 0.0  ;;  %v3081_v7 = vadd.f32 %v7499_v32, %v4892_v24  ;;  %v3709_v53 = vadd.bf16 %v3677_v38, %v3638_v48  ;;  %v3779_v14 = vadd.bf16 %v3747_v30, %v3708_v12  ;;  %v3190_v30 = vld [vmem:[#allocation2 + $0x150] sm:$0xff] }
 0x327   : > { %v3072_v18 = vpop.f32.mrf.mxu1  ;;  %v3266_v49 = vmul.bf16 %v7095_v15, %v7536_v16  ;;  %v3289_v28 = vmul.bf16 %v7108_v3, %v7574_v9  ;;  %v3328_v23 = vmul.bf16 %v7113_v46, %v7622_v31  ;;  %v3937_v25 = vrot.slane %v3592_v59, 1 }
 0x328   : > { %3144 = vst.msk [vmem:[#allocation2 + $0x169] sm:$0xff] %vm232_vm0, %v3112_v36  ;;  %v3115_v43 = vmax.f32 %v3081_v7, 0.0  ;;  %v3073_v57 = vadd.f32 %v7499_v32, %v3072_v18  ;;  %v4232_v32 = vpack.c.bf16 %v4210_v2, %v4209_v45  ;;  %v3780_v20 = vadd.bf16 %v3748_v56, %v3709_v53 }
 0x329   : > { %v3938_v24 = vrot.slane %v3593_v60, 1  ;;  %v3940_v0 = vrot.slane %v3594_v41, 1  ;;  %v3821_v35 = vunpack.c.l.bf16 %v3779_v14  ;;  %v3822_v22 = vunpack.c.h.bf16 %v3779_v14 }
 0x32a   : > { %3147 = vst.msk [vmem:[#allocation2 + $0x189] sm:$0xff] %vm232_vm0, %v3115_v43  ;;  %v3113_v11 = vmax.f32 %v3073_v57, 0.0  ;;  %4914 = vmatmul.mubr.msk.bf16.gmra.mxu0 %vm232_vm0, %v4232_v32  ;;  %v3305_v27 = vadd.bf16 %v3289_v28, %v3266_v49  ;;  %v3410_v36 = vmul.bf16 %v7098_v51, %v7536_v16  ;;  %v3823_v7 = vunpack.c.l.bf16 %v3780_v20 }
 0x32b   : > { %v3939_v19 = vsel %vm1109_vm3, %v3937_v25, %v3938_v24  ;;  %v3941_v33 = vsel %vm1109_vm3, %v3938_v24, %v3940_v0  ;;  %v3411_v18 = vmul.bf16 %v7098_v51, %v7538_v21  ;;  %v4129_v42 = vrot.slane %v3821_v35, 2 }
 0x32c   : > { %3145 = vst.msk [vmem:[#allocation2 + $0x171] sm:$0xff] %vm232_vm0, %v3113_v11  ;;  %v4019_v52 = vadd.f32 %v3939_v19, %v3369_v4  ;;  %v4020_v63 = vadd.f32 %v3941_v33, %v3370_v50  ;;  %v4130_v29 = vrot.slane %v3822_v22, 2  ;;  %v4132_v43 = vrot.slane %v3823_v7, 2 }
 0x32d   : > { %v3344_v57 = vadd.bf16 %v3328_v23, %v3305_v27  ;;  %v3449_v1 = vmul.bf16 %v7116_v10, %v7574_v9  ;;  %v3450_v45 = vmul.bf16 %v7116_v10, %v7576_v39  ;;  %v3520_v37 = vmul.bf16 %v7119_v5, %v7622_v31 }
 0x32e   : > { %v4131_v2 = vsel %vm1302_vm4, %v4129_v42, %v4130_v29  ;;  %v3521_v11 = vmul.bf16 %v7119_v5, %v7624_v62  ;;  %v3639_v4 = vmul.bf16 %v7104_v17, %v7536_v16  ;;  %v4133_v50 = vsel %vm1302_vm4, %v4130_v29, %v4132_v43 }
 0x32f   : > { %v4211_v13 = vadd.f32 %v4131_v2, %v4019_v52  ;;  %v3371_v58 = vunpack.c.l.bf16 %v3344_v57  ;;  %v3372_v8 = vunpack.c.h.bf16 %v3344_v57  ;;  %v4212_v54 = vadd.f32 %v4133_v50, %v4020_v63 }
 0x330   : > { %v3481_v32 = vadd.bf16 %v3449_v1, %v3410_v36  ;;  %v3482_v44 = vadd.bf16 %v3450_v45, %v3411_v18  ;;  %v3640_v48 = vmul.bf16 %v7104_v17, %v7538_v21  ;;  %v3678_v47 = vmul.bf16 %v7126_v40, %v7574_v9 }
 0x331   : > { %v3679_v55 = vmul.bf16 %v7126_v40, %v7576_v39  ;;  %v3749_v16 = vmul.bf16 %v7141_v6, %v7622_v31  ;;  %v3750_v38 = vmul.bf16 %v7141_v6, %v7624_v62  ;;  %v4233_v61 = vpack.c.bf16 %v4212_v54, %v4211_v13 }
 0x332   : > { %v3552_v12 = vadd.bf16 %v3520_v37, %v3481_v32  ;;  %v3553_v56 = vadd.bf16 %v3521_v11, %v3482_v44  ;;  %v7660_v59 = vpack.c.bf16 %v3191_v26, %v3190_v30  ;;  %v3710_v21 = vadd.bf16 %v3678_v47, %v3639_v4 }
 0x333   : > { %v3711_v60 = vadd.bf16 %v3679_v55, %v3640_v48  ;;  %v7662_v41 = vpack.c.bf16 %v3192_v34, %v3192_v34  ;;  %v3267_v53 = vmul.bf16 %v7095_v15, %v7574_v9  ;;  %4917 = vmatprep.mubr.msk.bf16.mxu0 %vm232_vm0, %v4233_v61  ;;  %v3290_v23 = vmul.bf16 %v7108_v3, %v7622_v31 }
 0x334   : > { %v3595_v14 = vunpack.c.l.bf16 %v3552_v12  ;;  %v3596_v49 = vunpack.c.h.bf16 %v3552_v12  ;;  %v3597_v28 = vunpack.c.l.bf16 %v3553_v56  ;;  %v3781_v20 = vadd.bf16 %v3749_v16, %v3710_v21  ;;  %v3194_v16 = vld [vmem:[#allocation2 + $0x170] sm:$0xff] }
 0x335   : > { %v3782_v25 = vadd.bf16 %v3750_v38, %v3711_v60  ;;  %v3329_v24 = vmul.bf16 %v7113_v46, %v7660_v59  ;;  %v3412_v0 = vmul.bf16 %v7098_v51, %v7574_v9  ;;  %v3306_v36 = vadd.bf16 %v3290_v23, %v3267_v53  ;;  %v3195_v38 = vld [vmem:[#allocation2 + $0x178] sm:$0x3] }
 0x336   : > { %v3942_v35 = vrot.slane %v3595_v14, 1  ;;  %v3943_v22 = vrot.slane %v3596_v49, 1  ;;  %v3945_v27 = vrot.slane %v3597_v28, 1  ;;  %v3824_v7 = vunpack.c.l.bf16 %v3781_v20 }
 0x337   : > { %v3825_v19 = vunpack.c.h.bf16 %v3781_v20  ;;  %v3826_v33 = vunpack.c.l.bf16 %v3782_v25  ;;  %v3413_v18 = vmul.bf16 %v7098_v51, %v7576_v39  ;;  %v3345_v42 = vadd.bf16 %v3329_v24, %v3306_v36 }
 0x338   : > { %v3944_v52 = vsel %vm1109_vm3, %v3942_v35, %v3943_v22  ;;  %v3946_v63 = vsel %vm1109_vm3, %v3943_v22, %v3945_v27  ;;  %v3451_v29 = vmul.bf16 %v7116_v10, %v7622_v31  ;;  %v4134_v1 = vrot.slane %v3824_v7, 2 }
 0x339   : > { %v4021_v43 = vadd.f32 %v3944_v52, %v3371_v58  ;;  %v4022_v57 = vadd.f32 %v3946_v63, %v3372_v8  ;;  %v4135_v45 = vrot.slane %v3825_v19, 2  ;;  %v4137_v2 = vrot.slane %v3826_v33, 2 }
 0x33a   : > { %v3373_v37 = vunpack.c.l.bf16 %v3345_v42  ;;  %v3374_v11 = vunpack.c.h.bf16 %v3345_v42  ;;  %v3452_v4 = vmul.bf16 %v7116_v10, %v7624_v62  ;;  %v3483_v13 = vadd.bf16 %v3451_v29, %v3412_v0 }
 0x33b   : > { %v4136_v50 = vsel %vm1302_vm4, %v4134_v1, %v4135_v45  ;;  %v3522_v26 = vmul.bf16 %v7119_v5, %v7660_v59  ;;  %v3523_v54 = vmul.bf16 %v7119_v5, %v7662_v41  ;;  %v4138_v58 = vsel %vm1302_vm4, %v4135_v45, %v4137_v2 }
 0x33c   : > { %v4213_v8 = vadd.f32 %v4136_v50, %v4021_v43  ;;  %v3484_v32 = vadd.bf16 %v3452_v4, %v3413_v18  ;;  %v3641_v44 = vmul.bf16 %v7104_v17, %v7574_v9  ;;  %v4214_v48 = vadd.f32 %v4138_v58, %v4022_v57 }
 0x33d   : > { %v3554_v34 = vadd.bf16 %v3522_v26, %v3483_v13  ;;  %v3642_v47 = vmul.bf16 %v7104_v17, %v7576_v39  ;;  %v3680_v55 = vmul.bf16 %v7126_v40, %v7622_v31  ;;  %v3681_v61 = vmul.bf16 %v7126_v40, %v7624_v62  ;;  %v3193_v39 = vld [vmem:[#allocation2 + $0x168] sm:$0xff] }
 0x33e   : > { %v3555_v30 = vadd.bf16 %v3523_v54, %v3484_v32  ;;  %v3751_v12 = vmul.bf16 %v7141_v6, %v7660_v59  ;;  %v3752_v9 = vmul.bf16 %v7141_v6, %v7662_v41  ;;  %v4234_v56 = vpack.c.bf16 %v4214_v48, %v4213_v8  ;;  %v3197_v48 = vld [vmem:[#allocation2 + $0x188] sm:$0xff] }
 0x33f   : > { %v3598_v21 = vunpack.c.l.bf16 %v3554_v34  ;;  %v3599_v60 = vunpack.c.h.bf16 %v3554_v34  ;;  %v3712_v53 = vadd.bf16 %v3680_v55, %v3641_v44  ;;  %v3713_v49 = vadd.bf16 %v3681_v61, %v3642_v47 }
 0x340   : > { %v3600_v14 = vunpack.c.l.bf16 %v3555_v30  ;;  %v7699_v28 = vpack.c.bf16 %v3194_v16, %v3193_v39  ;;  %v7701_v23 = vpack.c.bf16 %v3195_v38, %v3195_v38  ;;  %4918 = vmatmul.mubr.msk.bf16.gmra.mxu0 %vm232_vm0, %v4234_v56  ;;  %v3268_v0 = vmul.bf16 %v7095_v15, %v7622_v31  ;;  %v3198_v38 = vld [vmem:[#allocation2 + $0x190] sm:$0x3] }
 0x341   : > { %v3783_v20 = vadd.bf16 %v3751_v12, %v3712_v53  ;;  %v3947_v25 = vrot.slane %v3598_v21, 1  ;;  %v3948_v24 = vrot.slane %v3599_v60, 1  ;;  %v3784_v35 = vadd.bf16 %v3752_v9, %v3713_v49  ;;  %v3196_v9 = vld [vmem:[#allocation2 + $0x180] sm:$0xff] }
 0x342   : > { %v3950_v22 = vrot.slane %v3600_v14, 1  ;;  %v3291_v27 = vmul.bf16 %v7108_v3, %v7660_v59  ;;  %v3330_v36 = vmul.bf16 %v7113_v46, %v7699_v28  ;;  %v3414_v18 = vmul.bf16 %v7098_v51, %v7622_v31 }
 0x343   : > { %v3827_v7 = vunpack.c.l.bf16 %v3783_v20  ;;  %v3828_v19 = vunpack.c.h.bf16 %v3783_v20  ;;  %v3949_v33 = vsel %vm1109_vm3, %v3947_v25, %v3948_v24  ;;  %v3829_v52 = vunpack.c.l.bf16 %v3784_v35 }
 0x344   : > { %v3951_v63 = vsel %vm1109_vm3, %v3948_v24, %v3950_v22  ;;  %v4023_v42 = vadd.f32 %v3949_v33, %v3373_v37  ;;  %v3307_v29 = vadd.bf16 %v3291_v27, %v3268_v0  ;;  %v3415_v45 = vmul.bf16 %v7098_v51, %v7624_v62 }
 0x345   : > { %v4024_v43 = vadd.f32 %v3951_v63, %v3374_v11  ;;  %v4139_v57 = vrot.slane %v3827_v7, 2  ;;  %v4140_v1 = vrot.slane %v3828_v19, 2  ;;  %v4142_v2 = vrot.slane %v3829_v52, 2 }
 0x346   : > { %v3346_v4 = vadd.bf16 %v3330_v36, %v3307_v29  ;;  %v3453_v50 = vmul.bf16 %v7116_v10, %v7660_v59  ;;  %v3454_v13 = vmul.bf16 %v7116_v10, %v7662_v41  ;;  %v3524_v37 = vmul.bf16 %v7119_v5, %v7699_v28 }
 0x347   : > { %v4141_v26 = vsel %vm1302_vm4, %v4139_v57, %v4140_v1  ;;  %v3525_v11 = vmul.bf16 %v7119_v5, %v7701_v23  ;;  %v3643_v54 = vmul.bf16 %v7104_v17, %v7622_v31  ;;  %v4143_v58 = vsel %vm1302_vm4, %v4140_v1, %v4142_v2 }
 0x348   : > { %v4215_v8 = vadd.f32 %v4141_v26, %v4023_v42  ;;  %v3375_v32 = vunpack.c.l.bf16 %v3346_v4  ;;  %v3376_v44 = vunpack.c.h.bf16 %v3346_v4  ;;  %v4216_v34 = vadd.f32 %v4143_v58, %v4024_v43 }
 0x349   : > { %v3485_v47 = vadd.bf16 %v3453_v50, %v3414_v18  ;;  %v3486_v55 = vadd.bf16 %v3454_v13, %v3415_v45  ;;  %v3644_v16 = vmul.bf16 %v7104_v17, %v7624_v62  ;;  %v3682_v30 = vmul.bf16 %v7126_v40, %v7660_v59 }
 0x34a   : > { %v3683_v61 = vmul.bf16 %v7126_v40, %v7662_v41  ;;  %v3753_v31 = vmul.bf16 %v7141_v6, %v7699_v28  ;;  %v3754_v12 = vmul.bf16 %v7141_v6, %v7701_v23  ;;  %v4235_v56 = vpack.c.bf16 %v4216_v34, %v4215_v8 }
 0x34b   : > { %v3556_v21 = vadd.bf16 %v3524_v37, %v3485_v47  ;;  %v3557_v60 = vadd.bf16 %v3525_v11, %v3486_v55  ;;  %v7738_v53 = vpack.c.bf16 %v3197_v48, %v3196_v9  ;;  %v3714_v62 = vadd.bf16 %v3682_v30, %v3643_v54  ;;  %v3201_v9 = vld [vmem:[#allocation2 + $0x1a8] sm:$0x3] }
 0x34c   : > { %v3715_v39 = vadd.bf16 %v3683_v61, %v3644_v16  ;;  %v7740_v14 = vpack.c.bf16 %v3198_v38, %v3198_v38  ;;  %v3269_v49 = vmul.bf16 %v7095_v15, %v7660_v59  ;;  %4921 = vmatprep.mubr.msk.bf16.mxu0 %vm232_vm0, %v4235_v56  ;;  %v3292_v0 = vmul.bf16 %v7108_v3, %v7699_v28 }
 0x34d   : > { %v3601_v20 = vunpack.c.l.bf16 %v3556_v21  ;;  %v3602_v25 = vunpack.c.h.bf16 %v3556_v21  ;;  %v3603_v24 = vunpack.c.l.bf16 %v3557_v60  ;;  %v3785_v35 = vadd.bf16 %v3753_v31, %v3714_v62  ;;  %v3199_v31 = vld [vmem:[#allocation2 + $0x198] sm:$0xff] }
 0x34e   : > { %v3786_v22 = vadd.bf16 %v3754_v12, %v3715_v39  ;;  %v3331_v27 = vmul.bf16 %v7113_v46, %v7738_v53  ;;  %v3416_v36 = vmul.bf16 %v7098_v51, %v7660_v59  ;;  %v3308_v18 = vadd.bf16 %v3292_v0, %v3269_v49  ;;  %v3200_v12 = vld [vmem:[#allocation2 + $0x1a0] sm:$0xff] }
 0x34f   : > { %v3952_v7 = vrot.slane %v3601_v20, 1  ;;  %v3953_v19 = vrot.slane %v3602_v25, 1  ;;  %v3955_v33 = vrot.slane %v3603_v24, 1  ;;  %v3830_v52 = vunpack.c.l.bf16 %v3785_v35 }
 0x350   : > { %v3831_v63 = vunpack.c.h.bf16 %v3785_v35  ;;  %v3832_v42 = vunpack.c.l.bf16 %v3786_v22  ;;  %v3417_v29 = vmul.bf16 %v7098_v51, %v7662_v41  ;;  %v3347_v1 = vadd.bf16 %v3331_v27, %v3308_v18 }
 0x351   : > { %v3954_v43 = vsel %vm1109_vm3, %v3952_v7, %v3953_v19  ;;  %v3956_v57 = vsel %vm1109_vm3, %v3953_v19, %v3955_v33  ;;  %v3455_v45 = vmul.bf16 %v7116_v10, %v7699_v28  ;;  %v4144_v50 = vrot.slane %v3830_v52, 2 }
 0x352   : > { %v4025_v2 = vadd.f32 %v3954_v43, %v3375_v32  ;;  %v4026_v4 = vadd.f32 %v3956_v57, %v3376_v44  ;;  %v4145_v13 = vrot.slane %v3831_v63, 2  ;;  %v4147_v26 = vrot.slane %v3832_v42, 2 }
 0x353   : > { %v3377_v37 = vunpack.c.l.bf16 %v3347_v1  ;;  %v3378_v11 = vunpack.c.h.bf16 %v3347_v1  ;;  %v3456_v54 = vmul.bf16 %v7116_v10, %v7701_v23  ;;  %v3487_v8 = vadd.bf16 %v3455_v45, %v3416_v36 }
 0x354   : > { %v4146_v58 = vsel %vm1302_vm4, %v4144_v50, %v4145_v13  ;;  %v3526_v48 = vmul.bf16 %v7119_v5, %v7738_v53  ;;  %v3527_v34 = vmul.bf16 %v7119_v5, %v7740_v14  ;;  %v4148_v32 = vsel %vm1302_vm4, %v4145_v13, %v4147_v26 }
 0x355   : > { %v4217_v44 = vadd.f32 %v4146_v58, %v4025_v2  ;;  %v3488_v47 = vadd.bf16 %v3456_v54, %v3417_v29  ;;  %v3645_v55 = vmul.bf16 %v7104_v17, %v7660_v59  ;;  %v4218_v16 = vadd.f32 %v4148_v32, %v4026_v4 }
 0x356   : > { %v3558_v38 = vadd.bf16 %v3526_v48, %v3487_v8  ;;  %v3646_v30 = vmul.bf16 %v7104_v17, %v7662_v41  ;;  %v3684_v61 = vmul.bf16 %v7126_v40, %v7699_v28  ;;  %v3685_v21 = vmul.bf16 %v7126_v40, %v7701_v23 }
 0x357   : > { %v3559_v56 = vadd.bf16 %v3527_v34, %v3488_v47  ;;  %v3755_v60 = vmul.bf16 %v7141_v6, %v7738_v53  ;;  %v3756_v59 = vmul.bf16 %v7141_v6, %v7740_v14  ;;  %v4236_v62 = vpack.c.bf16 %v4218_v16, %v4217_v44 }
 0x358   : > { %v3604_v39 = vunpack.c.l.bf16 %v3558_v38  ;;  %v3605_v49 = vunpack.c.h.bf16 %v3558_v38  ;;  %v3716_v41 = vadd.bf16 %v3684_v61, %v3645_v55  ;;  %v3717_v25 = vadd.bf16 %v3685_v21, %v3646_v30  ;;  %v7807_v30 = vld [vmem:[#allocation6 + $0x2] ss:$0 sm:$0xff] }
 0x359   : > { %v3606_v20 = vunpack.c.l.bf16 %v3559_v56  ;;  %v3236_v24 = vpack.c.bf16 %v3200_v12, %v3199_v31  ;;  %v3237_v0 = vpack.c.bf16 %v3201_v9, %v3201_v9  ;;  %4922 = vmatmul.mubr.msk.bf16.gmra.mxu0 %vm232_vm0, %v4236_v62  ;;  %v3270_v36 = vmul.bf16 %v7095_v15, %v7699_v28  ;;  %v4475_v9 = vld [vmem:[%s5286_s9 + $0x10] sm:$0xff] }
 0x35a   : > { %v3787_v35 = vadd.bf16 %v3755_v60, %v3716_v41  ;;  %v3957_v22 = vrot.slane %v3604_v39, 1  ;;  %v3958_v27 = vrot.slane %v3605_v49, 1  ;;  %v3788_v7 = vadd.bf16 %v3756_v59, %v3717_v25 }
 0x35b   : > { %v3960_v19 = vrot.slane %v3606_v20, 1  ;;  %v3293_v33 = vmul.bf16 %v7108_v3, %v7738_v53  ;;  %v3332_v18 = vmul.bf16 %v7113_v46, %v3236_v24  ;;  %v3418_v29 = vmul.bf16 %v7098_v51, %v7699_v28 }
 0x35c   : > { %v3833_v52 = vunpack.c.l.bf16 %v3787_v35  ;;  %v3834_v63 = vunpack.c.h.bf16 %v3787_v35  ;;  %v3959_v42 = vsel %vm1109_vm3, %v3957_v22, %v3958_v27  ;;  %v3835_v43 = vunpack.c.l.bf16 %v3788_v7 }
 0x35d   : > { %v3961_v57 = vsel %vm1109_vm3, %v3958_v27, %v3960_v19  ;;  %v4027_v1 = vadd.f32 %v3959_v42, %v3377_v37  ;;  %v3309_v45 = vadd.bf16 %v3293_v33, %v3270_v36  ;;  %v3419_v3 = vmul.bf16 %v7098_v51, %v7701_v23 }
 0x35e   : > { %v4028_v15 = vadd.f32 %v3961_v57, %v3378_v11  ;;  %v4149_v2 = vrot.slane %v3833_v52, 2  ;;  %v4150_v4 = vrot.slane %v3834_v63, 2  ;;  %v4152_v50 = vrot.slane %v3835_v43, 2  ;;  %v4474_v43 = vld [vmem:[%s5286_s9 + $0x8] sm:$0xff] }
 0x35f   : > { %v3457_v46 = vmul.bf16 %v7116_v10, %v7738_v53  ;;  %v3458_v26 = vmul.bf16 %v7116_v10, %v7740_v14  ;;  %v3528_v54 = vmul.bf16 %v7119_v5, %v3236_v24  ;;  %v3529_v37 = vmul.bf16 %v7119_v5, %v3237_v0 }
 0x360   : > { %v4151_v13 = vsel %vm1302_vm4, %v4149_v2, %v4150_v4  ;;  %v4153_v11 = vsel %vm1302_vm4, %v4150_v4, %v4152_v50  ;;  %v3348_v8 = vadd.bf16 %v3332_v18, %v3309_v45  ;;  %v3647_v51 = vmul.bf16 %v7104_v17, %v7699_v28  ;;  %v4476_v18 = vld [vmem:[%s5286_s9 + $0x18] sm:$0xff] }
 0x361   : > { %v4219_v58 = vadd.f32 %v4151_v13, %v4027_v1  ;;  %v4220_v48 = vadd.f32 %v4153_v11, %v4028_v15  ;;  %v3489_v34 = vadd.bf16 %v3457_v46, %v3418_v29  ;;  %v3490_v32 = vadd.bf16 %v3458_v26, %v3419_v3  ;;  %v4479_v13 = vld [vmem:[%s5286_s9 + $0x30] sm:$0xff] }
 0x362   : > { %v3648_v44 = vmul.bf16 %v7104_v17, %v7701_v23  ;;  %v3686_v10 = vmul.bf16 %v7126_v40, %v7738_v53  ;;  %v3687_v5 = vmul.bf16 %v7126_v40, %v7740_v14  ;;  %v3757_v47 = vmul.bf16 %v7141_v6, %v3236_v24  ;;  %v4473_v24 = vld [vmem:[%s5286_s9] sm:$0xff] }
 0x363   : > { %v3758_v55 = vmul.bf16 %v7141_v6, %v3237_v0  ;;  %v4237_v16 = vpack.c.bf16 %v4220_v48, %v4219_v58  ;;  %v3560_v38 = vadd.bf16 %v3528_v54, %v3489_v34  ;;  %v3561_v28 = vadd.bf16 %v3529_v37, %v3490_v32  ;;  %v4899_v53 = vpop.f32.mrf.mxu0  ;;  %v4477_v37 = vld [vmem:[%s5286_s9 + $0x20] sm:$0xff] }
 0x364   : > { %v3718_v61 = vadd.bf16 %v3686_v10, %v3647_v51  ;;  %v3719_v31 = vadd.bf16 %v3687_v5, %v3648_v44  ;;  %v3379_v40 = vunpack.c.l.bf16 %v3348_v8  ;;  %v4355_v6 = vadd.f32 %v4899_v53, %v7807_v30  ;;  %v4480_v51 = vld [vmem:[%s5286_s9 + $0x38] sm:$0xff]  ;;  %v4478_v44 = vld [vmem:[%s5286_s9 + $0x28] sm:$0xff] }
 0x365   : > { %4925 = vmatprep.mubr.msk.bf16.mxu0 %vm232_vm0, %v4237_v16  ;;  %v3607_v17 = vunpack.c.l.bf16 %v3560_v38  ;;  %v3608_v23 = vunpack.c.h.bf16 %v3560_v38  ;;  %v3609_v12 = vunpack.c.l.bf16 %v3561_v28  ;;  %v3380_v21 = vunpack.c.h.bf16 %v3348_v8  ;;  %v4346_v39 = vpop.f32.mrf.mxu0  ;;  %v4483_v16 = vld [vmem:[%s5286_s9 + $0x50] sm:$0xff] }
 0x366   : > { %v3789_v14 = vadd.bf16 %v3757_v47, %v3718_v61  ;;  %v3790_v56 = vadd.bf16 %v3758_v55, %v3719_v31  ;;  %v4507_v25 = vadd.f32 %v4475_v9, %v4355_v6  ;;  %v4347_v22 = vadd.f32 %v7807_v30, %v4346_v39  ;;  %v4481_v61 = vld [vmem:[%s5286_s9 + $0x40] sm:$0xff] }
 0x367   : > { %v3962_v60 = vrot.slane %v3607_v17, 1  ;;  %v3963_v59 = vrot.slane %v3608_v23, 1  ;;  %v3965_v62 = vrot.slane %v3609_v12, 1  ;;  %v4900_v27 = vpop.f32.mrf.mxu0  ;;  %v4484_v12 = vld [vmem:[%s5286_s9 + $0x58] sm:$0xff] }
 0x368   : > { %v3836_v49 = vunpack.c.l.bf16 %v3789_v14  ;;  %v3837_v41 = vunpack.c.h.bf16 %v3789_v14  ;;  %v3838_v20 = vunpack.c.l.bf16 %v3790_v56  ;;  %4539 = vst.msk [vmem:[%s7818_s24 + $0x10] sm:$0xff] %vm232_vm0, %v4507_v25  ;;  %v4505_v63 = vadd.f32 %v4473_v24, %v4347_v22  ;;  %v4482_v14 = vld [vmem:[%s5286_s9 + $0x48] sm:$0xff]  ;;  %v4488_v24 = vld [vmem:[%s5286_s9 + $0x78] sm:$0xff] }
 0x369   : > { %v3964_v0 = vsel %vm1109_vm3, %v3962_v60, %v3963_v59  ;;  %v3966_v35 = vsel %vm1109_vm3, %v3963_v59, %v3965_v62  ;;  %v4358_v42 = vadd.f32 %v4900_v27, %v7807_v30  ;;  %v4349_v29 = vpop.f32.mrf.mxu0  ;;  %v4487_v59 = vld [vmem:[%s5286_s9 + $0x70] sm:$0xff]  ;;  %v4486_v27 = vld [vmem:[%s5286_s9 + $0x68] sm:$0xff] }
 0x36a   : > { %v4029_v36 = vadd.f32 %v3964_v0, %v3379_v40  ;;  %v4030_v7 = vadd.f32 %v3966_v35, %v3380_v21  ;;  %v4154_v19 = vrot.slane %v3836_v49, 2  ;;  %v4155_v33 = vrot.slane %v3837_v41, 2  ;;  %4537 = vst.msk [vmem:[%s7818_s24] sm:$0xff] %vm232_vm0, %v4505_v63  ;;  %v4485_v49 = vld [vmem:[%s5286_s9 + $0x60] sm:$0xff] }
 0x36b   : > { %v4157_v52 = vrot.slane %v3838_v20, 2  ;;  %v4350_v1 = vadd.f32 %v7807_v30, %v4349_v29  ;;  %v4508_v2 = vadd.f32 %v4476_v18, %v4358_v42  ;;  %v4491_v18 = vld [vmem:[%s5286_s9 + $0x90] sm:$0xff]  ;;  %v4489_v42 = vld [vmem:[%s5286_s9 + $0x80] sm:$0xff] }
 0x36c   : > { %v4156_v57 = vsel %vm1302_vm4, %v4154_v19, %v4155_v33 }
 0x36d   : > { %v4158_v45 = vsel %vm1302_vm4, %v4155_v33, %v4157_v52  ;;  %v4221_v15 = vadd.f32 %v4156_v57, %v4029_v36  ;;  %v4506_v3 = vadd.f32 %v4474_v43, %v4350_v1  ;;  %4540 = vst.msk [vmem:[%s7818_s24 + $0x18] sm:$0xff] %vm232_vm0, %v4508_v2  ;;  %v4492_v1 = vld [vmem:[%s5286_s9 + $0x98] sm:$0xff] }
 0x36e   : > { %v4222_v4 = vadd.f32 %v4158_v45, %v4030_v7 }
 0x36f   : > { %4538 = vst.msk [vmem:[%s7818_s24 + $0x8] sm:$0xff] %vm232_vm0, %v4506_v3 }
 0x370   : > { %v4238_v50 = vpack.c.bf16 %v4222_v4, %v4221_v15  ;;  %v4490_v4 = vld [vmem:[%s5286_s9 + $0x88] sm:$0xff] }
 0x372   : > { %4926 = vmatmul.mubr.msk.bf16.gmra.mxu0 %vm232_vm0, %v4238_v50 }
 0x395   : > { %v4903_v46 = vpop.f32.mrf.mxu0 }
 0x396   : > { %v4371_v26 = vadd.f32 %v4903_v46, %v7807_v30 }
 0x397   : > { %v4362_v54 = vpop.f32.mrf.mxu0 }
 0x398   : > { %v4511_v11 = vadd.f32 %v4479_v13, %v4371_v26  ;;  %v4363_v58 = vadd.f32 %v7807_v30, %v4362_v54  ;;  %v4495_v26 = vld [vmem:[%s5286_s9 + $0xb0] sm:$0xff] }
 0x399   : > { %v4904_v8 = vpop.f32.mrf.mxu0 }
 0x39a   : > { %4543 = vst.msk [vmem:[%s7818_s24 + $0x30] sm:$0xff] %vm232_vm0, %v4511_v11  ;;  %v4509_v48 = vadd.f32 %v4477_v37, %v4363_v58  ;;  %v4374_v34 = vadd.f32 %v4904_v8, %v7807_v30  ;;  %v4493_v11 = vld [vmem:[%s5286_s9 + $0xa0] sm:$0xff] }
 0x39b   : > { %v4365_v32 = vpop.f32.mrf.mxu0 }
 0x39c   : > { %4541 = vst.msk [vmem:[%s7818_s24 + $0x20] sm:$0xff] %vm232_vm0, %v4509_v48  ;;  %v4512_v10 = vadd.f32 %v4480_v51, %v4374_v34  ;;  %v4366_v5 = vadd.f32 %v7807_v30, %v4365_v32  ;;  %v4496_v48 = vld [vmem:[%s5286_s9 + $0xb8] sm:$0xff] }
 0x39e   : > { %4544 = vst.msk [vmem:[%s7818_s24 + $0x38] sm:$0xff] %vm232_vm0, %v4512_v10  ;;  %v4510_v47 = vadd.f32 %v4478_v44, %v4366_v5  ;;  %v4494_v10 = vld [vmem:[%s5286_s9 + $0xa8] sm:$0xff] }
 0x3a0   : > { %4542 = vst.msk [vmem:[%s7818_s24 + $0x28] sm:$0xff] %vm232_vm0, %v4510_v47 }
 0x3b0   : > { %v4907_v55 = vpop.f32.mrf.mxu0 }
 0x3b1   : > { %v4387_v38 = vadd.f32 %v4907_v55, %v7807_v30 }
 0x3b2   : > { %v4378_v28 = vpop.f32.mrf.mxu0 }
 0x3b3   : > { %v4515_v31 = vadd.f32 %v4483_v16, %v4387_v38  ;;  %v4379_v17 = vadd.f32 %v7807_v30, %v4378_v28  ;;  %v4499_v38 = vld [vmem:[%s5286_s9 + $0xd0] sm:$0xff] }
 0x3b4   : > { %v4908_v23 = vpop.f32.mrf.mxu0 }
 0x3b5   : > { %4547 = vst.msk [vmem:[%s7818_s24 + $0x50] sm:$0xff] %vm232_vm0, %v4515_v31  ;;  %v4513_v53 = vadd.f32 %v4481_v61, %v4379_v17  ;;  %v4390_v9 = vadd.f32 %v4908_v23, %v7807_v30  ;;  %v4497_v31 = vld [vmem:[%s5286_s9 + $0xc0] sm:$0xff] }
 0x3b6   : > { %v4381_v40 = vpop.f32.mrf.mxu0 }
 0x3b7   : > { %4545 = vst.msk [vmem:[%s7818_s24 + $0x40] sm:$0xff] %vm232_vm0, %v4513_v53  ;;  %v4516_v56 = vadd.f32 %v4484_v12, %v4390_v9  ;;  %v4382_v6 = vadd.f32 %v7807_v30, %v4381_v40  ;;  %v4500_v53 = vld [vmem:[%s5286_s9 + $0xd8] sm:$0xff] }
 0x3b9   : > { %4548 = vst.msk [vmem:[%s7818_s24 + $0x58] sm:$0xff] %vm232_vm0, %v4516_v56  ;;  %v4514_v21 = vadd.f32 %v4482_v14, %v4382_v6  ;;  %v4498_v56 = vld [vmem:[%s5286_s9 + $0xc8] sm:$0xff] }
 0x3bb   : > { %4546 = vst.msk [vmem:[%s7818_s24 + $0x48] sm:$0xff] %vm232_vm0, %v4514_v21 }
 0x3cb   : > { %v4911_v60 = vpop.f32.mrf.mxu0 }
 0x3cc   : > { %v4403_v62 = vadd.f32 %v4911_v60, %v7807_v30 }
 0x3cd   : > { %v4394_v39 = vpop.f32.mrf.mxu0 }
 0x3ce   : > { %v4519_v41 = vadd.f32 %v4487_v59, %v4403_v62  ;;  %v4395_v20 = vadd.f32 %v7807_v30, %v4394_v39  ;;  %v4503_v62 = vld [vmem:[%s5286_s9 + $0xf0] sm:$0xff] }
 0x3cf   : > { %v4912_v25 = vpop.f32.mrf.mxu0 }
 0x3d0   : > { %4551 = vst.msk [vmem:[%s7818_s24 + $0x70] sm:$0xff] %vm232_vm0, %v4519_v41  ;;  %v4517_v0 = vadd.f32 %v4485_v49, %v4395_v20  ;;  %v4406_v35 = vadd.f32 %v4912_v25, %v7807_v30  ;;  %v4501_v41 = vld [vmem:[%s5286_s9 + $0xe0] sm:$0xff] }
 0x3d1   : > { %v4397_v22 = vpop.f32.mrf.mxu0 }
 0x3d2   : > { %4549 = vst.msk [vmem:[%s7818_s24 + $0x60] sm:$0xff] %vm232_vm0, %v4517_v0  ;;  %v4520_v36 = vadd.f32 %v4488_v24, %v4406_v35  ;;  %v4398_v7 = vadd.f32 %v7807_v30, %v4397_v22  ;;  %v4504_v0 = vld [vmem:[%s5286_s9 + $0xf8] sm:$0xff] }
 0x3d4   : > { %4552 = vst.msk [vmem:[%s7818_s24 + $0x78] sm:$0xff] %vm232_vm0, %v4520_v36  ;;  %v4518_v19 = vadd.f32 %v4486_v27, %v4398_v7  ;;  %v4502_v36 = vld [vmem:[%s5286_s9 + $0xe8] sm:$0xff]  ;;  %s5059_s9 = scalar_lea.vmem %s7950_s25, 4096 }
 0x3d5   : > { %p5060_p5 = scmp.ne.s32.totalorder %s7950_s25, %s5059_s9  ;;  %p5067_p10 = scmp.lt.s32.totalorder %s5065_s28, %s5059_s9 }
 0x3d6   : > { %4550 = vst.msk [vmem:[%s7818_s24 + $0x68] sm:$0xff] %vm232_vm0, %v4518_v19 }
 0x3d7   : > { %p5061_p7 = pnand %p5060_p5, %p8064_p11  ;;  %p5068_p0 = por %p5067_p10, %p5066_p13 }
 0x3d9   : > { %p5062_p12 = pneg %p5061_p7 }
 0x3db   : > { %p5069_p3 = pnand %p5068_p0, %p5062_p12 }
 0x3ea   : > { %v4915_v33 = vpop.f32.mrf.mxu0 }
 0x3eb   : > { %v4419_v52 = vadd.f32 %v4915_v33, %v7807_v30 }
 0x3ec   : > { %v4410_v63 = vpop.f32.mrf.mxu0 }
 0x3ed   : > { %v4523_v29 = vadd.f32 %v4491_v18, %v4419_v52  ;;  %v4411_v43 = vadd.f32 %v7807_v30, %v4410_v63 }
 0x3ee   : > { %v4916_v57 = vpop.f32.mrf.mxu0 }
 0x3ef   : > { %4555 = vst.msk [vmem:[%s7818_s24 + $0x90] sm:$0xff] %vm232_vm0, %v4523_v29  ;;  %v4521_v45 = vadd.f32 %v4489_v42, %v4411_v43  ;;  %v4422_v15 = vadd.f32 %v4916_v57, %v7807_v30 }
 0x3f0   : > { %v4413_v2 = vpop.f32.mrf.mxu0 }
 0x3f1   : > { %4553 = vst.msk [vmem:[%s7818_s24 + $0x80] sm:$0xff] %vm232_vm0, %v4521_v45  ;;  %v4524_v3 = vadd.f32 %v4492_v1, %v4422_v15  ;;  %v4414_v50 = vadd.f32 %v7807_v30, %v4413_v2 }
 0x3f3   : > { %4556 = vst.msk [vmem:[%s7818_s24 + $0x98] sm:$0xff] %vm232_vm0, %v4524_v3  ;;  %v4522_v46 = vadd.f32 %v4490_v4, %v4414_v50 }
 0x3f5   : > { %4554 = vst.msk [vmem:[%s7818_s24 + $0x88] sm:$0xff] %vm232_vm0, %v4522_v46 }
 0x400   : > { %v4919_v13 = vpop.f32.mrf.mxu0 }
 0x401   : > { %v4435_v54 = vadd.f32 %v4919_v13, %v7807_v30 }
 0x402   : > { %v4426_v37 = vpop.f32.mrf.mxu0 }
 0x403   : > { %v4527_v58 = vadd.f32 %v4495_v26, %v4435_v54  ;;  %v4427_v8 = vadd.f32 %v7807_v30, %v4426_v37 }
 0x404   : > { %v4920_v51 = vpop.f32.mrf.mxu0 }
 0x405   : > { %4559 = vst.msk [vmem:[%s7818_s24 + $0xb0] sm:$0xff] %vm232_vm0, %v4527_v58  ;;  %v4525_v34 = vadd.f32 %v4493_v11, %v4427_v8  ;;  %v4438_v32 = vadd.f32 %v4920_v51, %v7807_v30 }
 0x406   : > { %v4429_v44 = vpop.f32.mrf.mxu0 }
 0x407   : > { %4557 = vst.msk [vmem:[%s7818_s24 + $0xa0] sm:$0xff] %vm232_vm0, %v4525_v34  ;;  %v4528_v5 = vadd.f32 %v4496_v48, %v4438_v32  ;;  %v4430_v47 = vadd.f32 %v7807_v30, %v4429_v44 }
 0x409   : > { %4560 = vst.msk [vmem:[%s7818_s24 + $0xb8] sm:$0xff] %vm232_vm0, %v4528_v5  ;;  %v4526_v55 = vadd.f32 %v4494_v10, %v4430_v47 }
 0x40b   : > { %4558 = vst.msk [vmem:[%s7818_s24 + $0xa8] sm:$0xff] %vm232_vm0, %v4526_v55 }
 0x419   : > { %v4923_v16 = vpop.f32.mrf.mxu0 }
 0x41a   : > { %v4451_v28 = vadd.f32 %v4923_v16, %v7807_v30 }
 0x41b   : > { %v4442_v61 = vpop.f32.mrf.mxu0 }
 0x41c   : > { %v4531_v17 = vadd.f32 %v4499_v38, %v4451_v28  ;;  %v4443_v23 = vadd.f32 %v7807_v30, %v4442_v61 }
 0x41d   : > { %v4924_v12 = vpop.f32.mrf.mxu0 }
 0x41e   : > { %4563 = vst.msk [vmem:[%s7818_s24 + $0xd0] sm:$0xff] %vm232_vm0, %v4531_v17  ;;  %v4529_v9 = vadd.f32 %v4497_v31, %v4443_v23  ;;  %v4454_v40 = vadd.f32 %v4924_v12, %v7807_v30 }
 0x41f   : > { %v4445_v14 = vpop.f32.mrf.mxu0 }
 0x420   : > { %4561 = vst.msk [vmem:[%s7818_s24 + $0xc0] sm:$0xff] %vm232_vm0, %v4529_v9  ;;  %v4532_v6 = vadd.f32 %v4500_v53, %v4454_v40  ;;  %v4446_v21 = vadd.f32 %v7807_v30, %v4445_v14 }
 0x422   : > { %4564 = vst.msk [vmem:[%s7818_s24 + $0xd8] sm:$0xff] %vm232_vm0, %v4532_v6  ;;  %v4530_v60 = vadd.f32 %v4498_v56, %v4446_v21 }
 0x424   : > { %4562 = vst.msk [vmem:[%s7818_s24 + $0xc8] sm:$0xff] %vm232_vm0, %v4530_v60 }
 0x432   : > { %v4927_v59 = vpop.f32.mrf.mxu0 }
 0x433   : > { %v4467_v39 = vadd.f32 %v4927_v59, %v7807_v30 }
 0x434   : > { %v4458_v49 = vpop.f32.mrf.mxu0 }
 0x435   : > { %v4535_v20 = vadd.f32 %v4503_v62, %v4467_v39  ;;  %v4459_v25 = vadd.f32 %v7807_v30, %v4458_v49 }
 0x436   : > { %v4928_v24 = vpop.f32.mrf.mxu0 }
 0x437   : > { %4567 = vst.msk [vmem:[%s7818_s24 + $0xf0] sm:$0xff] %vm232_vm0, %v4535_v20  ;;  %v4533_v35 = vadd.f32 %v4501_v41, %v4459_v25  ;;  %v4470_v22 = vadd.f32 %v4928_v24, %v7807_v30 }
 0x438   : > { %v4461_v27 = vpop.f32.mrf.mxu0 }
 0x439   : > { %4565 = vst.msk [vmem:[%s7818_s24 + $0xe0] sm:$0xff] %vm232_vm0, %v4533_v35  ;;  %v4536_v7 = vadd.f32 %v4504_v0, %v4470_v22  ;;  %v4462_v19 = vadd.f32 %v7807_v30, %v4461_v27 }
 0x43b   : > { %4568 = vst.msk [vmem:[%s7818_s24 + $0xf8] sm:$0xff] %vm232_vm0, %v4536_v7  ;;  %v4534_v33 = vadd.f32 %v4502_v36, %v4462_v19 }
 0x43d   : > { %4566 = vst.msk [vmem:[%s7818_s24 + $0xe8] sm:$0xff] %vm232_vm0, %v4534_v33 }
 0x43e   : > { %5072 = shalt.err (!%p5069_p3)
}
 0x43f   : > { %s5073_s29 = scalar_lea.hbm %s7948_s21, 4096  ;;  %s5077_s12 = scalar_lea.hbm %s8001_s4, 8192 }
 0x440   : > { %p5074_p2 = scmp.ne.s32.totalorder %s7948_s21, %s5073_s29  ;;  %p5078_p4 = scmp.lt.s32.totalorder %s7948_s21, %s8001_s4 }
 0x441   : > { %p5079_p6 = scmp.lt.s32.totalorder %s5077_s12, %s5073_s29 }
 0x442   : > { %p5075_p9 = pnand %p5074_p2, %p8064_p11 }
 0x443   : > { %p5080_p8 = por %p5079_p6, %p5078_p4 }
 0x444   : > { %p5076_p1 = pneg %p5075_p9 }
 0x446   : > { %p5081_p5 = pnand %p5080_p8, %p5076_p1 }
 0x448   : > { %5084 = shalt.err (!%p5081_p5)
}
 0x449   : > { %s5137_s24 = smov 128   ;;  %s5138_s7 = smov 8  }
 0x44a   : > { %4939 = dma.vmem_to_hbm [thread:$0]  (%p8064_p11), %s7950_s25, 4096, %s7948_s21, %s4570_s19, %s5137_s24, %s5137_s24, %s5138_s7  }
 0x44b PF: > { %s4598_s5 = sand.u32 1, %s5115_s15   ;;  %p8065_p7 = scmp.ne.s32.totalorder %s8015_s22, 0 }
 0x44c   : > { %p8066_p12 = scmp.ge.s32.totalorder %s5127_s18, 2  ;;  %s4599_s8 = scalar_lea.sflag [#allocation5], %s4598_s5 }
 0x44e   : > { %p4950_p13 = pnand %p8066_p12, %p8065_p7 }
 0x450   : > { %p4951_p10 = pneg %p4950_p13 }
 0x452   : > { %5110 = dma.done.wait (%p4951_p10), %s4599_s8, 4096  }
 0x453   : > { %5112 = vsyncadd (%p4951_p10), %s4599_s8, 4294963200  ;;  %p18_p0 = scmp.ge.s32.totalorder %s5218_s27, 4   ;;  %s8067_s15 = smov %s5119_s16 }
 0x454   : > { %s8068_s16 = smov %s5123_s17  ;;  %s8069_s17 = smov %s5235_s10 }
 0x455   : > { %s8070_s18 = smov %s5218_s27  ;;  %20 = sbr.rel (!%p18_p0) target bundleno = 6 (0x6), region = 93 }
 0x45a   :  { %4604 = vsyncpa [#allocation4], 1 }
 0x45b   :  { %4606 = vsyncpa [#allocation4 + $0x1], 1 }
 0x45c   :  { %4607 = vsyncpa [#allocation7], 1 }
 0x45d   :  { %4608 = vsyncpa [#allocation5], 1 }
 0x45e   :  { %4610 = vsyncpa [#allocation5 + $0x1], 1 }

</bundles_post_ra>
